<compile_context>
chip_gen: v5e
topology: v5e:2x2
jax: 0.10.0
libtpu: 0.0.40
codegen_flags: <defaults>
</compile_context>

<pallas_src>
import jax
import jax.numpy as jnp
from jax.experimental import pallas as pl
from jax.experimental.pallas import tpu as pltpu

ATTRIBUTE_DIMS = {
    "country_of_origin": 13,
    "native_speaker": 2,
    "accent": 15,
    "digit": 10,
    "age": 5,
    "gender": 2,
}
LATENT_DIM = 512
EMB_DIM = 256
KSIZE = 5          # ConvTranspose2d kernel size
NEG_SLOPE = 0.2    # nn.LeakyReLU(0.2)

# Per output parity: (kernel index ky/kx, input shift dy/dx).
_TAPS = {0: ((4, -1), (2, 0), (0, 1)),   # even output rows/cols
         1: ((3, 0), (1, 1))}            # odd  output rows/cols
_PHASES = ((0, 0), (0, 1), (1, 0), (1, 1))


# --------------------------------------------------------------------------
# Fused matmul (+ optional bias + activation) Pallas kernel.
# bf16 MXU operands, f32 accumulation; the K-tiled accumulator variant is only
# used when K does not fit a single tile.
# --------------------------------------------------------------------------
def _apply_act(y, act):
    if act == "leaky":
        return jnp.where(y > 0, y, NEG_SLOPE * y)
    if act == "tanh":
        return jnp.tanh(y)
    return y


def _make_kernel(act, has_bias, multi_k):
    if multi_k:
        def kernel(*refs):
            if has_bias:
                x_ref, w_ref, b_ref, o_ref, acc_ref = refs
            else:
                x_ref, w_ref, o_ref, acc_ref = refs
                b_ref = None

            @pl.when(pl.program_id(2) == 0)
            def _():
                acc_ref[...] = jnp.zeros_like(acc_ref)

            acc_ref[...] += jnp.dot(x_ref[...], w_ref[...],
                                    preferred_element_type=jnp.float32)

            @pl.when(pl.program_id(2) == pl.num_programs(2) - 1)
            def _():
                y = acc_ref[...]
                if has_bias:
                    y = y + b_ref[...]
                o_ref[...] = _apply_act(y, act).astype(o_ref.dtype)
    else:
        def kernel(*refs):
            if has_bias:
                x_ref, w_ref, b_ref, o_ref = refs
            else:
                x_ref, w_ref, o_ref = refs
            y = jnp.dot(x_ref[...], w_ref[...],
                        preferred_element_type=jnp.float32)
            if has_bias:
                y = y + b_ref[...]
            o_ref[...] = _apply_act(y, act).astype(o_ref.dtype)
    return kernel


def _pick_tile(dim, target, align):
    """Largest multiple of `align` dividing `dim` and <= target, else dim."""
    t = min(target, dim)
    t -= t % align
    while t >= align:
        if dim % t == 0:
            return t
        t -= align
    return dim


def pallas_mm_bias_act(x, w, b=None, act="none", out_dtype=jnp.bfloat16):
    """(M, K) @ (K, N) [+ b] with optional fused activation."""
    M, K = x.shape
    K2, N = w.shape
    assert K == K2
    if x.dtype != jnp.bfloat16:
        x = x.astype(jnp.bfloat16)
    if w.dtype != jnp.bfloat16:
        w = w.astype(jnp.bfloat16)
    has_bias = b is not None

    tm = _pick_tile(M, 512, 16)     # 16-aligned: bf16 packs two rows / sublane
    tn = _pick_tile(N, 2048, 128)
    tk = _pick_tile(K, 2048, 128)

    # Guarantee >=2 parallel output tiles whenever possible (2-TC / megacore).
    if (M // tm) * (N // tn) < 2:
        if tm >= 32:
            t2 = _pick_tile(M, tm // 2, 16)
            if M // t2 >= 2:
                tm = t2
        if (M // tm) * (N // tn) < 2 and tn >= 256:
            t2 = _pick_tile(N, tn // 2, 128)
            if N // t2 >= 2:
                tn = t2

    gm, gn, gk = M // tm, N // tn, K // tk
    multi_k = gk > 1

    if multi_k:
        x_map = lambda i, j, k: (i, k)
        w_map = lambda i, j, k: (k, j)
        b_map = lambda i, j, k: (0, j)
        o_map = lambda i, j, k: (i, j)
        grid = (gm, gn, gk)
        sem = ("parallel", "parallel", "arbitrary")
        scratch = [pltpu.VMEM((tm, tn), jnp.float32)]
    else:
        x_map = lambda i, j: (i, 0)
        w_map = lambda i, j: (0, j)
        b_map = lambda i, j: (0, j)
        o_map = lambda i, j: (i, j)
        grid = (gm, gn)
        sem = ("parallel", "parallel")
        scratch = []

    in_specs = [pl.BlockSpec((tm, tk), x_map), pl.BlockSpec((tk, tn), w_map)]
    args = [x, w]
    if has_bias:
        in_specs.append(pl.BlockSpec((1, tn), b_map))
        args.append(b.reshape(1, N).astype(jnp.float32))

    out_itemsize = jnp.dtype(out_dtype).itemsize
    need = (2 * (tm * tk + tk * tn) * 2          # double-buffered bf16 inputs
            + 2 * tm * tn * out_itemsize         # double-buffered output
            + (tm * tn * 4 if multi_k else 0)    # f32 accumulator
            + (2 * tn * 4 if has_bias else 0))
    vmem_limit = int(min(56 * 2**20, max(32 * 2**20, 2 * need)))

    return pl.pallas_call(
        _make_kernel(act, has_bias, multi_k),
        out_shape=jax.ShapeDtypeStruct((M, N), out_dtype),
        grid=grid,
        in_specs=in_specs,
        out_specs=pl.BlockSpec((tm, tn), o_map),
        scratch_shapes=scratch,
        compiler_params=pltpu.CompilerParams(
            dimension_semantics=sem,
            vmem_limit_bytes=vmem_limit,
        ),
    )(*args)


# --------------------------------------------------------------------------
# ConvTranspose2d(stride=2, padding=2, output_padding=1, kernel=5) + activation
# Input-stationary: one Pallas matmul produces all per-tap contributions with
# phase-grouped, lane-padded columns; overlap-add / bias / act stay fusible.
# --------------------------------------------------------------------------
def conv_transpose2d_act(x_nhwc, w_big, b, act):
    B, H, W, Cin = x_nhwc.shape
    cout = b.shape[0]

    contrib = pallas_mm_bias_act(x_nhwc.reshape(B * H * W, Cin), w_big,
                                 None, act="none", out_dtype=jnp.bfloat16)
    contrib = contrib.reshape(B, H, W, -1)   # (B, H, W, Npad), phase-grouped
    bias = b.reshape(1, 1, 1, cout).astype(jnp.float32)

    phases = []
    off = 0
    for r, s in _PHASES:
        dys = [dy for _, dy in _TAPS[r]]
        dxs = [dx for _, dx in _TAPS[s]]
        ntap = len(dys) * len(dxs)
        slab = contrib[:, :, :, off:off + ntap * cout]
        slab = slab.reshape(B, H, W, len(dys), len(dxs), cout)
        off += ntap * cout

        acc = None
        for i, dy in enumerate(dys):
            for j, dx in enumerate(dxs):
                # interior slice + edge-only pad (no full-tensor pad copy)
                v = slab[:, max(dy, 0):H + min(dy, 0),
                         max(dx, 0):W + min(dx, 0), i, j, :]
                v = jnp.pad(v, ((0, 0),
                                (max(-dy, 0), max(dy, 0)),
                                (max(-dx, 0), max(dx, 0)),
                                (0, 0)))
                acc = v if acc is None else acc + v

        y = acc.astype(jnp.float32) + bias
        y = _apply_act(y, act)
        phases.append(y.astype(jnp.bfloat16))

    # Interleave the 4 parity phases into (B, 2H, 2W, Cout) in bf16.
    y = jnp.stack(phases, axis=3)                       # order: 00,01,10,11
    y = y.reshape(B, H, W, 2, 2, cout)
    y = y.transpose(0, 1, 3, 2, 4, 5).reshape(B, 2 * H, 2 * W, cout)
    return y


# --------------------------------------------------------------------------
# Parameters (deterministic, shapes match the PyTorch module with width d)
# --------------------------------------------------------------------------
def init_params(key, d):
    keys = iter(jax.random.split(key, 32))
    params = {}
    params["emb"] = {
        k: 0.05 * jax.random.normal(next(keys), (n, EMB_DIM), jnp.float32)
        for k, n in ATTRIBUTE_DIMS.items()
    }
    in_f = LATENT_DIM + EMB_DIM * len(ATTRIBUTE_DIMS)
    out_f = 256 * d
    params["lin_w"] = 0.02 * jax.random.normal(next(keys), (in_f, out_f), jnp.float32)
    params["lin_b"] = 0.01 * jax.random.normal(next(keys), (out_f,), jnp.float32)
    chans = [16 * d, 8 * d, 4 * d, 2 * d, d, 1]
    params["convs"] = []
    for cin, cout in zip(chans[:-1], chans[1:]):
        w = 0.05 * jax.random.normal(next(keys), (cin, cout, KSIZE, KSIZE), jnp.float32)
        bb = 0.01 * jax.random.normal(next(keys), (cout,), jnp.float32)
        params["convs"].append((w, bb))
    return params


def prepare_params(params):
    """One-time: fold embeddings into the Linear (sorted-key order, matching
    the reference forward), pad K to a multiple of 128, and build the
    phase-grouped, 128-lane-padded (Cin, 25*Cout -> Npad) deconv matrices."""
    lin_w = params["lin_w"]
    blocks = [lin_w[:LATENT_DIM]]
    off = LATENT_DIM
    for k in sorted(ATTRIBUTE_DIMS.keys()):
        blocks.append(params["emb"][k] @ lin_w[off:off + EMB_DIM])
        off += EMB_DIM
    w_comb = jnp.concatenate(blocks, axis=0)
    kpad = (-w_comb.shape[0]) % 128
    if kpad:
        w_comb = jnp.pad(w_comb, ((0, kpad), (0, 0)))
    w_comb = w_comb.astype(jnp.bfloat16)

    convs = []
    for w, bb in params["convs"]:
        w_t = jnp.transpose(w, (0, 2, 3, 1))   # (Cin, kH, kW, Cout)
        cols = []
        for r, s in _PHASES:
            for ky, _ in _TAPS[r]:
                for kx, _ in _TAPS[s]:
                    cols.append(w_t[:, ky, kx, :])
        w_big = jnp.concatenate(cols, axis=1)  # (Cin, 25*Cout), phase-grouped
        npad = (-w_big.shape[1]) % 128
        if npad:
            w_big = jnp.pad(w_big, ((0, 0), (0, npad)))
        convs.append({"w": w_big.astype(jnp.bfloat16),
                      "b": bb.astype(jnp.float32)})
    return {"w_comb": w_comb,
            "lin_b": params["lin_b"].astype(jnp.float32),
            "convs": convs}


# --------------------------------------------------------------------------
# Forward pass (mirrors Generator.forward)
# --------------------------------------------------------------------------
def generator_forward(prepared, z, a):
    z = z.reshape(-1, LATENT_DIM)
    B = z.shape[0]
    d = prepared["w_comb"].shape[1] // 256

    x = jnp.concatenate([z] + [a[k] for k in sorted(ATTRIBUTE_DIMS.keys())], axis=1)
    kpad = prepared["w_comb"].shape[0] - x.shape[1]
    if kpad:
        x = jnp.pad(x, ((0, 0), (0, kpad)))
    x = x.astype(jnp.bfloat16)

    h = pallas_mm_bias_act(x, prepared["w_comb"], prepared["lin_b"],
                           act="leaky", out_dtype=jnp.bfloat16)
    h = h.reshape(B, 16 * d, 4, 4).transpose(0, 2, 3, 1)   # NCHW -> NHWC (tiny)

    acts = ["leaky", "leaky", "leaky", "leaky", "tanh"]
    for layer, act in zip(prepared["convs"], acts):
        h = conv_transpose2d_act(h, layer["w"], layer["b"], act)

    # Cout == 1, so NHWC -> NCHW is a pure reshape; single f32 cast at the end.
    return h.transpose(0, 3, 1, 2).astype(jnp.float32)


# --------------------------------------------------------------------------
# Pure-JAX f32 reference of the PyTorch module (for validation only)
# --------------------------------------------------------------------------
def reference_forward(params, z, a):
    z = z.reshape(-1, LATENT_DIM)
    embs = [a[k] @ params["emb"][k] for k in sorted(ATTRIBUTE_DIMS.keys())]
    h = jnp.concatenate([z] + embs, axis=1) @ params["lin_w"] + params["lin_b"]
    h = jnp.where(h > 0, h, NEG_SLOPE * h)
    d = params["lin_w"].shape[1] // 256
    h = h.reshape(-1, 16 * d, 4, 4).transpose(0, 2, 3, 1)
    n_layers = len(params["convs"])
    for li, (w, bb) in enumerate(params["convs"]):
        rhs = jnp.transpose(w, (2, 3, 0, 1))[::-1, ::-1, :, :]   # flipped HWIO
        h = jax.lax.conv_general_dilated(
            h, rhs, window_strides=(1, 1), padding=((2, 3), (2, 3)),
            lhs_dilation=(2, 2), dimension_numbers=("NHWC", "HWIO", "NHWC"))
        h = h + bb.reshape(1, 1, 1, -1)
        if li < n_layers - 1:
            h = jnp.where(h > 0, h, NEG_SLOPE * h)
        else:
            h = jnp.tanh(h)
    return h.transpose(0, 3, 1, 2)


if __name__ == "__main__":
    d = 8      # small width (module default is 64)
    B = 2

    key = jax.random.PRNGKey(0)
    kp, kz, ka = jax.random.split(key, 3)
    params = init_params(kp, d)
    prepared = prepare_params(params)

    z = jax.random.normal(kz, (B, LATENT_DIM), jnp.float32)
    a = {}
    akeys = jax.random.split(ka, len(ATTRIBUTE_DIMS))
    for kk, (name, n) in zip(akeys, sorted(ATTRIBUTE_DIMS.items())):
        idx = jax.random.randint(kk, (B,), 0, n)
        a[name] = jax.nn.one_hot(idx, n, dtype=jnp.float32)

    fwd = jax.jit(generator_forward)
    out = jax.block_until_ready(fwd(prepared, z, a))
    assert out.shape == (B, 1, 128, 128), out.shape
    assert bool(jnp.all(jnp.isfinite(out)))

    ref = jax.block_until_ready(reference_forward(params, z, a))
    max_err = float(jnp.max(jnp.abs(out - ref)))
    assert max_err < 0.12, f"max abs error vs reference: {max_err}"

    print("KERNEL_OK")
</pallas_src>

<mosaic_0001>
module attributes {stable_mosaic.version = 11 : i64} {
  func.func @kernel(%arg0: i32, %arg1: i32, %arg2: memref<2x640xbf16, #tpu.memory_space<vmem>>, %arg3: memref<640x1024xbf16, #tpu.memory_space<vmem>>, %arg4: memref<1x1024xf32, #tpu.memory_space<vmem>>, %arg5: memref<2x1024xbf16, #tpu.memory_space<vmem>>) attributes {dimension_semantics = [#tpu.dimension_semantics<parallel>, #tpu.dimension_semantics<parallel>], iteration_bounds = array<i64: 1, 2>, scalar_prefetch = 0 : i64, scratch_operands = 0 : i64, tpu.core_type = #tpu.core_type<tc>, window_params = [{transform_indices = @transform_0, window_bounds = array<i64: 2, 640>}, {transform_indices = @transform_1, window_bounds = array<i64: 640, 1024>}, {transform_indices = @transform_2, window_bounds = array<i64: 1, 1024>}, {transform_indices = @transform_3, window_bounds = array<i64: 2, 1024>}]} {
    %c0 = arith.constant 0 : index
    %c0_0 = arith.constant 0 : index
    %0 = vector.load %arg2[%c0, %c0_0] : memref<2x640xbf16, #tpu.memory_space<vmem>>, vector<2x640xbf16>
    %c0_1 = arith.constant 0 : index
    %c0_2 = arith.constant 0 : index
    %1 = vector.load %arg3[%c0_1, %c0_2] : memref<640x1024xbf16, #tpu.memory_space<vmem>>, vector<640x1024xbf16>
    %cst = arith.constant dense<0.000000e+00> : vector<2x1024xf32>
    %2 = tpu.matmul %0, %1, %cst {dimension_numbers = #tpu.dot_dimension_numbers<[1], [0], [0], [1], [0, 0, 1, 1], [], []>} : vector<2x640xbf16>, vector<640x1024xbf16>, vector<2x1024xf32> -> vector<2x1024xf32>
    %c0_3 = arith.constant 0 : index
    %c0_4 = arith.constant 0 : index
    %3 = vector.load %arg4[%c0_3, %c0_4] : memref<1x1024xf32, #tpu.memory_space<vmem>>, vector<1x1024xf32>
    %4 = vector.broadcast %3 : vector<1x1024xf32> to vector<2x1024xf32>
    %5 = arith.addf %2, %4 : vector<2x1024xf32>
    %cst_5 = arith.constant 0.000000e+00 : f32
    %6 = vector.broadcast %cst_5 : f32 to vector<2x1024xf32>
    %7 = arith.cmpf ogt, %5, %6 : vector<2x1024xf32>
    %cst_6 = arith.constant 2.000000e-01 : f32
    %8 = vector.broadcast %cst_6 : f32 to vector<2x1024xf32>
    %9 = arith.mulf %8, %5 : vector<2x1024xf32>
    %10 = arith.select %7, %5, %9 : vector<2x1024xi1>, vector<2x1024xf32>
    %11 = arith.truncf %10 : vector<2x1024xf32> to vector<2x1024xbf16>
    %c0_7 = arith.constant 0 : index
    %c0_8 = arith.constant 0 : index
    %12 = vector.load %arg5[%c0_7, %c0_8] : memref<2x1024xbf16, #tpu.memory_space<vmem>>, vector<2x1024xbf16>
    tpu.vector_store %arg5[%c0_7, %c0_8], %11 {strides = array<i32>} : memref<2x1024xbf16, #tpu.memory_space<vmem>>, vector<2x1024xbf16>,
    return
  }
  func.func @transform_0(%arg0: i32, %arg1: i32) -> (i32, i32) {
    %c0_i32 = arith.constant 0 : i32
    %c0_i32_0 = arith.constant 0 : i32
    return %arg0, %c0_i32 : i32, i32
  }
  func.func @transform_1(%arg0: i32, %arg1: i32) -> (i32, i32) {
    %c0_i32 = arith.constant 0 : i32
    %c0_i32_0 = arith.constant 0 : i32
    return %c0_i32, %arg1 : i32, i32
  }
  func.func @transform_2(%arg0: i32, %arg1: i32) -> (i32, i32) {
    %c0_i32 = arith.constant 0 : i32
    %c0_i32_0 = arith.constant 0 : i32
    return %c0_i32, %arg1 : i32, i32
  }
  func.func @transform_3(%arg0: i32, %arg1: i32) -> (i32, i32) {
    %c0_i32 = arith.constant 0 : i32
    return %arg0, %arg1 : i32, i32
  }
}

module attributes {stable_mosaic.version = 11 : i64} {
  func.func @kernel(%arg0: i32, %arg1: i32, %arg2: memref<16x128xbf16, #tpu.memory_space<vmem>>, %arg3: memref<128x1664xbf16, #tpu.memory_space<vmem>>, %arg4: memref<16x1664xbf16, #tpu.memory_space<vmem>>) attributes {dimension_semantics = [#tpu.dimension_semantics<parallel>, #tpu.dimension_semantics<parallel>], iteration_bounds = array<i64: 2, 1>, scalar_prefetch = 0 : i64, scratch_operands = 0 : i64, tpu.core_type = #tpu.core_type<tc>, window_params = [{transform_indices = @transform_0, window_bounds = array<i64: 16, 128>}, {transform_indices = @transform_1, window_bounds = array<i64: 128, 1664>}, {transform_indices = @transform_2, window_bounds = array<i64: 16, 1664>}]} {
    %c0 = arith.constant 0 : index
    %c0_0 = arith.constant 0 : index
    %0 = vector.load %arg2[%c0, %c0_0] : memref<16x128xbf16, #tpu.memory_space<vmem>>, vector<16x128xbf16>
    %c0_1 = arith.constant 0 : index
    %c0_2 = arith.constant 0 : index
    %1 = vector.load %arg3[%c0_1, %c0_2] : memref<128x1664xbf16, #tpu.memory_space<vmem>>, vector<128x1664xbf16>
    %cst = arith.constant dense<0.000000e+00> : vector<16x1664xf32>
    %2 = tpu.matmul %0, %1, %cst {dimension_numbers = #tpu.dot_dimension_numbers<[1], [0], [0], [1], [0, 0, 1, 1], [], []>} : vector<16x128xbf16>, vector<128x1664xbf16>, vector<16x1664xf32> -> vector<16x1664xf32>
    %3 = arith.truncf %2 : vector<16x1664xf32> to vector<16x1664xbf16>
    %c0_3 = arith.constant 0 : index
    %c0_4 = arith.constant 0 : index
    %4 = vector.load %arg4[%c0_3, %c0_4] : memref<16x1664xbf16, #tpu.memory_space<vmem>>, vector<16x1664xbf16>
    tpu.vector_store %arg4[%c0_3, %c0_4], %3 {strides = array<i32>} : memref<16x1664xbf16, #tpu.memory_space<vmem>>, vector<16x1664xbf16>,
    return
  }
  func.func @transform_0(%arg0: i32, %arg1: i32) -> (i32, i32) {
    %c0_i32 = arith.constant 0 : i32
    %c0_i32_0 = arith.constant 0 : i32
    return %arg0, %c0_i32 : i32, i32
  }
  func.func @transform_1(%arg0: i32, %arg1: i32) -> (i32, i32) {
    %c0_i32 = arith.constant 0 : i32
    %c0_i32_0 = arith.constant 0 : i32
    return %c0_i32, %arg1 : i32, i32
  }
  func.func @transform_2(%arg0: i32, %arg1: i32) -> (i32, i32) {
    %c0_i32 = arith.constant 0 : i32
    return %arg0, %arg1 : i32, i32
  }
}

module attributes {stable_mosaic.version = 11 : i64} {
  func.func @kernel(%arg0: i32, %arg1: i32, %arg2: memref<64x64xbf16, #tpu.memory_space<vmem>>, %arg3: memref<64x896xbf16, #tpu.memory_space<vmem>>, %arg4: memref<64x896xbf16, #tpu.memory_space<vmem>>) attributes {dimension_semantics = [#tpu.dimension_semantics<parallel>, #tpu.dimension_semantics<parallel>], iteration_bounds = array<i64: 2, 1>, scalar_prefetch = 0 : i64, scratch_operands = 0 : i64, tpu.core_type = #tpu.core_type<tc>, window_params = [{transform_indices = @transform_0, window_bounds = array<i64: 64, 64>}, {transform_indices = @transform_1, window_bounds = array<i64: 64, 896>}, {transform_indices = @transform_2, window_bounds = array<i64: 64, 896>}]} {
    %c0 = arith.constant 0 : index
    %c0_0 = arith.constant 0 : index
    %0 = vector.load %arg2[%c0, %c0_0] : memref<64x64xbf16, #tpu.memory_space<vmem>>, vector<64x64xbf16>
    %c0_1 = arith.constant 0 : index
    %c0_2 = arith.constant 0 : index
    %1 = vector.load %arg3[%c0_1, %c0_2] : memref<64x896xbf16, #tpu.memory_space<vmem>>, vector<64x896xbf16>
    %cst = arith.constant dense<0.000000e+00> : vector<64x896xf32>
    %2 = tpu.matmul %0, %1, %cst {dimension_numbers = #tpu.dot_dimension_numbers<[1], [0], [0], [1], [0, 0, 1, 1], [], []>} : vector<64x64xbf16>, vector<64x896xbf16>, vector<64x896xf32> -> vector<64x896xf32>
    %3 = arith.truncf %2 : vector<64x896xf32> to vector<64x896xbf16>
    %c0_3 = arith.constant 0 : index
    %c0_4 = arith.constant 0 : index
    %4 = vector.load %arg4[%c0_3, %c0_4] : memref<64x896xbf16, #tpu.memory_space<vmem>>, vector<64x896xbf16>
    tpu.vector_store %arg4[%c0_3, %c0_4], %3 {strides = array<i32>} : memref<64x896xbf16, #tpu.memory_space<vmem>>, vector<64x896xbf16>,
    return
  }
  func.func @transform_0(%arg0: i32, %arg1: i32) -> (i32, i32) {
    %c0_i32 = arith.constant 0 : i32
    %c0_i32_0 = arith.constant 0 : i32
    return %arg0, %c0_i32 : i32, i32
  }
  func.func @transform_1(%arg0: i32, %arg1: i32) -> (i32, i32) {
    %c0_i32 = arith.constant 0 : i32
    %c0_i32_0 = arith.constant 0 : i32
    return %c0_i32, %arg1 : i32, i32
  }
  func.func @transform_2(%arg0: i32, %arg1: i32) -> (i32, i32) {
    %c0_i32 = arith.constant 0 : i32
    return %arg0, %arg1 : i32, i32
  }
}

module attributes {stable_mosaic.version = 11 : i64} {
  func.func @kernel(%arg0: i32, %arg1: i32, %arg2: memref<256x32xbf16, #tpu.memory_space<vmem>>, %arg3: memref<32x512xbf16, #tpu.memory_space<vmem>>, %arg4: memref<256x512xbf16, #tpu.memory_space<vmem>>) attributes {dimension_semantics = [#tpu.dimension_semantics<parallel>, #tpu.dimension_semantics<parallel>], iteration_bounds = array<i64: 2, 1>, scalar_prefetch = 0 : i64, scratch_operands = 0 : i64, tpu.core_type = #tpu.core_type<tc>, window_params = [{transform_indices = @transform_0, window_bounds = array<i64: 256, 32>}, {transform_indices = @transform_1, window_bounds = array<i64: 32, 512>}, {transform_indices = @transform_2, window_bounds = array<i64: 256, 512>}]} {
    %c0 = arith.constant 0 : index
    %c0_0 = arith.constant 0 : index
    %0 = vector.load %arg2[%c0, %c0_0] : memref<256x32xbf16, #tpu.memory_space<vmem>>, vector<256x32xbf16>
    %c0_1 = arith.constant 0 : index
    %c0_2 = arith.constant 0 : index
    %1 = vector.load %arg3[%c0_1, %c0_2] : memref<32x512xbf16, #tpu.memory_space<vmem>>, vector<32x512xbf16>
    %cst = arith.constant dense<0.000000e+00> : vector<256x512xf32>
    %2 = tpu.matmul %0, %1, %cst {dimension_numbers = #tpu.dot_dimension_numbers<[1], [0], [0], [1], [0, 0, 1, 1], [], []>} : vector<256x32xbf16>, vector<32x512xbf16>, vector<256x512xf32> -> vector<256x512xf32>
    %3 = arith.truncf %2 : vector<256x512xf32> to vector<256x512xbf16>
    %c0_3 = arith.constant 0 : index
    %c0_4 = arith.constant 0 : index
    %4 = vector.load %arg4[%c0_3, %c0_4] : memref<256x512xbf16, #tpu.memory_space<vmem>>, vector<256x512xbf16>
    tpu.vector_store %arg4[%c0_3, %c0_4], %3 {strides = array<i32>} : memref<256x512xbf16, #tpu.memory_space<vmem>>, vector<256x512xbf16>,
    return
  }
  func.func @transform_0(%arg0: i32, %arg1: i32) -> (i32, i32) {
    %c0_i32 = arith.constant 0 : i32
    %c0_i32_0 = arith.constant 0 : i32
    return %arg0, %c0_i32 : i32, i32
  }
  func.func @transform_1(%arg0: i32, %arg1: i32) -> (i32, i32) {
    %c0_i32 = arith.constant 0 : i32
    %c0_i32_0 = arith.constant 0 : i32
    return %c0_i32, %arg1 : i32, i32
  }
  func.func @transform_2(%arg0: i32, %arg1: i32) -> (i32, i32) {
    %c0_i32 = arith.constant 0 : i32
    return %arg0, %arg1 : i32, i32
  }
}

module attributes {stable_mosaic.version = 11 : i64} {
  func.func @kernel(%arg0: i32, %arg1: i32, %arg2: memref<512x16xbf16, #tpu.memory_space<vmem>>, %arg3: memref<16x256xbf16, #tpu.memory_space<vmem>>, %arg4: memref<512x256xbf16, #tpu.memory_space<vmem>>) attributes {dimension_semantics = [#tpu.dimension_semantics<parallel>, #tpu.dimension_semantics<parallel>], iteration_bounds = array<i64: 4, 1>, scalar_prefetch = 0 : i64, scratch_operands = 0 : i64, tpu.core_type = #tpu.core_type<tc>, window_params = [{transform_indices = @transform_0, window_bounds = array<i64: 512, 16>}, {transform_indices = @transform_1, window_bounds = array<i64: 16, 256>}, {transform_indices = @transform_2, window_bounds = array<i64: 512, 256>}]} {
    %c0 = arith.constant 0 : index
    %c0_0 = arith.constant 0 : index
    %0 = vector.load %arg2[%c0, %c0_0] : memref<512x16xbf16, #tpu.memory_space<vmem>>, vector<512x16xbf16>
    %c0_1 = arith.constant 0 : index
    %c0_2 = arith.constant 0 : index
    %1 = vector.load %arg3[%c0_1, %c0_2] : memref<16x256xbf16, #tpu.memory_space<vmem>>, vector<16x256xbf16>
    %cst = arith.constant dense<0.000000e+00> : vector<512x256xf32>
    %2 = tpu.matmul %0, %1, %cst {dimension_numbers = #tpu.dot_dimension_numbers<[1], [0], [0], [1], [0, 0, 1, 1], [], []>} : vector<512x16xbf16>, vector<16x256xbf16>, vector<512x256xf32> -> vector<512x256xf32>
    %3 = arith.truncf %2 : vector<512x256xf32> to vector<512x256xbf16>
    %c0_3 = arith.constant 0 : index
    %c0_4 = arith.constant 0 : index
    %4 = vector.load %arg4[%c0_3, %c0_4] : memref<512x256xbf16, #tpu.memory_space<vmem>>, vector<512x256xbf16>
    tpu.vector_store %arg4[%c0_3, %c0_4], %3 {strides = array<i32>} : memref<512x256xbf16, #tpu.memory_space<vmem>>, vector<512x256xbf16>,
    return
  }
  func.func @transform_0(%arg0: i32, %arg1: i32) -> (i32, i32) {
    %c0_i32 = arith.constant 0 : i32
    %c0_i32_0 = arith.constant 0 : i32
    return %arg0, %c0_i32 : i32, i32
  }
  func.func @transform_1(%arg0: i32, %arg1: i32) -> (i32, i32) {
    %c0_i32 = arith.constant 0 : i32
    %c0_i32_0 = arith.constant 0 : i32
    return %c0_i32, %arg1 : i32, i32
  }
  func.func @transform_2(%arg0: i32, %arg1: i32) -> (i32, i32) {
    %c0_i32 = arith.constant 0 : i32
    return %arg0, %arg1 : i32, i32
  }
}

module attributes {stable_mosaic.version = 11 : i64} {
  func.func @kernel(%arg0: i32, %arg1: i32, %arg2: memref<512x8xbf16, #tpu.memory_space<vmem>>, %arg3: memref<8x128xbf16, #tpu.memory_space<vmem>>, %arg4: memref<512x128xbf16, #tpu.memory_space<vmem>>) attributes {dimension_semantics = [#tpu.dimension_semantics<parallel>, #tpu.dimension_semantics<parallel>], iteration_bounds = array<i64: 16, 1>, scalar_prefetch = 0 : i64, scratch_operands = 0 : i64, tpu.core_type = #tpu.core_type<tc>, window_params = [{transform_indices = @transform_0, window_bounds = array<i64: 512, 8>}, {transform_indices = @transform_1, window_bounds = array<i64: 8, 128>}, {transform_indices = @transform_2, window_bounds = array<i64: 512, 128>}]} {
    %c0 = arith.constant 0 : index
    %c0_0 = arith.constant 0 : index
    %0 = vector.load %arg2[%c0, %c0_0] : memref<512x8xbf16, #tpu.memory_space<vmem>>, vector<512x8xbf16>
    %c0_1 = arith.constant 0 : index
    %c0_2 = arith.constant 0 : index
    %1 = vector.load %arg3[%c0_1, %c0_2] : memref<8x128xbf16, #tpu.memory_space<vmem>>, vector<8x128xbf16>
    %cst = arith.constant dense<0.000000e+00> : vector<512x128xf32>
    %2 = tpu.matmul %0, %1, %cst {dimension_numbers = #tpu.dot_dimension_numbers<[1], [0], [0], [1], [0, 0, 1, 1], [], []>} : vector<512x8xbf16>, vector<8x128xbf16>, vector<512x128xf32> -> vector<512x128xf32>
    %3 = arith.truncf %2 : vector<512x128xf32> to vector<512x128xbf16>
    %c0_3 = arith.constant 0 : index
    %c0_4 = arith.constant 0 : index
    %4 = vector.load %arg4[%c0_3, %c0_4] : memref<512x128xbf16, #tpu.memory_space<vmem>>, vector<512x128xbf16>
    tpu.vector_store %arg4[%c0_3, %c0_4], %3 {strides = array<i32>} : memref<512x128xbf16, #tpu.memory_space<vmem>>, vector<512x128xbf16>,
    return
  }
  func.func @transform_0(%arg0: i32, %arg1: i32) -> (i32, i32) {
    %c0_i32 = arith.constant 0 : i32
    %c0_i32_0 = arith.constant 0 : i32
    return %arg0, %c0_i32 : i32, i32
  }
  func.func @transform_1(%arg0: i32, %arg1: i32) -> (i32, i32) {
    %c0_i32 = arith.constant 0 : i32
    %c0_i32_0 = arith.constant 0 : i32
    return %c0_i32, %arg1 : i32, i32
  }
  func.func @transform_2(%arg0: i32, %arg1: i32) -> (i32, i32) {
    %c0_i32 = arith.constant 0 : i32
    return %arg0, %arg1 : i32, i32
  }
}

</mosaic_0001>

<bundles_post_ra>
// kernel: generator_forward.7
= control target key start
LH: loop header
LB: loop body
LE: loop exit
PB: predicated region body
PF: predicated region fallthrough
CT: control target
= control target key end

     0   :  { %7 = vsyncpa [#allocation3], 0  ;;  %s1806_s9 = smov 0   ;;  %s1808_s10 = smov 0   ;;  %s1891_s0 = inlined_call_operand.vmem [shape: bf16[32,128], index: 0, kind: input, shape index: {}]   ;;  %s1892_s1 = inlined_call_operand.hbm [shape: bf16[128,1664], index: 1, kind: input, shape index: {}]   ;;  %s1893_s2 = inlined_call_operand.vmem [shape: bf16[32,1664], index: 2, kind: output, shape index: {}]  }
   0x1   :  { %s1810_s11 = smov 0  }
   0x2 LB: > { %s1154_s12 = sadd.s32 4294967295, %s1786_s11   ;;  %s25_s13 = sadd.s32 1, %s1782_s10  ;;  %s1786_s11 = sphi %s1810_s11, %s13_s11   ;;  %s1782_s10 = sphi %s1808_s10, %s1896_s10   ;;  %s1778_s9 = sphi %s1806_s9, %s1895_s9  }
   0x3   : > { %p27_p0 = scmp.ge.s32.totalorder %s25_s13, 2  ;;  %p1156_p1 = scmp.ge.s32.totalorder %s1786_s11, 1 }
   0x4   : > { %p110_p2 = scmp.lt.s32.totalorder %s1786_s11, 3  ;;  %p1701_p4 = scmp.eq.s32.totalorder %s1154_s12, 0 }
   0x5   : > { %s1898_s13 = smov (%p27_p0, %s25_s13), 0  ;;  %s124_s16 = sshll.u32 %s1892_s1, 4  ;;  %s125_s16 = int_to_ptr.hbm [resolvable:$true] %s124_s16 }
   0x6   : > { %p111_p3 = pnand %p1156_p1, %p110_p2  ;;  %s1788_s17 = smov [#allocation2]  }
   0x7   : > { %s126_s18 = sshll.u32 %s1788_s17, 4  ;;  %s1789_s19 = smov 832   ;;  %s127_s18 = int_to_ptr.vmem [resolvable:$true] %s126_s18 }
   0x8   : > { %p1697_p5 = pneg %p111_p3  ;;  %s1790_s20 = smov 52  }
   0x9   : > { %151 = sbr.rel (%p111_p3) target bundleno = 282 (0x11a), region = 28 }
   0xa   : > { %p1698_p6 = pnand %p1701_p4, %p1697_p5 }
   0xc   : > { %1700 = dma.hbm_to_vmem [thread:$0]  (!%p1698_p6), %s125_s16, 13312, %s127_s18, [#allocation3], %s1789_s19, %s1789_s19, %s1790_s20  }
   0xe   : > { %1773 = dma.done.wait (%p1701_p4), [#allocation3], 13312  }
   0xf   : > { %1775 = vsyncadd (%p1701_p4), [#allocation3], 4294953984  ;;  %v1535_v0 = vld [vmem:[#allocation2 + $0x2d8] sm:$0xf]  ;;  %v1685_v1 = vld [vmem:[#allocation2 + $0x308] sm:$0xf0] }
  0x10   : > { %v1483_v2 = vld [vmem:[#allocation2 + $0x270] sm:$0xf]  ;;  %v1536_v3 = vor.u32 %v1685_v1, %v1535_v0  ;;  %v1672_v4 = vld [vmem:[#allocation2 + $0x2a0] sm:$0xf0]  ;;  %v1679_v5 = vld [vmem:[#allocation2 + $0x2dc] sm:$0xf] }
  0x11   : > { %v1537_v6 = vld [vmem:[#allocation2 + $0x30c] sm:$0xf0]  ;;  %v1666_v8 = vld [vmem:[#allocation2 + $0x274] sm:$0xf]  ;;  %v1484_v9 = vor.u32 %v1672_v4, %v1483_v2  ;;  %v1431_v10 = vld [vmem:[#allocation2 + $0x208] sm:$0xf] }
  0x12   : > { %v1540_v7 = vor.u32 %v1679_v5, %v1537_v6  ;;  %846 = vmatpush.bf16.msra.mxu0 %v1536_v3  ;;  %v1659_v11 = vld [vmem:[#allocation2 + $0x238] sm:$0xf0]  ;;  %v1485_v12 = vld [vmem:[#allocation2 + $0x2a4] sm:$0xf0]  ;;  %v1653_v14 = vld [vmem:[#allocation2 + $0x20c] sm:$0xf] }
  0x13   : > { %v1488_v13 = vor.u32 %v1666_v8, %v1485_v12  ;;  %v1433_v15 = vld [vmem:[#allocation2 + $0x23c] sm:$0xf0]  ;;  %v1686_v17 = vld [vmem:[#allocation2 + $0x310] sm:$0xf0]  ;;  %v1680_v18 = vld [vmem:[#allocation2 + $0x2e4] sm:$0xf]  ;;  %v1432_v22 = vor.u32 %v1659_v11, %v1431_v10 }
  0x14   : > { %860 = vmatpush.bf16.msra.mxu1 %v1540_v7  ;;  %v1543_v16 = vld [vmem:[#allocation2 + $0x2e0] sm:$0xf]  ;;  %v1545_v19 = vld [vmem:[#allocation2 + $0x314] sm:$0xf0]  ;;  %v1673_v25 = vld [vmem:[#allocation2 + $0x2a8] sm:$0xf0]  ;;  %v1436_v27 = vor.u32 %v1653_v14, %v1433_v15 }
  0x15   : > { %v1544_v20 = vor.u32 %v1686_v17, %v1543_v16  ;;  %v1548_v21 = vor.u32 %v1680_v18, %v1545_v19  ;;  %v1379_v23 = vld [vmem:[#allocation2 + $0x1a0] sm:$0xf]  ;;  %v1491_v24 = vld [vmem:[#allocation2 + $0x278] sm:$0xf]  ;;  %v1646_v26 = vld [vmem:[#allocation2 + $0x1d0] sm:$0xf0] }
  0x16   : > { %847 = vmatpush.bf16.msra.mxu0 %v1484_v9  ;;  %v1492_v28 = vor.u32 %v1673_v25, %v1491_v24  ;;  %v1667_v29 = vld [vmem:[#allocation2 + $0x27c] sm:$0xf]  ;;  %v1493_v30 = vld [vmem:[#allocation2 + $0x2ac] sm:$0xf0]  ;;  %v1640_v31 = vld [vmem:[#allocation2 + $0x1a4] sm:$0xf]  ;;  %v1380_v37 = vor.u32 %v1646_v26, %v1379_v23 }
  0x17   : > { %874 = vmatpush.bf16.msra.mxu2 %v1544_v20  ;;  %888 = vmatpush.bf16.msra.mxu3 %v1548_v21  ;;  %v1381_v32 = vld [vmem:[#allocation2 + $0x1d4] sm:$0xf0]  ;;  %v1496_v33 = vor.u32 %v1667_v29, %v1493_v30  ;;  %v1439_v34 = vld [vmem:[#allocation2 + $0x210] sm:$0xf]  ;;  %v1660_v35 = vld [vmem:[#allocation2 + $0x240] sm:$0xf0] }
  0x18   : > { %861 = vmatpush.bf16.msra.mxu1 %v1488_v13  ;;  %v1654_v36 = vld [vmem:[#allocation2 + $0x214] sm:$0xf]  ;;  %v1441_v38 = vld [vmem:[#allocation2 + $0x244] sm:$0xf0]  ;;  %s1161_s21 = sshll.u32 %s1778_s9, 1  ;;  %v1384_v41 = vor.u32 %v1640_v31, %v1381_v32  ;;  %v1440_v43 = vor.u32 %v1660_v35, %v1439_v34 }
  0x19   : > { %v1327_v39 = vld [vmem:[#allocation2 + $0x138] sm:$0xf]  ;;  %v1633_v40 = vld [vmem:[#allocation2 + $0x168] sm:$0xf0]  ;;  %v1627_v42 = vld [vmem:[#allocation2 + $0x13c] sm:$0xf]  ;;  %v1444_v45 = vor.u32 %v1654_v36, %v1441_v38 }
  0x1a   : > { %848 = vmatpush.bf16.msra.mxu0 %v1432_v22  ;;  %v1329_v44 = vld [vmem:[#allocation2 + $0x16c] sm:$0xf0]  ;;  %v1387_v46 = vld [vmem:[#allocation2 + $0x1a8] sm:$0xf]  ;;  %v1647_v47 = vld [vmem:[#allocation2 + $0x1d8] sm:$0xf0]  ;;  %v1328_v50 = vor.u32 %v1633_v40, %v1327_v39 }
  0x1b   : > { %875 = vmatpush.bf16.msra.mxu2 %v1492_v28  ;;  %889 = vmatpush.bf16.msra.mxu3 %v1496_v33  ;;  %v1641_v48 = vld [vmem:[#allocation2 + $0x1ac] sm:$0xf]  ;;  %v1389_v49 = vld [vmem:[#allocation2 + $0x1dc] sm:$0xf0]  ;;  %p1833_p7 = scmp.lt.s32.totalorder %s1161_s21, 3  ;;  %v1332_v53 = vor.u32 %v1627_v42, %v1329_v44  ;;  %v1388_v55 = vor.u32 %v1647_v47, %v1387_v46 }
  0x1c   : > { %862 = vmatpush.bf16.msra.mxu1 %v1436_v27  ;;  %v1275_v51 = vld [vmem:[#allocation2 + $0xd0] sm:$0xf]  ;;  %v1620_v52 = vld [vmem:[#allocation2 + $0x100] sm:$0xf0]  ;;  %v1614_v54 = vld [vmem:[#allocation2 + $0xd4] sm:$0xf]  ;;  %v1392_v57 = vor.u32 %v1641_v48, %v1389_v49 }
  0x1d   : > { %v1277_v56 = vld [vmem:[#allocation2 + $0x104] sm:$0xf0]  ;;  %v1335_v58 = vld [vmem:[#allocation2 + $0x140] sm:$0xf]  ;;  %v1634_v59 = vld [vmem:[#allocation2 + $0x170] sm:$0xf0]  ;;  %v1276_v62 = vor.u32 %v1620_v52, %v1275_v51 }
  0x1e   : > { %849 = vmatpush.bf16.msra.mxu0 %v1380_v37  ;;  %v1628_v60 = vld [vmem:[#allocation2 + $0x144] sm:$0xf]  ;;  %v1337_v61 = vld [vmem:[#allocation2 + $0x174] sm:$0xf0]  ;;  %s1900_s21 = smov (!%p1833_p7, %s1161_s21), 3  ;;  %v1280_v1 = vor.u32 %v1614_v54, %v1277_v56  ;;  %v1336_v3 = vor.u32 %v1634_v59, %v1335_v58 }
  0x1f   : > { %876 = vmatpush.bf16.msra.mxu2 %v1440_v43  ;;  %890 = vmatpush.bf16.msra.mxu3 %v1444_v45  ;;  %v1223_v63 = vld [vmem:[#allocation2 + $0x68] sm:$0xf]  ;;  %v1607_v0 = vld [vmem:[#allocation2 + $0x98] sm:$0xf0]  ;;  %v1601_v2 = vld [vmem:[#allocation2 + $0x6c] sm:$0xf]  ;;  %v1340_v5 = vor.u32 %v1628_v60, %v1337_v61 }
  0x20   : > { %863 = vmatpush.bf16.msra.mxu1 %v1384_v41  ;;  %v1225_v4 = vld [vmem:[#allocation2 + $0x9c] sm:$0xf0]  ;;  %v1283_v6 = vld [vmem:[#allocation2 + $0xd8] sm:$0xf]  ;;  %v1621_v7 = vld [vmem:[#allocation2 + $0x108] sm:$0xf0]  ;;  %v1224_v10 = vor.u32 %v1607_v0, %v1223_v63 }
  0x21   : > { %v1615_v8 = vld [vmem:[#allocation2 + $0xdc] sm:$0xf]  ;;  %v1285_v9 = vld [vmem:[#allocation2 + $0x10c] sm:$0xf0]  ;;  %v1171_v11 = vld [vmem:[#allocation2] sm:$0xf]  ;;  %v1228_v13 = vor.u32 %v1601_v2, %v1225_v4  ;;  %v1284_v16 = vor.u32 %v1621_v7, %v1283_v6 }
  0x22   : > { %850 = vmatpush.bf16.msra.mxu0 %v1328_v50  ;;  %s1162_s23 = sshll.u32 %s1900_s21, 2  ;;  %v1594_v12 = vld [vmem:[#allocation2 + $0x30] sm:$0xf0]  ;;  %v1551_v14 = vld [vmem:[#allocation2 + $0x2e8] sm:$0xf]  ;;  %v1288_v20 = vor.u32 %v1615_v8, %v1285_v9  ;;  %s1692_s27 = smul.u32 52, %s1900_s21 }
  0x23   : > { %877 = vmatpush.bf16.msra.mxu2 %v1388_v55  ;;  %891 = vmatpush.bf16.msra.mxu3 %v1392_v57  ;;  %v1687_v15 = vld [vmem:[#allocation2 + $0x318] sm:$0xf0]  ;;  %v1588_v17 = vld [vmem:[#allocation2 + $0x4] sm:$0xf]  ;;  %v1173_v18 = vld [vmem:[#allocation2 + $0x34] sm:$0xf0]  ;;  %v1172_v24 = vor.u32 %v1594_v12, %v1171_v11  ;;  %s183_s26 = scalar_lea.vmem %s1891_s0, %s1162_s23 }
  0x24   : > { %864 = vmatpush.bf16.msra.mxu1 %v1332_v53  ;;  %v1681_v19 = vld [vmem:[#allocation2 + $0x2ec] sm:$0xf]  ;;  %v1553_v21 = vld [vmem:[#allocation2 + $0x31c] sm:$0xf0]  ;;  %v1231_v22 = vld [vmem:[#allocation2 + $0x70] sm:$0xf]  ;;  %v1552_v27 = vor.u32 %v1687_v15, %v1551_v14  ;;  %v1176_v28 = vor.u32 %v1588_v17, %v1173_v18  ;;  %s1866_s30 = scalar_lea.vmem %s1893_s2, %s1692_s27 }
  0x25   : > { %v1608_v23 = vld [vmem:[#allocation2 + $0xa0] sm:$0xf0]  ;;  %v1602_v25 = vld [vmem:[#allocation2 + $0x74] sm:$0xf]  ;;  %v1233_v26 = vld [vmem:[#allocation2 + $0xa4] sm:$0xf0]  ;;  %v1556_v31 = vor.u32 %v1681_v19, %v1553_v21 }
  0x26   : > { %851 = vmatpush.bf16.msra.mxu0 %v1276_v62  ;;  %v1499_v29 = vld [vmem:[#allocation2 + $0x280] sm:$0xf]  ;;  %v1674_v30 = vld [vmem:[#allocation2 + $0x2b0] sm:$0xf0]  ;;  %v1668_v32 = vld [vmem:[#allocation2 + $0x284] sm:$0xf]  ;;  %v1232_v34 = vor.u32 %v1608_v23, %v1231_v22  ;;  %v1236_v36 = vor.u32 %v1602_v25, %v1233_v26 }
  0x27   : > { %878 = vmatpush.bf16.msra.mxu2 %v1336_v3  ;;  %892 = vmatpush.bf16.msra.mxu3 %v1340_v5  ;;  %v1501_v33 = vld [vmem:[#allocation2 + $0x2b4] sm:$0xf0]  ;;  %v1179_v35 = vld [vmem:[#allocation2 + $0x8] sm:$0xf]  ;;  %v1595_v37 = vld [vmem:[#allocation2 + $0x38] sm:$0xf0]  ;;  %v1500_v43 = vor.u32 %v1674_v30, %v1499_v29 }
  0x28   : > { %865 = vmatpush.bf16.msra.mxu1 %v1280_v1  ;;  %v1589_v38 = vld [vmem:[#allocation2 + $0xc] sm:$0xf]  ;;  %v1847_v39 = vld [vmem:[%s183_s26] sm:$0xff]  ;;  %v1559_v41 = vld [vmem:[#allocation2 + $0x2f0] sm:$0xf]  ;;  %v1504_v48 = vor.u32 %v1668_v32, %v1501_v33  ;;  %v1180_v49 = vor.u32 %v1595_v37, %v1179_v35 }
  0x29   : > { %v1181_v40 = vld [vmem:[#allocation2 + $0x3c] sm:$0xf0]  ;;  %v1688_v42 = vld [vmem:[#allocation2 + $0x320] sm:$0xf0]  ;;  %v1682_v44 = vld [vmem:[#allocation2 + $0x2f4] sm:$0xf] }
  0x2a   : > { %852 = vmatpush.bf16.msra.mxu0 %v1224_v10  ;;  %v1561_v45 = vld [vmem:[#allocation2 + $0x324] sm:$0xf0]  ;;  %v1447_v46 = vld [vmem:[#allocation2 + $0x218] sm:$0xf]  ;;  %v1661_v47 = vld [vmem:[#allocation2 + $0x248] sm:$0xf0]  ;;  %v1184_v52 = vor.u32 %v1589_v38, %v1181_v40  ;;  %v1560_v53 = vor.u32 %v1688_v42, %v1559_v41 }
  0x2b   : > { %879 = vmatpush.bf16.msra.mxu2 %v1284_v16  ;;  %893 = vmatpush.bf16.msra.mxu3 %v1288_v20  ;;  %v1655_v50 = vld [vmem:[#allocation2 + $0x21c] sm:$0xf]  ;;  %v1449_v51 = vld [vmem:[#allocation2 + $0x24c] sm:$0xf0]  ;;  %v1564_v54 = vor.u32 %v1682_v44, %v1561_v45  ;;  %v1507_v55 = vld [vmem:[#allocation2 + $0x288] sm:$0xf]  ;;  %v1448_v57 = vor.u32 %v1661_v47, %v1447_v46 }
  0x2c   : > { %866 = vmatpush.bf16.msra.mxu1 %v1228_v13  ;;  %v1675_v56 = vld [vmem:[#allocation2 + $0x2b8] sm:$0xf0]  ;;  %v1669_v58 = vld [vmem:[#allocation2 + $0x28c] sm:$0xf]  ;;  %v1509_v59 = vld [vmem:[#allocation2 + $0x2bc] sm:$0xf0]  ;;  %v1452_v62 = vor.u32 %v1655_v50, %v1449_v51 }
  0x2d   : > { %v1395_v60 = vld [vmem:[#allocation2 + $0x1b0] sm:$0xf]  ;;  %v1648_v61 = vld [vmem:[#allocation2 + $0x1e0] sm:$0xf0]  ;;  %v1642_v63 = vld [vmem:[#allocation2 + $0x1b4] sm:$0xf]  ;;  %v1508_v1 = vor.u32 %v1675_v56, %v1507_v55  ;;  %v1512_v2 = vor.u32 %v1669_v58, %v1509_v59 }
  0x2e   : > { %853 = vmatpush.bf16.msra.mxu0 %v1172_v24  ;;  %v1397_v0 = vld [vmem:[#allocation2 + $0x1e4] sm:$0xf0]  ;;  %v1455_v3 = vld [vmem:[#allocation2 + $0x220] sm:$0xf]  ;;  %v1662_v4 = vld [vmem:[#allocation2 + $0x250] sm:$0xf0]  ;;  %v1396_v5 = vor.u32 %v1648_v61, %v1395_v60 }
  0x2f   : > { %880 = vmatpush.bf16.msra.mxu2 %v1232_v34  ;;  %894 = vmatpush.bf16.msra.mxu3 %v1236_v36  ;;  %v1656_v6 = vld [vmem:[#allocation2 + $0x224] sm:$0xf]  ;;  %v1457_v7 = vld [vmem:[#allocation2 + $0x254] sm:$0xf0]  ;;  %v1343_v8 = vld [vmem:[#allocation2 + $0x148] sm:$0xf]  ;;  %v1400_v10 = vor.u32 %v1642_v63, %v1397_v0  ;;  %v1456_v13 = vor.u32 %v1662_v4, %v1455_v3 }
  0x30   : > { %867 = vmatpush.bf16.msra.mxu1 %v1176_v28  ;;  %v1635_v9 = vld [vmem:[#allocation2 + $0x178] sm:$0xf0]  ;;  %v1629_v11 = vld [vmem:[#allocation2 + $0x14c] sm:$0xf]  ;;  %v1345_v12 = vld [vmem:[#allocation2 + $0x17c] sm:$0xf0]  ;;  %v1460_v14 = vor.u32 %v1656_v6, %v1457_v7 }
  0x31   : > { %854 = vmatmul.bf16.vlgmr.msra.gmra.mxu0 %v1847_v39  ;;  %v1403_v15 = vld [vmem:[#allocation2 + $0x1b8] sm:$0xf]  ;;  %v1649_v16 = vld [vmem:[#allocation2 + $0x1e8] sm:$0xf0]  ;;  %v1344_v17 = vor.u32 %v1635_v9, %v1343_v8  ;;  %v1643_v18 = vld [vmem:[#allocation2 + $0x1bc] sm:$0xf]  ;;  %v1348_v22 = vor.u32 %v1629_v11, %v1345_v12 }
  0x32   : > { %902 = vmatpush.bf16.msrb.mxu0 %v1552_v27  ;;  %v1405_v19 = vld [vmem:[#allocation2 + $0x1ec] sm:$0xf0]  ;;  %v1291_v20 = vld [vmem:[#allocation2 + $0xe0] sm:$0xf]  ;;  %v1622_v21 = vld [vmem:[#allocation2 + $0x110] sm:$0xf0]  ;;  %v1404_v25 = vor.u32 %v1649_v16, %v1403_v15 }
  0x33   : > { %868 = vmatmul.bf16.vlgmr.msra.gmra.mxu1 %v1847_v39  ;;  %881 = vmatpush.bf16.msra.mxu2 %v1180_v49  ;;  %v1616_v23 = vld [vmem:[#allocation2 + $0xe4] sm:$0xf]  ;;  %v1293_v24 = vld [vmem:[#allocation2 + $0x114] sm:$0xf0]  ;;  %v1408_v26 = vor.u32 %v1643_v18, %v1405_v19  ;;  %v1351_v27 = vld [vmem:[#allocation2 + $0x150] sm:$0xf]  ;;  %v1292_v29 = vor.u32 %v1622_v21, %v1291_v20 }
  0x34   : > { %916 = vmatpush.bf16.msrb.mxu1 %v1556_v31  ;;  %895 = vmatpush.bf16.msra.mxu3 %v1184_v52  ;;  %v1636_v28 = vld [vmem:[#allocation2 + $0x180] sm:$0xf0]  ;;  %v1630_v30 = vld [vmem:[#allocation2 + $0x154] sm:$0xf]  ;;  %v1353_v31 = vld [vmem:[#allocation2 + $0x184] sm:$0xf0]  ;;  %v1296_v34 = vor.u32 %v1616_v23, %v1293_v24 }
  0x35   : > { %v1239_v32 = vld [vmem:[#allocation2 + $0x78] sm:$0xf]  ;;  %v1609_v33 = vld [vmem:[#allocation2 + $0xa8] sm:$0xf0]  ;;  %v1603_v35 = vld [vmem:[#allocation2 + $0x7c] sm:$0xf]  ;;  %v1352_v37 = vor.u32 %v1636_v28, %v1351_v27  ;;  %v1356_v38 = vor.u32 %v1630_v30, %v1353_v31 }
  0x36   : > { %903 = vmatpush.bf16.msrb.mxu0 %v1500_v43  ;;  %882 = vmatmul.bf16.vlgmr.msra.gmra.mxu2 %v1847_v39  ;;  %v1241_v36 = vld [vmem:[#allocation2 + $0xac] sm:$0xf0]  ;;  %v1299_v40 = vld [vmem:[#allocation2 + $0xe8] sm:$0xf]  ;;  %v1623_v41 = vld [vmem:[#allocation2 + $0x118] sm:$0xf0]  ;;  %v1240_v42 = vor.u32 %v1609_v33, %v1239_v32 }
  0x37   : > { %930 = vmatpush.bf16.msrb.mxu2 %v1560_v53  ;;  %896 = vmatmul.bf16.vlgmr.msra.gmra.mxu3 %v1847_v39  ;;  %v1187_v43 = vld [vmem:[#allocation2 + $0x10] sm:$0xf]  ;;  %v1617_v44 = vld [vmem:[#allocation2 + $0xec] sm:$0xf]  ;;  %v1301_v45 = vld [vmem:[#allocation2 + $0x11c] sm:$0xf0]  ;;  %v1244_v47 = vor.u32 %v1603_v35, %v1241_v36  ;;  %v1300_v53 = vor.u32 %v1623_v41, %v1299_v40 }
  0x38   : > { %917 = vmatpush.bf16.msrb.mxu1 %v1504_v48  ;;  %944 = vmatpush.bf16.msrb.mxu3 %v1564_v54  ;;  %v1596_v46 = vld [vmem:[#allocation2 + $0x40] sm:$0xf0]  ;;  %v1567_v48 = vld [vmem:[#allocation2 + $0x2f8] sm:$0xf]  ;;  %v1689_v49 = vld [vmem:[#allocation2 + $0x328] sm:$0xf0]  ;;  %v1304_v55 = vor.u32 %v1617_v44, %v1301_v45 }
  0x39   : > { %v1590_v50 = vld [vmem:[#allocation2 + $0x14] sm:$0xf]  ;;  %v1189_v51 = vld [vmem:[#allocation2 + $0x44] sm:$0xf0]  ;;  %v1683_v52 = vld [vmem:[#allocation2 + $0x2fc] sm:$0xf]  ;;  %v1188_v58 = vor.u32 %v1596_v46, %v1187_v43  ;;  %v1568_v61 = vor.u32 %v1689_v49, %v1567_v48 }
  0x3a   : > { %904 = vmatpush.bf16.msrb.mxu0 %v1448_v57  ;;  %v1569_v54 = vld [vmem:[#allocation2 + $0x32c] sm:$0xf0]  ;;  %v1247_v56 = vld [vmem:[#allocation2 + $0x80] sm:$0xf]  ;;  %v1610_v57 = vld [vmem:[#allocation2 + $0xb0] sm:$0xf0] }
  0x3b   : > { %931 = vmatpush.bf16.msrb.mxu2 %v1508_v1  ;;  %v1604_v59 = vld [vmem:[#allocation2 + $0x84] sm:$0xf]  ;;  %v1249_v60 = vld [vmem:[#allocation2 + $0xb4] sm:$0xf0]  ;;  %v1515_v63 = vld [vmem:[#allocation2 + $0x290] sm:$0xf]  ;;  %v1572_v1 = vor.u32 %v1683_v52, %v1569_v54  ;;  %v1248_v4 = vor.u32 %v1610_v57, %v1247_v56 }
  0x3c   : > { %918 = vmatpush.bf16.msrb.mxu1 %v1452_v62  ;;  %945 = vmatpush.bf16.msrb.mxu3 %v1512_v2  ;;  %v1192_v62 = vor.u32 %v1590_v50, %v1189_v51  ;;  %v1676_v0 = vld [vmem:[#allocation2 + $0x2c0] sm:$0xf0]  ;;  %v1670_v2 = vld [vmem:[#allocation2 + $0x294] sm:$0xf]  ;;  %v1517_v3 = vld [vmem:[#allocation2 + $0x2c4] sm:$0xf0] }
  0x3d   : > { %v1195_v6 = vld [vmem:[#allocation2 + $0x18] sm:$0xf]  ;;  %v1597_v7 = vld [vmem:[#allocation2 + $0x48] sm:$0xf0]  ;;  %v1591_v8 = vld [vmem:[#allocation2 + $0x1c] sm:$0xf]  ;;  %v1516_v12 = vor.u32 %v1676_v0, %v1515_v63 }
  0x3e   : > { %905 = vmatpush.bf16.msrb.mxu0 %v1396_v5  ;;  %v1252_v5 = vor.u32 %v1604_v59, %v1249_v60  ;;  %v1197_v9 = vld [vmem:[#allocation2 + $0x4c] sm:$0xf0]  ;;  %v1690_v11 = vld [vmem:[#allocation2 + $0x330] sm:$0xf0]  ;;  %v1463_v15 = vld [vmem:[#allocation2 + $0x228] sm:$0xf]  ;;  %v1196_v18 = vor.u32 %v1597_v7, %v1195_v6 }
  0x3f   : > { %932 = vmatpush.bf16.msrb.mxu2 %v1456_v13  ;;  %v1684_v13 = vld [vmem:[#allocation2 + $0x304] sm:$0xf]  ;;  %v1663_v16 = vld [vmem:[#allocation2 + $0x258] sm:$0xf0]  ;;  %v1657_v19 = vld [vmem:[#allocation2 + $0x22c] sm:$0xf]  ;;  %v1200_v21 = vor.u32 %v1591_v8, %v1197_v9 }
  0x40   : > { %919 = vmatpush.bf16.msrb.mxu1 %v1400_v10  ;;  %946 = vmatpush.bf16.msrb.mxu3 %v1460_v14  ;;  %v1575_v10 = vld [vmem:[#allocation2 + $0x300] sm:$0xf]  ;;  %v1577_v14 = vld [vmem:[#allocation2 + $0x334] sm:$0xf0]  ;;  %v1671_v27 = vld [vmem:[#allocation2 + $0x29c] sm:$0xf] }
  0x41   : > { %v1465_v20 = vld [vmem:[#allocation2 + $0x25c] sm:$0xf0]  ;;  %v1580_v23 = vor.u32 %v1684_v13, %v1577_v14  ;;  %v1523_v24 = vld [vmem:[#allocation2 + $0x298] sm:$0xf]  ;;  %v1525_v28 = vld [vmem:[#allocation2 + $0x2cc] sm:$0xf0] }
  0x42   : > { %906 = vmatpush.bf16.msrb.mxu0 %v1344_v17  ;;  %v1520_v17 = vor.u32 %v1670_v2, %v1517_v3  ;;  %v1650_v30 = vld [vmem:[#allocation2 + $0x1f0] sm:$0xf0]  ;;  %v1468_v31 = vor.u32 %v1657_v19, %v1465_v20  ;;  %v1644_v32 = vld [vmem:[#allocation2 + $0x1c4] sm:$0xf]  ;;  %v1413_v33 = vld [vmem:[#allocation2 + $0x1f4] sm:$0xf0]  ;;  %v1528_v35 = vor.u32 %v1671_v27, %v1525_v28 }
  0x43   : > { %933 = vmatpush.bf16.msrb.mxu2 %v1404_v25  ;;  %v1677_v25 = vld [vmem:[#allocation2 + $0x2c8] sm:$0xf0]  ;;  %v1471_v36 = vld [vmem:[#allocation2 + $0x230] sm:$0xf]  ;;  %v1658_v40 = vld [vmem:[#allocation2 + $0x234] sm:$0xf]  ;;  %v1416_v44 = vor.u32 %v1644_v32, %v1413_v33 }
  0x44   : > { %920 = vmatpush.bf16.msrb.mxu1 %v1348_v22  ;;  %947 = vmatpush.bf16.msrb.mxu3 %v1408_v26  ;;  %v1576_v22 = vor.u32 %v1690_v11, %v1575_v10  ;;  %v1464_v26 = vor.u32 %v1663_v16, %v1463_v15  ;;  %v1473_v41 = vld [vmem:[#allocation2 + $0x264] sm:$0xf0]  ;;  %v1637_v43 = vld [vmem:[#allocation2 + $0x188] sm:$0xf0]  ;;  %v1631_v45 = vld [vmem:[#allocation2 + $0x15c] sm:$0xf] }
  0x45   : > { %v1361_v46 = vld [vmem:[#allocation2 + $0x18c] sm:$0xf0]  ;;  %v1476_v48 = vor.u32 %v1658_v40, %v1473_v41  ;;  %v1419_v49 = vld [vmem:[#allocation2 + $0x1c8] sm:$0xf]  ;;  %v1651_v50 = vld [vmem:[#allocation2 + $0x1f8] sm:$0xf0] }
  0x46   : > { %907 = vmatpush.bf16.msrb.mxu0 %v1292_v29  ;;  %v1411_v29 = vld [vmem:[#allocation2 + $0x1c0] sm:$0xf]  ;;  %v1645_v52 = vld [vmem:[#allocation2 + $0x1cc] sm:$0xf]  ;;  %v1307_v54 = vld [vmem:[#allocation2 + $0xf0] sm:$0xf]  ;;  %v1364_v56 = vor.u32 %v1631_v45, %v1361_v46  ;;  %v1420_v59 = vor.u32 %v1651_v50, %v1419_v49 }
  0x47   : > { %934 = vmatpush.bf16.msrb.mxu2 %v1352_v37  ;;  %v1664_v37 = vld [vmem:[#allocation2 + $0x260] sm:$0xf0]  ;;  %v1618_v57 = vld [vmem:[#allocation2 + $0xf4] sm:$0xf]  ;;  %v1255_v2 = vld [vmem:[#allocation2 + $0x88] sm:$0xf] }
  0x48   : > { %921 = vmatpush.bf16.msrb.mxu1 %v1296_v34  ;;  %948 = vmatpush.bf16.msrb.mxu3 %v1356_v38  ;;  %v1524_v34 = vor.u32 %v1677_v25, %v1523_v24  ;;  %v1412_v38 = vor.u32 %v1650_v30, %v1411_v29  ;;  %v1632_v0 = vld [vmem:[#allocation2 + $0x164] sm:$0xf]  ;;  %v1611_v3 = vld [vmem:[#allocation2 + $0xb8] sm:$0xf0]  ;;  %v1257_v6 = vld [vmem:[#allocation2 + $0xbc] sm:$0xf0] }
  0x49   : > { %v1315_v9 = vld [vmem:[#allocation2 + $0xf8] sm:$0xf]  ;;  %v1625_v10 = vld [vmem:[#allocation2 + $0x128] sm:$0xf0]  ;;  %v1256_v11 = vor.u32 %v1611_v3, %v1255_v2  ;;  %v1317_v13 = vld [vmem:[#allocation2 + $0x12c] sm:$0xf0] }
  0x4a   : > { %908 = vmatpush.bf16.msrb.mxu0 %v1240_v42  ;;  %v1359_v42 = vld [vmem:[#allocation2 + $0x158] sm:$0xf]  ;;  %v1203_v14 = vld [vmem:[#allocation2 + $0x20] sm:$0xf]  ;;  %v1598_v15 = vld [vmem:[#allocation2 + $0x50] sm:$0xf0] }
  0x4b   : > { %935 = vmatpush.bf16.msrb.mxu2 %v1300_v53  ;;  %v1360_v51 = vor.u32 %v1637_v43, %v1359_v42  ;;  %v1421_v53 = vld [vmem:[#allocation2 + $0x1fc] sm:$0xf0]  ;;  %v1592_v19 = vld [vmem:[#allocation2 + $0x24] sm:$0xf]  ;;  %v1205_v20 = vld [vmem:[#allocation2 + $0x54] sm:$0xf0]  ;;  %v1204_v25 = vor.u32 %v1598_v15, %v1203_v14 }
  0x4c   : > { %922 = vmatpush.bf16.msrb.mxu1 %v1244_v47  ;;  %949 = vmatpush.bf16.msrb.mxu3 %v1304_v55  ;;  %v1472_v47 = vor.u32 %v1664_v37, %v1471_v36  ;;  %v1624_v55 = vld [vmem:[#allocation2 + $0x120] sm:$0xf0]  ;;  %v1424_v60 = vor.u32 %v1645_v52, %v1421_v53  ;;  %v1265_v27 = vld [vmem:[#allocation2 + $0xc4] sm:$0xf0]  ;;  %v1208_v29 = vor.u32 %v1592_v19, %v1205_v20  ;;  %v1531_v30 = vld [vmem:[#allocation2 + $0x2a0] sm:$0xf] }
  0x4d   : > { %v1308_v63 = vor.u32 %v1624_v55, %v1307_v54  ;;  %v1612_v24 = vld [vmem:[#allocation2 + $0xc0] sm:$0xf0]  ;;  %v1593_v36 = vld [vmem:[#allocation2 + $0x2c] sm:$0xf]  ;;  %v1213_v37 = vld [vmem:[#allocation2 + $0x5c] sm:$0xf0] }
  0x4e   : > { %909 = vmatpush.bf16.msrb.mxu0 %v1188_v58  ;;  %v1309_v58 = vld [vmem:[#allocation2 + $0x124] sm:$0xf0]  ;;  %v1479_v40 = vld [vmem:[#allocation2 + $0x238] sm:$0xf]  ;;  %v1665_v41 = vld [vmem:[#allocation2 + $0x268] sm:$0xf0]  ;;  %v1216_v43 = vor.u32 %v1593_v36, %v1213_v37 }
  0x4f   : > { %936 = vmatpush.bf16.msrb.mxu2 %v1248_v4  ;;  %v1312_v4 = vor.u32 %v1618_v57, %v1309_v58  ;;  %v1427_v45 = vld [vmem:[#allocation2 + $0x1d0] sm:$0xf]  ;;  %v1652_v46 = vld [vmem:[#allocation2 + $0x200] sm:$0xf0]  ;;  %v1639_v49 = vld [vmem:[#allocation2 + $0x198] sm:$0xf0] }
  0x50   : > { %923 = vmatpush.bf16.msrb.mxu1 %v1192_v62  ;;  %950 = vmatpush.bf16.msrb.mxu3 %v1252_v5  ;;  %v1638_v62 = vld [vmem:[#allocation2 + $0x190] sm:$0xf0]  ;;  %v1605_v5 = vld [vmem:[#allocation2 + $0x8c] sm:$0xf]  ;;  %v1271_v54 = vld [vmem:[#allocation2 + $0x98] sm:$0xf] }
  0x51   : > { %910 = vmatmul.bf16.vlgmr.msrb.gmra.mxu0 %v1847_v39  ;;  %v1260_v16 = vor.u32 %v1605_v5, %v1257_v6  ;;  %v1626_v52 = vld [vmem:[#allocation2 + $0x130] sm:$0xf0]  ;;  %v1613_v55 = vld [vmem:[#allocation2 + $0xc8] sm:$0xf0]  ;;  %v1219_v57 = vld [vmem:[#allocation2 + $0x30] sm:$0xf] }
  0x52   : > { %958 = vmatpush.bf16.msra.mxu0 %v1568_v61  ;;  %v1367_v61 = vld [vmem:[#allocation2 + $0x160] sm:$0xf]  ;;  %v1600_v58 = vld [vmem:[#allocation2 + $0x60] sm:$0xf0] }
  0x53   : > { %924 = vmatmul.bf16.vlgmr.msrb.gmra.mxu1 %v1847_v39  ;;  %937 = vmatpush.bf16.msrb.mxu2 %v1196_v18  ;;  %v1368_v7 = vor.u32 %v1638_v62, %v1367_v61  ;;  %v1691_v18 = vld [vmem:[#allocation2 + $0x338] sm:$0xf0] }
  0x54   : > { %972 = vmatpush.bf16.msra.mxu1 %v1572_v1  ;;  %951 = vmatpush.bf16.msrb.mxu3 %v1200_v21  ;;  %v1369_v1 = vld [vmem:[#allocation2 + $0x194] sm:$0xf0]  ;;  %v1316_v21 = vor.u32 %v1625_v10, %v1315_v9 }
  0x55   : > { %v1372_v8 = vor.u32 %v1632_v0, %v1369_v1 }
  0x56   : > { %959 = vmatpush.bf16.msra.mxu0 %v1516_v12  ;;  %938 = vmatmul.bf16.vlgmr.msrb.gmra.mxu2 %v1847_v39  ;;  %v1619_v12 = vld [vmem:[#allocation2 + $0xfc] sm:$0xf] }
  0x57   : > { %986 = vmatpush.bf16.msra.mxu2 %v1576_v22  ;;  %952 = vmatmul.bf16.vlgmr.msrb.gmra.mxu3 %v1847_v39  ;;  %v1320_v22 = vor.u32 %v1619_v12, %v1317_v13 }
  0x58   : > { %973 = vmatpush.bf16.msra.mxu1 %v1520_v17  ;;  %1000 = vmatpush.bf16.msra.mxu3 %v1580_v23  ;;  %v1583_v17 = vld [vmem:[#allocation2 + $0x308] sm:$0xf]  ;;  %v1263_v23 = vld [vmem:[#allocation2 + $0x90] sm:$0xf] }
  0x59   : > { %v1584_v28 = vor.u32 %v1691_v18, %v1583_v17  ;;  %v1264_v32 = vor.u32 %v1612_v24, %v1263_v23 }
  0x5a   : > { %960 = vmatpush.bf16.msra.mxu0 %v1464_v26  ;;  %v1606_v26 = vld [vmem:[#allocation2 + $0x94] sm:$0xf] }
  0x5b   : > { %987 = vmatpush.bf16.msra.mxu2 %v1524_v34  ;;  %v1268_v33 = vor.u32 %v1606_v26, %v1265_v27  ;;  %v1211_v34 = vld [vmem:[#allocation2 + $0x28] sm:$0xf] }
  0x5c   : > { %974 = vmatpush.bf16.msra.mxu1 %v1468_v31  ;;  %1001 = vmatpush.bf16.msra.mxu3 %v1528_v35  ;;  %v1678_v31 = vld [vmem:[#allocation2 + $0x2d0] sm:$0xf0]  ;;  %v1599_v35 = vld [vmem:[#allocation2 + $0x58] sm:$0xf0] }
  0x5d   : > { %v1212_v42 = vor.u32 %v1599_v35, %v1211_v34 }
  0x5e   : > { %961 = vmatpush.bf16.msra.mxu0 %v1412_v38  ;;  %v1532_v38 = vor.u32 %v1678_v31, %v1531_v30 }
  0x5f   : > { %988 = vmatpush.bf16.msra.mxu2 %v1472_v47  ;;  %v1428_v47 = vor.u32 %v1652_v46, %v1427_v45 }
  0x60   : > { %975 = vmatpush.bf16.msra.mxu1 %v1416_v44  ;;  %1002 = vmatpush.bf16.msra.mxu3 %v1476_v48  ;;  %v1480_v44 = vor.u32 %v1665_v41, %v1479_v40  ;;  %v1375_v48 = vld [vmem:[#allocation2 + $0x168] sm:$0xf] }
  0x61   : > { %v1376_v50 = vor.u32 %v1639_v49, %v1375_v48 }
  0x62   : > { %962 = vmatpush.bf16.msra.mxu0 %v1360_v51  ;;  %v1323_v51 = vld [vmem:[#allocation2 + $0x100] sm:$0xf] }
  0x63   : > { %989 = vmatpush.bf16.msra.mxu2 %v1420_v59  ;;  %v1324_v53 = vor.u32 %v1626_v52, %v1323_v51  ;;  %v1220_v59 = vor.u32 %v1600_v58, %v1219_v57 }
  0x64   : > { %976 = vmatpush.bf16.msra.mxu1 %v1364_v56  ;;  %1003 = vmatpush.bf16.msra.mxu3 %v1424_v60  ;;  %v1272_v56 = vor.u32 %v1613_v55, %v1271_v54 }
  0x66   : > { %963 = vmatpush.bf16.msra.mxu0 %v1308_v63 }
  0x67   : > { %990 = vmatpush.bf16.msra.mxu2 %v1368_v7 }
  0x68   : > { %977 = vmatpush.bf16.msra.mxu1 %v1312_v4  ;;  %1004 = vmatpush.bf16.msra.mxu3 %v1372_v8 }
  0x6a   : > { %964 = vmatpush.bf16.msra.mxu0 %v1256_v11 }
  0x6b   : > { %991 = vmatpush.bf16.msra.mxu2 %v1316_v21 }
  0x6c   : > { %978 = vmatpush.bf16.msra.mxu1 %v1260_v16  ;;  %1005 = vmatpush.bf16.msra.mxu3 %v1320_v22 }
  0x6e   : > { %965 = vmatpush.bf16.msra.mxu0 %v1204_v25 }
  0x6f   : > { %992 = vmatpush.bf16.msra.mxu2 %v1264_v32 }
  0x70   : > { %979 = vmatpush.bf16.msra.mxu1 %v1208_v29  ;;  %1006 = vmatpush.bf16.msra.mxu3 %v1268_v33 }
  0x71   : > { %966 = vmatmul.bf16.vlgmr.msra.gmra.mxu0 %v1847_v39 }
  0x72   : > { %1014 = vmatpush.bf16.msrb.mxu0 %v1584_v28 }
  0x73   : > { %980 = vmatmul.bf16.vlgmr.msra.gmra.mxu1 %v1847_v39  ;;  %993 = vmatpush.bf16.msra.mxu2 %v1212_v42 }
  0x74   : > { %1007 = vmatpush.bf16.msra.mxu3 %v1216_v43 }
  0x76   : > { %1015 = vmatpush.bf16.msrb.mxu0 %v1532_v38  ;;  %994 = vmatmul.bf16.vlgmr.msra.gmra.mxu2 %v1847_v39 }
  0x77   : > { %1008 = vmatmul.bf16.vlgmr.msra.gmra.mxu3 %v1847_v39 }
  0x7a   : > { %1016 = vmatpush.bf16.msrb.mxu0 %v1480_v44 }
  0x7e   : > { %1017 = vmatpush.bf16.msrb.mxu0 %v1428_v47 }
  0x82   : > { %1018 = vmatpush.bf16.msrb.mxu0 %v1376_v50 }
  0x86   : > { %1019 = vmatpush.bf16.msrb.mxu0 %v1324_v53 }
  0x8a   : > { %1020 = vmatpush.bf16.msrb.mxu0 %v1272_v56 }
  0x8e   : > { %1021 = vmatpush.bf16.msrb.mxu0 %v1220_v59 }
  0x91   : > { %1022 = vmatmul.bf16.vlgmr.msrb.gmra.mxu0 %v1847_v39 }
  0xae   : > { %v855_v60 = vpop.f32.mrf.mxu0 }
  0xb0   : > { %v869_v61 = vpop.f32.mrf.mxu1 }
  0xb1   : > { %v1028_v62 = vpack.c.bf16 %v869_v61, %v855_v60 }
  0xb3   : > { %1042 = vst [vmem:[%s1866_s30] sm:$0xff] %v1028_v62 }
  0xb6   : > { %v857_v63 = vpop.f32.mrf.mxu0 }
  0xb8   : > { %v871_v0 = vpop.f32.mrf.mxu1 }
  0xb9   : > { %v1035_v1 = vpack.c.bf16 %v871_v0, %v857_v63  ;;  %v883_v39 = vpop.f32.mrf.mxu2 }
  0xba   : > { %v897_v2 = vpop.f32.mrf.mxu3 }
  0xbb   : > { %1049 = vst [vmem:[%s1866_s30 + $0x34] sm:$0xff] %v1035_v1  ;;  %v1029_v3 = vpack.c.bf16 %v897_v2, %v883_v39 }
  0xbd   : > { %1043 = vst [vmem:[%s1866_s30 + $0x8] sm:$0xff] %v1029_v3 }
  0xc1   : > { %v885_v4 = vpop.f32.mrf.mxu2 }
  0xc2   : > { %v899_v5 = vpop.f32.mrf.mxu3 }
  0xc3   : > { %v1036_v6 = vpack.c.bf16 %v899_v5, %v885_v4 }
  0xc5   : > { %1050 = vst [vmem:[%s1866_s30 + $0x3c] sm:$0xff] %v1036_v6 }
  0xce   : > { %v911_v7 = vpop.f32.mrf.mxu0 }
  0xd0   : > { %v925_v8 = vpop.f32.mrf.mxu1 }
  0xd1   : > { %v1030_v9 = vpack.c.bf16 %v925_v8, %v911_v7 }
  0xd3   : > { %1044 = vst [vmem:[%s1866_s30 + $0x10] sm:$0xff] %v1030_v9 }
  0xd6   : > { %v913_v10 = vpop.f32.mrf.mxu0 }
  0xd8   : > { %v927_v11 = vpop.f32.mrf.mxu1 }
  0xd9   : > { %v1037_v12 = vpack.c.bf16 %v927_v11, %v913_v10  ;;  %v939_v13 = vpop.f32.mrf.mxu2 }
  0xda   : > { %v953_v14 = vpop.f32.mrf.mxu3 }
  0xdb   : > { %1051 = vst [vmem:[%s1866_s30 + $0x44] sm:$0xff] %v1037_v12  ;;  %v1031_v15 = vpack.c.bf16 %v953_v14, %v939_v13 }
  0xdd   : > { %1045 = vst [vmem:[%s1866_s30 + $0x18] sm:$0xff] %v1031_v15 }
  0xe1   : > { %v941_v16 = vpop.f32.mrf.mxu2 }
  0xe2   : > { %v955_v17 = vpop.f32.mrf.mxu3 }
  0xe3   : > { %v1038_v18 = vpack.c.bf16 %v955_v17, %v941_v16 }
  0xe5   : > { %1052 = vst [vmem:[%s1866_s30 + $0x4c] sm:$0xff] %v1038_v18 }
  0xee   : > { %v967_v19 = vpop.f32.mrf.mxu0 }
  0xf0   : > { %v981_v20 = vpop.f32.mrf.mxu1 }
  0xf1   : > { %v1032_v21 = vpack.c.bf16 %v981_v20, %v967_v19 }
  0xf3   : > { %1046 = vst [vmem:[%s1866_s30 + $0x20] sm:$0xff] %v1032_v21 }
  0xf6   : > { %v969_v22 = vpop.f32.mrf.mxu0 }
  0xf8   : > { %v983_v23 = vpop.f32.mrf.mxu1 }
  0xf9   : > { %v1039_v24 = vpack.c.bf16 %v983_v23, %v969_v22  ;;  %v995_v25 = vpop.f32.mrf.mxu2 }
  0xfa   : > { %v1009_v26 = vpop.f32.mrf.mxu3 }
  0xfb   : > { %1053 = vst [vmem:[%s1866_s30 + $0x54] sm:$0xff] %v1039_v24  ;;  %v1033_v27 = vpack.c.bf16 %v1009_v26, %v995_v25 }
  0xfd   : > { %1047 = vst [vmem:[%s1866_s30 + $0x28] sm:$0xff] %v1033_v27 }
 0x101   : > { %v997_v28 = vpop.f32.mrf.mxu2 }
 0x102   : > { %v1011_v29 = vpop.f32.mrf.mxu3 }
 0x103   : > { %v1040_v30 = vpack.c.bf16 %v1011_v29, %v997_v28 }
 0x105   : > { %1054 = vst [vmem:[%s1866_s30 + $0x5c] sm:$0xff] %v1040_v30 }
 0x10e   : > { %v1023_v31 = vpop.f32.mrf.mxu0 }
 0x10f   : > { %v1034_v32 = vpack.c.bf16 %v1023_v31, %v1023_v31 }
 0x111   : > { %1048 = vst [vmem:[%s1866_s30 + $0x30] sm:$0xf] %v1034_v32 }
 0x116   : > { %v1025_v33 = vpop.f32.mrf.mxu0 }
 0x117   : > { %v1041_v34 = vpack.c.bf16 %v1025_v33, %v1025_v33 }
 0x119   : > { %1055 = vst [vmem:[%s1866_s30 + $0x64] sm:$0xf] %v1041_v34 }
 0x11a PF: > { %s13_s11 = sadd.s32 1, %s1786_s11   ;;  %s1895_s9 = smov %s1782_s10 }
 0x11b   : > { %p10_p8 = scmp.ge.s32.totalorder %s13_s11, 4   ;;  %s1896_s10 = smov %s1898_s13 }
 0x11d   :  { %12 = sbr.rel (!%p10_p8) target bundleno = 2 (0x2), region = 64 }
 0x122   :  { %1089 = vsyncpa [#allocation3], 1 }
 0x123   :  { %1091 = vsyncpa [#allocation3 + $0x1], 1 }

// kernel: generator_forward.6
= control target key start
LH: loop header
LB: loop body
LE: loop exit
PB: predicated region body
PF: predicated region fallthrough
CT: control target
= control target key end

     0   :  { %8 = vsyncpa [#allocation3], 0  ;;  %s5610_s0 = inlined_call_operand.vmem [shape: bf16[2,640], index: 0, kind: input, shape index: {}]   ;;  %s5611_s1 = inlined_call_operand.hbm [shape: bf16[640,2048], index: 1, kind: input, shape index: {}]   ;;  %s5612_s2 = inlined_call_operand.hbm [shape: f32[1,2048], index: 2, kind: input, shape index: {}]   ;;  %s5613_s3 = inlined_call_operand.vmem [shape: bf16[2,2048], index: 3, kind: output, shape index: {}]  }
   0x1   :  { %10 = vsyncpa [#allocation3 + $0x1], 0 }
   0x2   :  { %11 = vsyncpa [#allocation5], 0 }
   0x3   :  { %13 = vsyncpa [#allocation5 + $0x1], 0  ;;  %s4758_s12 = smov 0   ;;  %s4760_s13 = smov 0  }
   0x4   :  { %s4762_s14 = smov 0   ;;  %s4764_s15 = smov 0  }
   0x5   :  { %s4766_s16 = smov 0   ;;  %s4768_s17 = smov 0  }
   0x6 LB: > { %s2930_s18 = sadd.s32 4294967295, %s4733_s17   ;;  %s28_s19 = sadd.s32 1, %s4729_s16  ;;  %s4733_s17 = sphi %s4768_s17, %s19_s17   ;;  %s4729_s16 = sphi %s4766_s16, %s5620_s16   ;;  %s4725_s15 = sphi %s4764_s15, %s5619_s15   ;;  %s4721_s14 = sphi %s4762_s14, %s5618_s14   ;;  %s4717_s13 = sphi %s4760_s13, %s5617_s13   ;;  %s4713_s12 = sphi %s4758_s12, %s5616_s12  }
   0x7   : > { %p29_p0 = scmp.ge.s32.totalorder %s28_s19, 2  ;;  %s64_s20 = sadd.s32 1, %s4721_s14 }
   0x8   : > { %p71_p1 = scmp.ne.s32.totalorder %s4721_s14, %s4717_s13  ;;  %p72_p2 = scmp.eq.s32.totalorder %s4733_s17, 0 }
   0x9   : > { %s5622_s19 = smov (%p29_p0, %s28_s19), 0  ;;  %p77_p4 = scmp.ne.s32.totalorder %s4717_s13, %s4713_s12 }
   0xa   : > { %p73_p3 = por %p72_p2, %p71_p1  ;;  %s61_s21 = ssub.s32 %s4729_s16, %s5622_s19 }
   0xb   : > { %p78_p5 = scmp.eq.s32.totalorder %s2930_s18, 0  ;;  %p62_p6 = scmp.eq.s32.totalorder %s61_s21, 0 }
   0xc   : > { %p4558_p8 = scmp.lt.s32.totalorder %s4733_s17, 2  ;;  %s4806_s24 = sand.u32 1, %s4721_s14  }
   0xd   : > { %p4797_p7 = por %p78_p5, %p77_p4  ;;  %s4224_s25 = sshll.u32 %s4729_s16, 5 }
   0xe   : > { %s4803_s23 = scalar_select %p62_p6, %s4721_s14, %s64_s20  }
   0xf   : > { %s4545_s26 = smul.u32 2560, %s4806_s24  ;;  %s171_s29 = scalar_lea.hbm %s5611_s1, %s4224_s25 }
  0x10   : > { %p4813_p9 = pnand %p4558_p8, %p73_p3  ;;  %s172_s4 = sshll.u32 %s171_s29, 4  ;;  %s173_s4 = int_to_ptr.hbm [resolvable:$true] %s172_s4 }
  0x11   : > { %s166_s5 = scalar_lea.vmem [#allocation2], %s4545_s26  ;;  %p2939_p10 = scmp.ge.s32.totalorder %s4733_s17, 1 }
  0x12   : > { %s174_s6 = sshll.u32 %s166_s5, 4  ;;  %s163_s7 = scalar_lea.sflag [#allocation3], %s4806_s24  ;;  %s175_s6 = int_to_ptr.vmem [resolvable:$true] %s174_s6 }
  0x13   : > { %s4735_s8 = smov 1024   ;;  %s4736_s9 = smov 512  }
  0x14   : > { %s4737_s10 = smov 32   ;;  %p201_p11 = scmp.lt.s32.totalorder %s4733_s17, 3 }
  0x15   : > { %4554 = dma.hbm_to_vmem [thread:$0]  (!%p4813_p9), %s173_s4, 40960, %s175_s6, %s163_s7, %s4735_s8, %s4736_s9, %s4737_s10  }
  0x16   : > { %s2937_s11 = sshll.u32 %s4806_s24, 3  ;;  %s2938_s12 = sshll.u32 %s4729_s16, 3 }
  0x17   : > { %p202_p12 = pnand %p2939_p10, %p201_p11  ;;  %s192_s21 = scalar_lea.hbm %s5612_s2, %s2938_s12 }
  0x18   : > { %s188_s25 = scalar_lea.vmem [#allocation4], %s2937_s11  ;;  %s194_s27 = sshll.u32 %s192_s21, 4  ;;  %s195_s27 = int_to_ptr.hbm [resolvable:$true] %s194_s27 }
  0x19   : > { %s196_s26 = sshll.u32 %s188_s25, 4  ;;  %s185_s28 = scalar_lea.sflag [#allocation5], %s4806_s24  ;;  %s197_s26 = int_to_ptr.vmem [resolvable:$true] %s196_s26 }
  0x1a   : > { %4557 = dma.hbm_to_vmem [thread:$0]  (!%p4813_p9), %s195_s27, 128, %s197_s26, %s185_s28  }
  0x1b   : > { %205 = sbr.rel (%p202_p12) target bundleno = 541 (0x21d), region = 32  ;;  %s207_s29 = sand.u32 (!%p202_p12), 1, %s4717_s13  }
  0x1c   : > { %s4546_s4 = smul.u32 (!%p202_p12), 2560, %s207_s29  ;;  %s208_s5 = scalar_lea.sflag (!%p202_p12), [#allocation3], %s207_s29 }
  0x1e   : > { %s4831_s6 = scalar_lea.vmem (!%p202_p12), [#allocation2], %s4546_s4 }
  0x20   : > { %4704 = dma.done.wait (%p4797_p7), %s208_s5, 40960  }
  0x21   : > { %4706 = vsyncadd (%p4797_p7), %s208_s5, 4294926336  ;;  %s2940_s7 = sshll.u32 %s207_s29, 3  ;;  %s218_s8 = scalar_lea.sflag [#allocation5], %s207_s29 }
  0x22   : > { %s4837_s9 = scalar_lea.vmem [#allocation4], %s2940_s7 }
  0x23   : > { %4708 = dma.done.wait (%p4797_p7), %s218_s8, 128  }
  0x24   : > { %4710 = vsyncadd (%p4797_p7), %s218_s8, 4294967168  ;;  %v3168_v0 = vld [vmem:[%s4831_s6 + $0x1c0] sm:$0xf]  ;;  %vm2782_vm4 = vcmask 1040384   ;;  %vm2786_vm5 = vcmask 1042434   ;;  %vm2790_vm6 = vcmask 1041408  }
  0x25   : > { %v4285_v1 = vld [vmem:[%s4831_s6 + $0x1dc] sm:$0xf0]  ;;  %s2941_s30 = sshll.u32 %s4725_s15, 3  ;;  %vm2792_vm11 = vcmask 1044484   ;;  %vm2796_vm12 = vcmask 1046534   ;;  %vm2800_vm13 = vcmask 1045508  }
  0x26   : > { %v3424_v2 = vld [vmem:[%s4831_s6 + $0x3c0] sm:$0xf]  ;;  %v3169_v3 = vor.u32 %v4285_v1, %v3168_v0  ;;  %p266_p13 = scmp.lt.s32.totalorder %s2941_s30, 15  ;;  %vm2802_vm14 = vcmask 1043456  }
  0x27   : > { %v4349_v4 = vld [vmem:[%s4831_s6 + $0x3dc] sm:$0xf0] }
  0x28   : > { %v3680_v5 = vld [vmem:[%s4831_s6 + $0x5c0] sm:$0xf]  ;;  %v3425_v7 = vor.u32 %v4349_v4, %v3424_v2  ;;  %2223 = vmatpush.bf16.msra.mxu0 %v3169_v3  ;;  %s5624_s30 = smov (!%p266_p13, %s2941_s30), 15 }
  0x29   : > { %v4413_v6 = vld [vmem:[%s4831_s6 + $0x5dc] sm:$0xf0]  ;;  %s270_s11 = scalar_lea.vmem %s5613_s3, %s5624_s30 }
  0x2a   : > { %v3681_v8 = vor.u32 %v4413_v6, %v3680_v5  ;;  %v3936_v9 = vld [vmem:[%s4831_s6 + $0x7c0] sm:$0xf]  ;;  %2236 = vmatpush.bf16.msra.mxu1 %v3425_v7 }
  0x2b   : > { %v4477_v10 = vld [vmem:[%s4831_s6 + $0x7dc] sm:$0xf0] }
  0x2c   : > { %v3136_v11 = vld [vmem:[%s4831_s6 + $0x180] sm:$0xf]  ;;  %v3937_v12 = vor.u32 %v4477_v10, %v3936_v9  ;;  %2249 = vmatpush.bf16.msra.mxu2 %v3681_v8 }
  0x2d   : > { %v4277_v13 = vld [vmem:[%s4831_s6 + $0x19c] sm:$0xf0] }
  0x2e   : > { %v3392_v14 = vld [vmem:[%s4831_s6 + $0x380] sm:$0xf]  ;;  %v3137_v16 = vor.u32 %v4277_v13, %v3136_v11  ;;  %2262 = vmatpush.bf16.msra.mxu3 %v3937_v12 }
  0x2f   : > { %v4341_v15 = vld [vmem:[%s4831_s6 + $0x39c] sm:$0xf0] }
  0x30   : > { %v3393_v17 = vor.u32 %v4341_v15, %v3392_v14  ;;  %v3648_v18 = vld [vmem:[%s4831_s6 + $0x580] sm:$0xf]  ;;  %2224 = vmatpush.bf16.msra.mxu0 %v3137_v16 }
  0x31   : > { %v4405_v19 = vld [vmem:[%s4831_s6 + $0x59c] sm:$0xf0] }
  0x32   : > { %v3904_v20 = vld [vmem:[%s4831_s6 + $0x780] sm:$0xf]  ;;  %v3649_v21 = vor.u32 %v4405_v19, %v3648_v18  ;;  %2237 = vmatpush.bf16.msra.mxu1 %v3393_v17 }
  0x33   : > { %v4469_v22 = vld [vmem:[%s4831_s6 + $0x79c] sm:$0xf0] }
  0x34   : > { %v3104_v23 = vld [vmem:[%s4831_s6 + $0x140] sm:$0xf]  ;;  %v3905_v25 = vor.u32 %v4469_v22, %v3904_v20  ;;  %2250 = vmatpush.bf16.msra.mxu2 %v3649_v21 }
  0x35   : > { %v4269_v24 = vld [vmem:[%s4831_s6 + $0x15c] sm:$0xf0] }
  0x36   : > { %v3360_v26 = vld [vmem:[%s4831_s6 + $0x340] sm:$0xf]  ;;  %v3105_v29 = vor.u32 %v4269_v24, %v3104_v23  ;;  %2263 = vmatpush.bf16.msra.mxu3 %v3905_v25 }
  0x37   : > { %v4333_v27 = vld [vmem:[%s4831_s6 + $0x35c] sm:$0xf0] }
  0x38   : > { %v3616_v28 = vld [vmem:[%s4831_s6 + $0x540] sm:$0xf]  ;;  %v3361_v33 = vor.u32 %v4333_v27, %v3360_v26  ;;  %2225 = vmatpush.bf16.msra.mxu0 %v3105_v29 }
  0x39   : > { %v4397_v30 = vld [vmem:[%s4831_s6 + $0x55c] sm:$0xf0] }
  0x3a   : > { %v3872_v31 = vld [vmem:[%s4831_s6 + $0x740] sm:$0xf]  ;;  %v3617_v34 = vor.u32 %v4397_v30, %v3616_v28  ;;  %2238 = vmatpush.bf16.msra.mxu1 %v3361_v33  ;;  %v4281_v30 = vld [vmem:[%s4831_s6 + $0x1c4] sm:$0xf] }
  0x3b   : > { %v4461_v32 = vld [vmem:[%s4831_s6 + $0x75c] sm:$0xf0]  ;;  %v4345_v33 = vld [vmem:[%s4831_s6 + $0x3c4] sm:$0xf] }
  0x3c   : > { %v3072_v35 = vld [vmem:[%s4831_s6 + $0x100] sm:$0xf]  ;;  %v3873_v38 = vor.u32 %v4461_v32, %v3872_v31  ;;  %2251 = vmatpush.bf16.msra.mxu2 %v3617_v34  ;;  %v3170_v32 = vld [vmem:[%s4831_s6 + $0x1e0] sm:$0xf0] }
  0x3d   : > { %v4261_v36 = vld [vmem:[%s4831_s6 + $0x11c] sm:$0xf0]  ;;  %v3426_v34 = vld [vmem:[%s4831_s6 + $0x3e0] sm:$0xf0] }
  0x3e   : > { %v3328_v37 = vld [vmem:[%s4831_s6 + $0x300] sm:$0xf]  ;;  %v3073_v44 = vor.u32 %v4261_v36, %v3072_v35  ;;  %2264 = vmatpush.bf16.msra.mxu3 %v3873_v38  ;;  %v3682_v38 = vld [vmem:[%s4831_s6 + $0x5e0] sm:$0xf0] }
  0x3f   : > { %v4325_v39 = vld [vmem:[%s4831_s6 + $0x31c] sm:$0xf0] }
  0x40   : > { %v3584_v40 = vld [vmem:[%s4831_s6 + $0x500] sm:$0xf]  ;;  %v3329_v45 = vor.u32 %v4325_v39, %v3328_v37  ;;  %2226 = vmatpush.bf16.msra.mxu0 %v3073_v44  ;;  %v4409_v37 = vld [vmem:[%s4831_s6 + $0x5c4] sm:$0xf] }
  0x41   : > { %v4389_v41 = vld [vmem:[%s4831_s6 + $0x51c] sm:$0xf0] }
  0x42   : > { %v3840_v42 = vld [vmem:[%s4831_s6 + $0x700] sm:$0xf]  ;;  %v3585_v46 = vor.u32 %v4389_v41, %v3584_v40  ;;  %2239 = vmatpush.bf16.msra.mxu1 %v3329_v45  ;;  %v3173_v41 = vor.u32 %v4281_v30, %v3170_v32  ;;  %v4273_v45 = vld [vmem:[%s4831_s6 + $0x184] sm:$0xf] }
  0x43   : > { %v4453_v43 = vld [vmem:[%s4831_s6 + $0x71c] sm:$0xf0] }
  0x44   : > { %v3040_v47 = vld [vmem:[%s4831_s6 + $0xc0] sm:$0xf]  ;;  %v3841_v50 = vor.u32 %v4453_v43, %v3840_v42  ;;  %2252 = vmatpush.bf16.msra.mxu2 %v3585_v46  ;;  %v3429_v42 = vor.u32 %v4345_v33, %v3426_v34  ;;  %v3685_v46 = vor.u32 %v4409_v37, %v3682_v38  ;;  %v4241_v33 = vld [vmem:[%s4831_s6 + $0x84] sm:$0xf] }
  0x45   : > { %v4253_v48 = vld [vmem:[%s4831_s6 + $0xdc] sm:$0xf0]  ;;  %v4305_v37 = vld [vmem:[%s4831_s6 + $0x284] sm:$0xf] }
  0x46   : > { %v3296_v49 = vld [vmem:[%s4831_s6 + $0x2c0] sm:$0xf]  ;;  %v3041_v56 = vor.u32 %v4253_v48, %v3040_v47  ;;  %2265 = vmatpush.bf16.msra.mxu3 %v3841_v50  ;;  %v3138_v47 = vld [vmem:[%s4831_s6 + $0x1a0] sm:$0xf0] }
  0x47   : > { %v4317_v51 = vld [vmem:[%s4831_s6 + $0x2dc] sm:$0xf0]  ;;  %v4337_v48 = vld [vmem:[%s4831_s6 + $0x384] sm:$0xf] }
  0x48   : > { %v3552_v52 = vld [vmem:[%s4831_s6 + $0x4c0] sm:$0xf]  ;;  %v3297_v57 = vor.u32 %v4317_v51, %v3296_v49  ;;  %2227 = vmatpush.bf16.msra.mxu0 %v3041_v56  ;;  %v3394_v49 = vld [vmem:[%s4831_s6 + $0x3a0] sm:$0xf0] }
  0x49   : > { %v4381_v53 = vld [vmem:[%s4831_s6 + $0x4dc] sm:$0xf0]  ;;  %v4401_v50 = vld [vmem:[%s4831_s6 + $0x584] sm:$0xf] }
  0x4a   : > { %v3808_v54 = vld [vmem:[%s4831_s6 + $0x6c0] sm:$0xf]  ;;  %v3553_v58 = vor.u32 %v4381_v53, %v3552_v52  ;;  %2240 = vmatpush.bf16.msra.mxu1 %v3297_v57  ;;  %v3650_v51 = vld [vmem:[%s4831_s6 + $0x5a0] sm:$0xf0]  ;;  %v3141_v53 = vor.u32 %v4273_v45, %v3138_v47 }
  0x4b   : > { %v4445_v55 = vld [vmem:[%s4831_s6 + $0x6dc] sm:$0xf0]  ;;  %v4265_v57 = vld [vmem:[%s4831_s6 + $0x144] sm:$0xf] }
  0x4c   : > { %v3008_v59 = vld [vmem:[%s4831_s6 + $0x80] sm:$0xf]  ;;  %v3809_v62 = vor.u32 %v4445_v55, %v3808_v54  ;;  %2253 = vmatpush.bf16.msra.mxu2 %v3553_v58  ;;  %v3397_v54 = vor.u32 %v4337_v48, %v3394_v49  ;;  %v3653_v58 = vor.u32 %v4401_v50, %v3650_v51  ;;  %v3266_v38 = vld [vmem:[%s4831_s6 + $0x2a0] sm:$0xf0] }
  0x4d   : > { %v4245_v60 = vld [vmem:[%s4831_s6 + $0x9c] sm:$0xf0]  ;;  %v2978_v48 = vld [vmem:[%s4831_s6 + $0x60] sm:$0xf0] }
  0x4e   : > { %v3264_v61 = vld [vmem:[%s4831_s6 + $0x280] sm:$0xf]  ;;  %v3009_v4 = vor.u32 %v4245_v60, %v3008_v59  ;;  %2266 = vmatpush.bf16.msra.mxu3 %v3809_v62  ;;  %v3106_v59 = vld [vmem:[%s4831_s6 + $0x160] sm:$0xf0] }
  0x4f   : > { %v4309_v63 = vld [vmem:[%s4831_s6 + $0x29c] sm:$0xf0]  ;;  %v4329_v60 = vld [vmem:[%s4831_s6 + $0x344] sm:$0xf] }
  0x50   : > { %v3520_v0 = vld [vmem:[%s4831_s6 + $0x480] sm:$0xf]  ;;  %v3265_v5 = vor.u32 %v4309_v63, %v3264_v61  ;;  %2228 = vmatpush.bf16.msra.mxu0 %v3009_v4  ;;  %v3362_v61 = vld [vmem:[%s4831_s6 + $0x360] sm:$0xf0] }
  0x51   : > { %v4373_v1 = vld [vmem:[%s4831_s6 + $0x49c] sm:$0xf0]  ;;  %v4393_v62 = vld [vmem:[%s4831_s6 + $0x544] sm:$0xf]  ;;  %v3365_v4 = vor.u32 %v4329_v60, %v3362_v61 }
  0x52   : > { %v3776_v2 = vld [vmem:[%s4831_s6 + $0x680] sm:$0xf]  ;;  %v3521_v6 = vor.u32 %v4373_v1, %v3520_v0  ;;  %2241 = vmatpush.bf16.msra.mxu1 %v3265_v5  ;;  %v3618_v63 = vld [vmem:[%s4831_s6 + $0x560] sm:$0xf0] }
  0x53   : > { %v4437_v3 = vld [vmem:[%s4831_s6 + $0x69c] sm:$0xf0]  ;;  %v4297_v49 = vld [vmem:[%s4831_s6 + $0x244] sm:$0xf] }
  0x54   : > { %v2976_v7 = vld [vmem:[%s4831_s6 + $0x40] sm:$0xf]  ;;  %v3777_v10 = vor.u32 %v4437_v3, %v3776_v2  ;;  %2254 = vmatpush.bf16.msra.mxu2 %v3521_v6  ;;  %v272_v2 = vld [vmem:[%s5610_s0] sm:$0x1f]  ;;  %v3109_v3 = vor.u32 %v4265_v57, %v3106_v59  ;;  %v4257_v6 = vld [vmem:[%s4831_s6 + $0x104] sm:$0xf] }
  0x55   : > { %v4237_v8 = vld [vmem:[%s4831_s6 + $0x5c] sm:$0xf0]  ;;  %612 = vst [vmem:[#allocation1] ss:$9 sm:$0xff] %v272_v2  ;;  %v3234_v50 = vld [vmem:[%s4831_s6 + $0x260] sm:$0xf0] }
  0x56   : > { %v3232_v9 = vld [vmem:[%s4831_s6 + $0x240] sm:$0xf]  ;;  %v2977_v16 = vor.u32 %v4237_v8, %v2976_v7  ;;  %2267 = vmatpush.bf16.msra.mxu3 %v3777_v10  ;;  %v3621_v7 = vor.u32 %v4393_v62, %v3618_v63  ;;  %v3074_v8 = vld [vmem:[%s4831_s6 + $0x120] sm:$0xf0]  ;;  %v3237_v57 = vor.u32 %v4297_v49, %v3234_v50  ;;  %v3080_v50 = vld [vmem:[%s4831_s6 + $0x108] sm:$0xf] }
  0x57   : > { %v4301_v11 = vld [vmem:[%s4831_s6 + $0x25c] sm:$0xf0]  ;;  %v3330_v10 = vld [vmem:[%s4831_s6 + $0x320] sm:$0xf0] }
  0x58   : > { %v3488_v12 = vld [vmem:[%s4831_s6 + $0x440] sm:$0xf]  ;;  %v3233_v19 = vor.u32 %v4301_v11, %v3232_v9  ;;  %2229 = vmatpush.bf16.msra.mxu0 %v2977_v16  ;;  %v4321_v9 = vld [vmem:[%s4831_s6 + $0x304] sm:$0xf] }
  0x59   : > { %v4365_v13 = vld [vmem:[%s4831_s6 + $0x45c] sm:$0xf0]  ;;  %v4385_v11 = vld [vmem:[%s4831_s6 + $0x504] sm:$0xf] }
  0x5a   : > { %v3744_v14 = vld [vmem:[%s4831_s6 + $0x640] sm:$0xf]  ;;  %v3489_v20 = vor.u32 %v4365_v13, %v3488_v12  ;;  %2242 = vmatpush.bf16.msra.mxu1 %v3233_v19  ;;  %v3586_v12 = vld [vmem:[%s4831_s6 + $0x520] sm:$0xf0] }
  0x5b   : > { %v4429_v15 = vld [vmem:[%s4831_s6 + $0x65c] sm:$0xf0]  ;;  %v3589_v19 = vor.u32 %v4385_v11, %v3586_v12  ;;  %v4361_v51 = vld [vmem:[%s4831_s6 + $0x444] sm:$0xf]  ;;  %v4350_v11 = vld [vmem:[%s4831_s6 + $0x3e4] sm:$0xf0] }
  0x5c   : > { %v2944_v17 = vld [vmem:[%s4831_s6] sm:$0xf]  ;;  %v3745_v24 = vor.u32 %v4429_v15, %v3744_v14  ;;  %2255 = vmatpush.bf16.msra.mxu2 %v3489_v20  ;;  %v3077_v14 = vor.u32 %v4257_v6, %v3074_v8  ;;  %v3333_v15 = vor.u32 %v4321_v9, %v3330_v10  ;;  %v3042_v20 = vld [vmem:[%s4831_s6 + $0xe0] sm:$0xf0]  ;;  %v3176_v6 = vld [vmem:[%s4831_s6 + $0x1c8] sm:$0xf] }
  0x5d   : > { %v4229_v18 = vld [vmem:[%s4831_s6 + $0x1c] sm:$0xf0]  ;;  %v2946_v59 = vld [vmem:[%s4831_s6 + $0x20] sm:$0xf0]  ;;  %v3432_v10 = vld [vmem:[%s4831_s6 + $0x3c8] sm:$0xf] }
  0x5e   : > { %v3200_v21 = vld [vmem:[%s4831_s6 + $0x200] sm:$0xf]  ;;  %v2945_v31 = vor.u32 %v4229_v18, %v2944_v17  ;;  %2268 = vmatpush.bf16.msra.mxu3 %v3745_v24  ;;  %v4249_v18 = vld [vmem:[%s4831_s6 + $0xc4] sm:$0xf] }
  0x5f   : > { %v4293_v22 = vld [vmem:[%s4831_s6 + $0x21c] sm:$0xf0]  ;;  %v3554_v24 = vld [vmem:[%s4831_s6 + $0x4e0] sm:$0xf0]  ;;  %v3045_v30 = vor.u32 %v4249_v18, %v3042_v20 }
  0x60   : > { %v3456_v23 = vld [vmem:[%s4831_s6 + $0x400] sm:$0xf]  ;;  %v3201_v35 = vor.u32 %v4293_v22, %v3200_v21  ;;  %2230 = vmatpush.bf16.msra.mxu0 %v2945_v31  ;;  %v4313_v21 = vld [vmem:[%s4831_s6 + $0x2c4] sm:$0xf] }
  0x61   : > { %v4357_v25 = vld [vmem:[%s4831_s6 + $0x41c] sm:$0xf0]  ;;  %v3298_v22 = vld [vmem:[%s4831_s6 + $0x2e0] sm:$0xf0] }
  0x62   : > { %v3712_v26 = vld [vmem:[%s4831_s6 + $0x600] sm:$0xf]  ;;  %v3457_v36 = vor.u32 %v4357_v25, %v3456_v23  ;;  %2243 = vmatpush.bf16.msra.mxu1 %v3201_v35  ;;  %v4377_v23 = vld [vmem:[%s4831_s6 + $0x4c4] sm:$0xf]  ;;  %v3301_v31 = vor.u32 %v4313_v21, %v3298_v22  ;;  %v3144_v21 = vld [vmem:[%s4831_s6 + $0x188] sm:$0xf] }
  0x63   : > { %v4421_v27 = vld [vmem:[%s4831_s6 + $0x61c] sm:$0xf0]  ;;  %v3557_v35 = vor.u32 %v4377_v23, %v3554_v24  ;;  %v4289_v60 = vld [vmem:[%s4831_s6 + $0x204] sm:$0xf]  ;;  %v4278_v22 = vld [vmem:[%s4831_s6 + $0x1a4] sm:$0xf0] }
  0x64   : > { %v4192_v28 = vld [vmem:[%s4831_s6 + $0x9c0] sm:$0xf]  ;;  %v3713_v39 = vor.u32 %v4421_v27, %v3712_v26  ;;  %2256 = vmatpush.bf16.msra.mxu2 %v3457_v36  ;;  %v4951_v27 = vld [vmem:[#allocation1] sm:$0xff]  ;;  %v3010_v36 = vld [vmem:[%s4831_s6 + $0xa0] sm:$0xf0] }
  0x65   : > { %v4541_v29 = vld [vmem:[%s4831_s6 + $0x9dc] sm:$0xf0]  ;;  %2231 = vmatmul.bf16.vlgmr.msra.gmra.mxu0 %v4951_v27  ;;  %v3202_v62 = vld [vmem:[%s4831_s6 + $0x220] sm:$0xf0]  ;;  %v3400_v23 = vld [vmem:[%s4831_s6 + $0x388] sm:$0xf] }
  0x66   : > { %v4193_v40 = vor.u32 %v4541_v29, %v4192_v28  ;;  %v4160_v43 = vld [vmem:[%s4831_s6 + $0x980] sm:$0xf]  ;;  %2269 = vmatpush.bf16.msra.mxu3 %v3713_v39  ;;  %2288 = vmatpush.bf16.msrb.mxu1 %v3173_v41  ;;  %v4953_v28 = vld [vmem:[#allocation1 + $0x12] sm:$0xff]  ;;  %v4955_v29 = vld [vmem:[#allocation1 + $0x1b] sm:$0xff]  ;;  %v3205_v9 = vor.u32 %v4289_v60, %v3202_v62 }
  0x67   : > { %v4533_v44 = vld [vmem:[%s4831_s6 + $0x99c] sm:$0xf0]  ;;  %v4369_v39 = vld [vmem:[%s4831_s6 + $0x484] sm:$0xf]  ;;  %2257 = vmatmul.bf16.vlgmr.msra.gmra.mxu2 %v4953_v28  ;;  %v4342_v24 = vld [vmem:[%s4831_s6 + $0x3a4] sm:$0xf0] }
  0x68   : > { %2275 = vmatpush.bf16.msrb.mxu0 %v4193_v40  ;;  %v4161_v52 = vor.u32 %v4533_v44, %v4160_v43  ;;  %2301 = vmatpush.bf16.msrb.mxu2 %v3429_v42  ;;  %v4128_v55 = vld [vmem:[%s4831_s6 + $0x940] sm:$0xf]  ;;  %v3522_v40 = vld [vmem:[%s4831_s6 + $0x4a0] sm:$0xf0]  ;;  %v3013_v42 = vor.u32 %v4241_v33, %v3010_v36  ;;  %v3269_v43 = vor.u32 %v4305_v37, %v3266_v38  ;;  %v3112_v38 = vld [vmem:[%s4831_s6 + $0x148] sm:$0xf] }
  0x69   : > { %v4525_v56 = vld [vmem:[%s4831_s6 + $0x95c] sm:$0xf0]  ;;  %2270 = vmatmul.bf16.vlgmr.msra.gmra.mxu3 %v4955_v29  ;;  %v3525_v47 = vor.u32 %v4369_v39, %v3522_v40  ;;  %v4353_v63 = vld [vmem:[%s4831_s6 + $0x404] sm:$0xf]  ;;  %v3401_v36 = vor.u32 %v4342_v24, %v3400_v23  ;;  %v4270_v39 = vld [vmem:[%s4831_s6 + $0x164] sm:$0xf0] }
  0x6a   : > { %2314 = vmatpush.bf16.msrb.mxu3 %v3685_v46  ;;  %v4129_v0 = vor.u32 %v4525_v56, %v4128_v55  ;;  %v4096_v1 = vld [vmem:[%s4831_s6 + $0x900] sm:$0xf]  ;;  %2289 = vmatpush.bf16.msrb.mxu1 %v3141_v53  ;;  %v4233_v46 = vld [vmem:[%s4831_s6 + $0x44] sm:$0xf]  ;;  %v3368_v40 = vld [vmem:[%s4831_s6 + $0x348] sm:$0xf] }
  0x6b   : > { %v4517_v5 = vld [vmem:[%s4831_s6 + $0x91c] sm:$0xf0]  ;;  %v2981_v56 = vor.u32 %v4233_v46, %v2978_v48  ;;  %v3938_v2 = vld [vmem:[%s4831_s6 + $0x7e0] sm:$0xf0]  ;;  %v3048_v62 = vld [vmem:[%s4831_s6 + $0xc8] sm:$0xf] }
  0x6c   : > { %2276 = vmatpush.bf16.msrb.mxu0 %v4161_v52  ;;  %2302 = vmatpush.bf16.msrb.mxu2 %v3397_v54  ;;  %v4097_v13 = vor.u32 %v4517_v5, %v4096_v1  ;;  %v4064_v16 = vld [vmem:[%s4831_s6 + $0x8c0] sm:$0xf]  ;;  %v3490_v52 = vld [vmem:[%s4831_s6 + $0x460] sm:$0xf0]  ;;  %v4238_v23 = vld [vmem:[%s4831_s6 + $0x64] sm:$0xf0] }
  0x6d   : > { %v4509_v17 = vld [vmem:[%s4831_s6 + $0x8dc] sm:$0xf0]  ;;  %v3493_v61 = vor.u32 %v4361_v51, %v3490_v52  ;;  %v4473_v1 = vld [vmem:[%s4831_s6 + $0x7c4] sm:$0xf]  ;;  %v4262_v51 = vld [vmem:[%s4831_s6 + $0x124] sm:$0xf0] }
  0x6e   : > { %2315 = vmatpush.bf16.msrb.mxu3 %v3653_v58  ;;  %2290 = vmatpush.bf16.msrb.mxu1 %v3109_v3  ;;  %v4032_v25 = vld [vmem:[%s4831_s6 + $0x880] sm:$0xf]  ;;  %v4065_v26 = vor.u32 %v4509_v17, %v4064_v16  ;;  %v4225_v58 = vld [vmem:[%s4831_s6 + $0x4] sm:$0xf]  ;;  %v3336_v52 = vld [vmem:[%s4831_s6 + $0x308] sm:$0xf] }
  0x6f   : > { %v4501_v32 = vld [vmem:[%s4831_s6 + $0x89c] sm:$0xf0]  ;;  %v4537_v3 = vld [vmem:[%s4831_s6 + $0x9c4] sm:$0xf]  ;;  %v2949_v8 = vor.u32 %v4225_v58, %v2946_v59  ;;  %v3240_v24 = vld [vmem:[%s4831_s6 + $0x248] sm:$0xf] }
  0x70   : > { %2277 = vmatpush.bf16.msrb.mxu0 %v4129_v0  ;;  %2303 = vmatpush.bf16.msrb.mxu2 %v3365_v4  ;;  %v4959_v34 = vld [vmem:[#allocation1 + $0x9] sm:$0xff]  ;;  %v4033_v41 = vor.u32 %v4501_v32, %v4032_v25 }
  0x71   : > { %2244 = vmatmul.bf16.vlgmr.msra.gmra.mxu1 %v4959_v34  ;;  %v4000_v44 = vld [vmem:[%s4831_s6 + $0x840] sm:$0xf]  ;;  %v3458_v0 = vld [vmem:[%s4831_s6 + $0x420] sm:$0xf0] }
  0x72   : > { %2316 = vmatpush.bf16.msrb.mxu3 %v3621_v7  ;;  %2291 = vmatpush.bf16.msrb.mxu1 %v3077_v14  ;;  %v4493_v45 = vld [vmem:[%s4831_s6 + $0x85c] sm:$0xf0]  ;;  %v4194_v5 = vld [vmem:[%s4831_s6 + $0x9e0] sm:$0xf0]  ;;  %v4286_v7 = vld [vmem:[%s4831_s6 + $0x1e4] sm:$0xf0]  ;;  %v3461_v12 = vor.u32 %v4353_v63, %v3458_v0 }
  0x73   : > { %v4001_v53 = vor.u32 %v4493_v45, %v4000_v44  ;;  %v3968_v54 = vld [vmem:[%s4831_s6 + $0x800] sm:$0xf]  ;;  %v4197_v14 = vor.u32 %v4537_v3, %v4194_v5  ;;  %v4465_v16 = vld [vmem:[%s4831_s6 + $0x784] sm:$0xf]  ;;  %v3113_v44 = vor.u32 %v4270_v39, %v3112_v38  ;;  %v4254_v63 = vld [vmem:[%s4831_s6 + $0xe4] sm:$0xf0] }
  0x74   : > { %2278 = vmatpush.bf16.msrb.mxu0 %v4097_v13  ;;  %2304 = vmatpush.bf16.msrb.mxu2 %v3333_v15  ;;  %v4485_v55 = vld [vmem:[%s4831_s6 + $0x81c] sm:$0xf0]  ;;  %v3941_v13 = vor.u32 %v4473_v1, %v3938_v2  ;;  %v3177_v15 = vor.u32 %v4286_v7, %v3176_v6  ;;  %v3906_v17 = vld [vmem:[%s4831_s6 + $0x7a0] sm:$0xf0]  ;;  %v3304_v0 = vld [vmem:[%s4831_s6 + $0x2c8] sm:$0xf] }
  0x75   : > { %v3969_v4 = vor.u32 %v4485_v55, %v3968_v54  ;;  %v4529_v18 = vld [vmem:[%s4831_s6 + $0x984] sm:$0xf]  ;;  %v5002_v25 = vld [vmem:[#allocation1 + $0x24] sm:$0xff]  ;;  %v4318_v1 = vld [vmem:[%s4831_s6 + $0x2e4] sm:$0xf0] }
  0x76   : > { %2317 = vmatpush.bf16.msrb.mxu3 %v3589_v19  ;;  %2292 = vmatpush.bf16.msrb.mxu1 %v3045_v30  ;;  %v3433_v19 = vor.u32 %v4350_v11, %v3432_v10  ;;  %v4162_v20 = vld [vmem:[%s4831_s6 + $0x9a0] sm:$0xf0]  ;;  %v3016_v10 = vld [vmem:[%s4831_s6 + $0x88] sm:$0xf] }
  0x77   : > { %v4165_v30 = vor.u32 %v4529_v18, %v4162_v20  ;;  %v4457_v32 = vld [vmem:[%s4831_s6 + $0x744] sm:$0xf]  ;;  %v4246_v11 = vld [vmem:[%s4831_s6 + $0xa4] sm:$0xf0] }
  0x78   : > { %2279 = vmatpush.bf16.msrb.mxu0 %v4065_v26  ;;  %2305 = vmatpush.bf16.msrb.mxu2 %v3301_v31  ;;  %v3909_v26 = vor.u32 %v4465_v16, %v3906_v17  ;;  %v3145_v31 = vor.u32 %v4278_v22, %v3144_v21  ;;  %v3874_v33 = vld [vmem:[%s4831_s6 + $0x760] sm:$0xf0]  ;;  %v3017_v16 = vor.u32 %v4246_v11, %v3016_v10  ;;  %v2984_v22 = vld [vmem:[%s4831_s6 + $0x48] sm:$0xf] }
  0x79   : > { %v4130_v37 = vld [vmem:[%s4831_s6 + $0x960] sm:$0xf0]  ;;  %v2952_v38 = vld [vmem:[%s4831_s6 + $0x8] sm:$0xf] }
  0x7a   : > { %2318 = vmatpush.bf16.msrb.mxu3 %v3557_v35  ;;  %2293 = vmatpush.bf16.msrb.mxu1 %v3013_v42  ;;  %v4521_v35 = vld [vmem:[%s4831_s6 + $0x944] sm:$0xf]  ;;  %v3877_v42 = vor.u32 %v4457_v32, %v3874_v33  ;;  %v4462_v10 = vld [vmem:[%s4831_s6 + $0x764] sm:$0xf0] }
  0x7b   : > { %v4449_v45 = vld [vmem:[%s4831_s6 + $0x704] sm:$0xf]  ;;  %v4136_v11 = vld [vmem:[%s4831_s6 + $0x948] sm:$0xf] }
  0x7c   : > { %2280 = vmatpush.bf16.msrb.mxu0 %v4033_v41  ;;  %2306 = vmatpush.bf16.msrb.mxu2 %v3269_v43  ;;  %v4334_v41 = vld [vmem:[%s4831_s6 + $0x364] sm:$0xf0]  ;;  %v4133_v43 = vor.u32 %v4521_v35, %v4130_v37  ;;  %v3842_v46 = vld [vmem:[%s4831_s6 + $0x720] sm:$0xf0]  ;;  %v2985_v35 = vor.u32 %v4238_v23, %v2984_v22 }
  0x7d   : > { %v3369_v48 = vor.u32 %v4334_v41, %v3368_v40  ;;  %v4098_v49 = vld [vmem:[%s4831_s6 + $0x920] sm:$0xf0]  ;;  %v3845_v54 = vor.u32 %v4449_v45, %v3842_v46  ;;  %v4230_v40 = vld [vmem:[%s4831_s6 + $0x24] sm:$0xf0] }
  0x7e   : > { %2319 = vmatpush.bf16.msrb.mxu3 %v3525_v47  ;;  %2294 = vmatpush.bf16.msrb.mxu1 %v2981_v56  ;;  %v4513_v47 = vld [vmem:[%s4831_s6 + $0x904] sm:$0xf]  ;;  %v3081_v56 = vor.u32 %v4262_v51, %v3080_v50  ;;  %v3208_v41 = vld [vmem:[%s4831_s6 + $0x208] sm:$0xf]  ;;  %v2953_v51 = vor.u32 %v4230_v40, %v2952_v38 }
  0x7f   : > { %v4101_v55 = vor.u32 %v4513_v47, %v4098_v49  ;;  %v3810_v58 = vld [vmem:[%s4831_s6 + $0x6e0] sm:$0xf0]  ;;  %v3944_v45 = vld [vmem:[%s4831_s6 + $0x7c8] sm:$0xf] }
  0x80   : > { %2281 = vmatpush.bf16.msrb.mxu0 %v4001_v53  ;;  %2307 = vmatpush.bf16.msrb.mxu2 %v3237_v57  ;;  %v4326_v53 = vld [vmem:[%s4831_s6 + $0x324] sm:$0xf0]  ;;  %v4441_v57 = vld [vmem:[%s4831_s6 + $0x6c4] sm:$0xf] }
  0x81   : > { %v4505_v59 = vld [vmem:[%s4831_s6 + $0x8c4] sm:$0xf]  ;;  %v3337_v60 = vor.u32 %v4326_v53, %v3336_v52  ;;  %v3813_v2 = vor.u32 %v4441_v57, %v3810_v58  ;;  %v4478_v47 = vld [vmem:[%s4831_s6 + $0x7e4] sm:$0xf0]  ;;  %v4282_v52 = vld [vmem:[%s4831_s6 + $0x1cc] sm:$0xf] }
  0x82   : > { %2320 = vmatpush.bf16.msrb.mxu3 %v3493_v61  ;;  %2295 = vmatpush.bf16.msrb.mxu1 %v2949_v8  ;;  %v4066_v61 = vld [vmem:[%s4831_s6 + $0x8e0] sm:$0xf0]  ;;  %v3305_v8 = vor.u32 %v4318_v1, %v3304_v0  ;;  %v4542_v49 = vld [vmem:[%s4831_s6 + $0x9e4] sm:$0xf0]  ;;  %v3178_v53 = vld [vmem:[%s4831_s6 + $0x1e8] sm:$0xf0] }
  0x83   : > { %v4069_v3 = vor.u32 %v4505_v59, %v4066_v61  ;;  %v4433_v5 = vld [vmem:[%s4831_s6 + $0x684] sm:$0xf]  ;;  %v3656_v58 = vld [vmem:[%s4831_s6 + $0x588] sm:$0xf]  ;;  %v3181_v61 = vor.u32 %v4282_v52, %v3178_v53  ;;  %v4274_v1 = vld [vmem:[%s4831_s6 + $0x18c] sm:$0xf] }
  0x84   : > { %2282 = vmatpush.bf16.msrb.mxu0 %v3969_v4  ;;  %2308 = vmatpush.bf16.msrb.mxu2 %v3205_v9  ;;  %v3049_v4 = vor.u32 %v4254_v63, %v3048_v62  ;;  %v3778_v6 = vld [vmem:[%s4831_s6 + $0x6a0] sm:$0xf0]  ;;  %v4406_v59 = vld [vmem:[%s4831_s6 + $0x5a4] sm:$0xf0] }
  0x85   : > { %2296 = vmatmul.bf16.vlgmr.msrb.gmra.mxu1 %v4951_v27  ;;  %v4497_v7 = vld [vmem:[%s4831_s6 + $0x884] sm:$0xf]  ;;  %v4470_v62 = vld [vmem:[%s4831_s6 + $0x7a4] sm:$0xf0] }
  0x86   : > { %2321 = vmatpush.bf16.msrb.mxu3 %v3461_v12  ;;  %2340 = vmatpush.bf16.msra.mxu1 %v4197_v14  ;;  %v4034_v9 = vld [vmem:[%s4831_s6 + $0x8a0] sm:$0xf0]  ;;  %v3272_v12 = vld [vmem:[%s4831_s6 + $0x288] sm:$0xf]  ;;  %v3781_v14 = vor.u32 %v4433_v5, %v3778_v6 }
  0x87   : > { %2283 = vmatmul.bf16.vlgmr.msrb.gmra.mxu0 %v5002_v25  ;;  %2309 = vmatmul.bf16.vlgmr.msrb.gmra.mxu2 %v4959_v34  ;;  %v4425_v17 = vld [vmem:[%s4831_s6 + $0x644] sm:$0xf]  ;;  %v4168_v63 = vld [vmem:[%s4831_s6 + $0x988] sm:$0xf] }
  0x88   : > { %2327 = vmatpush.bf16.msra.mxu0 %v3941_v13  ;;  %2353 = vmatpush.bf16.msra.mxu2 %v3177_v15  ;;  %v4310_v13 = vld [vmem:[%s4831_s6 + $0x2a4] sm:$0xf0]  ;;  %v4037_v15 = vor.u32 %v4497_v7, %v4034_v9  ;;  %v3746_v18 = vld [vmem:[%s4831_s6 + $0x660] sm:$0xf0] }
  0x89   : > { %2322 = vmatmul.bf16.vlgmr.msrb.gmra.mxu3 %v4953_v28  ;;  %v3273_v20 = vor.u32 %v4310_v13, %v3272_v12  ;;  %v4002_v21 = vld [vmem:[%s4831_s6 + $0x860] sm:$0xf0]  ;;  %v4534_v0 = vld [vmem:[%s4831_s6 + $0x9a4] sm:$0xf0]  ;;  %v4266_v13 = vld [vmem:[%s4831_s6 + $0x14c] sm:$0xf] }
  0x8a   : > { %2366 = vmatpush.bf16.msra.mxu3 %v3433_v19  ;;  %2341 = vmatpush.bf16.msra.mxu1 %v4165_v30  ;;  %v4489_v19 = vld [vmem:[%s4831_s6 + $0x844] sm:$0xf]  ;;  %v3749_v30 = vor.u32 %v4425_v17, %v3746_v18  ;;  %v4169_v5 = vor.u32 %v4534_v0, %v4168_v63  ;;  %v3624_v6 = vld [vmem:[%s4831_s6 + $0x548] sm:$0xf] }
  0x8b   : > { %v3714_v32 = vld [vmem:[%s4831_s6 + $0x620] sm:$0xf0]  ;;  %v4005_v33 = vor.u32 %v4489_v19, %v4002_v21  ;;  %v4398_v7 = vld [vmem:[%s4831_s6 + $0x564] sm:$0xf0] }
  0x8c   : > { %2328 = vmatpush.bf16.msra.mxu0 %v3909_v26  ;;  %2354 = vmatpush.bf16.msra.mxu2 %v3145_v31  ;;  %v4302_v26 = vld [vmem:[%s4831_s6 + $0x264] sm:$0xf0]  ;;  %v4417_v31 = vld [vmem:[%s4831_s6 + $0x604] sm:$0xf] }
  0x8d   : > { %v3970_v37 = vld [vmem:[%s4831_s6 + $0x820] sm:$0xf0]  ;;  %v3241_v39 = vor.u32 %v4302_v26, %v3240_v24  ;;  %v3717_v46 = vor.u32 %v4417_v31, %v3714_v32  ;;  %v4526_v12 = vld [vmem:[%s4831_s6 + $0x964] sm:$0xf0]  ;;  %v4258_v26 = vld [vmem:[%s4831_s6 + $0x10c] sm:$0xf] }
  0x8e   : > { %2367 = vmatpush.bf16.msra.mxu3 %v3401_v36  ;;  %2342 = vmatpush.bf16.msra.mxu1 %v4133_v43  ;;  %v4481_v36 = vld [vmem:[%s4831_s6 + $0x804] sm:$0xf]  ;;  %v3688_v43 = vld [vmem:[%s4831_s6 + $0x5c8] sm:$0xf]  ;;  %v4137_v17 = vor.u32 %v4526_v12, %v4136_v11 }
  0x8f   : > { %v3973_v50 = vor.u32 %v4481_v36, %v3970_v37  ;;  %v3592_v18 = vld [vmem:[%s4831_s6 + $0x508] sm:$0xf] }
  0x90   : > { %2329 = vmatpush.bf16.msra.mxu0 %v3877_v42  ;;  %2355 = vmatpush.bf16.msra.mxu2 %v3113_v44  ;;  %v4294_v42 = vld [vmem:[%s4831_s6 + $0x224] sm:$0xf0] }
  0x91   : > { %v4414_v44 = vld [vmem:[%s4831_s6 + $0x5e4] sm:$0xf0] }
  0x92   : > { %2368 = vmatpush.bf16.msra.mxu3 %v3369_v48  ;;  %2343 = vmatpush.bf16.msra.mxu1 %v4101_v55  ;;  %v4200_v48 = vld [vmem:[%s4831_s6 + $0x9c8] sm:$0xf]  ;;  %v3689_v55 = vor.u32 %v4414_v44, %v3688_v43  ;;  %v3050_v43 = vld [vmem:[%s4831_s6 + $0xe8] sm:$0xf0] }
  0x93   : > { %v4201_v57 = vor.u32 %v4542_v49, %v4200_v48  ;;  %v4390_v19 = vld [vmem:[%s4831_s6 + $0x524] sm:$0xf0] }
  0x94   : > { %2330 = vmatpush.bf16.msra.mxu0 %v3845_v54  ;;  %2356 = vmatpush.bf16.msra.mxu2 %v3081_v56  ;;  %v3209_v54 = vor.u32 %v4294_v42, %v3208_v41  ;;  %v3945_v56 = vor.u32 %v4478_v47, %v3944_v45  ;;  %v4454_v22 = vld [vmem:[%s4831_s6 + $0x724] sm:$0xf0]  ;;  %v3593_v31 = vor.u32 %v4390_v19, %v3592_v18  ;;  %v4250_v42 = vld [vmem:[%s4831_s6 + $0xcc] sm:$0xf] }
  0x95   : > { %v4104_v23 = vld [vmem:[%s4831_s6 + $0x908] sm:$0xf]  ;;  %v4410_v18 = vld [vmem:[%s4831_s6 + $0x5cc] sm:$0xf] }
  0x96   : > { %2369 = vmatpush.bf16.msra.mxu3 %v3337_v60  ;;  %2344 = vmatpush.bf16.msra.mxu1 %v4069_v3  ;;  %v3912_v60 = vld [vmem:[%s4831_s6 + $0x788] sm:$0xf]  ;;  %v3657_v3 = vor.u32 %v4406_v59, %v3656_v58 }
  0x97   : > { %v4518_v24 = vld [vmem:[%s4831_s6 + $0x924] sm:$0xf0] }
  0x98   : > { %2331 = vmatpush.bf16.msra.mxu0 %v3813_v2  ;;  %2357 = vmatpush.bf16.msra.mxu2 %v3049_v4  ;;  %v3146_v2 = vld [vmem:[%s4831_s6 + $0x1a8] sm:$0xf0]  ;;  %v3913_v4 = vor.u32 %v4470_v62, %v3912_v60  ;;  %v4382_v36 = vld [vmem:[%s4831_s6 + $0x4e4] sm:$0xf0] }
  0x99   : > { %v3149_v9 = vor.u32 %v4274_v1, %v3146_v2  ;;  %v3816_v37 = vld [vmem:[%s4831_s6 + $0x6c8] sm:$0xf]  ;;  %v4234_v2 = vld [vmem:[%s4831_s6 + $0x4c] sm:$0xf] }
  0x9a   : > { %2370 = vmatpush.bf16.msra.mxu3 %v3305_v8  ;;  %2345 = vmatpush.bf16.msra.mxu1 %v4037_v15  ;;  %v3880_v8 = vld [vmem:[%s4831_s6 + $0x748] sm:$0xf]  ;;  %v3625_v15 = vor.u32 %v4398_v7, %v3624_v6 }
  0x9b   : > { %v4072_v40 = vld [vmem:[%s4831_s6 + $0x8c8] sm:$0xf] }
  0x9c   : > { %2332 = vmatpush.bf16.msra.mxu0 %v3781_v14  ;;  %2358 = vmatpush.bf16.msra.mxu2 %v3017_v16  ;;  %v3114_v14 = vld [vmem:[%s4831_s6 + $0x168] sm:$0xf0]  ;;  %v3881_v16 = vor.u32 %v4462_v10, %v3880_v8  ;;  %v4510_v41 = vld [vmem:[%s4831_s6 + $0x8e4] sm:$0xf0] }
  0x9d   : > { %v3117_v21 = vor.u32 %v4266_v13, %v3114_v14  ;;  %v3528_v47 = vld [vmem:[%s4831_s6 + $0x488] sm:$0xf]  ;;  %v4226_v14 = vld [vmem:[%s4831_s6 + $0xc] sm:$0xf] }
  0x9e   : > { %2371 = vmatpush.bf16.msra.mxu3 %v3273_v20  ;;  %2346 = vmatpush.bf16.msra.mxu1 %v4005_v33  ;;  %v3848_v20 = vld [vmem:[%s4831_s6 + $0x708] sm:$0xf]  ;;  %v4105_v33 = vor.u32 %v4518_v24, %v4104_v23 }
  0x9f   : > { %v3849_v32 = vor.u32 %v4454_v22, %v3848_v20  ;;  %v4374_v48 = vld [vmem:[%s4831_s6 + $0x4a4] sm:$0xf0]  ;;  %v3690_v20 = vld [vmem:[%s4831_s6 + $0x5e8] sm:$0xf0] }
  0xa0   : > { %2333 = vmatpush.bf16.msra.mxu0 %v3749_v30  ;;  %2359 = vmatpush.bf16.msra.mxu2 %v2985_v35  ;;  %v3082_v30 = vld [vmem:[%s4831_s6 + $0x128] sm:$0xf0]  ;;  %v3560_v35 = vld [vmem:[%s4831_s6 + $0x4c8] sm:$0xf] }
  0xa1   : > { %v3085_v38 = vor.u32 %v4258_v26, %v3082_v30  ;;  %v3561_v44 = vor.u32 %v4382_v36, %v3560_v35  ;;  %v3784_v49 = vld [vmem:[%s4831_s6 + $0x688] sm:$0xf]  ;;  %v3946_v22 = vld [vmem:[%s4831_s6 + $0x7e8] sm:$0xf0] }
  0xa2   : > { %2372 = vmatpush.bf16.msra.mxu3 %v3241_v39  ;;  %2347 = vmatpush.bf16.msra.mxu1 %v3973_v50  ;;  %v4446_v39 = vld [vmem:[%s4831_s6 + $0x6e4] sm:$0xf0]  ;;  %v3053_v50 = vor.u32 %v4250_v42, %v3050_v43  ;;  %v4538_v26 = vld [vmem:[%s4831_s6 + $0x9cc] sm:$0xf] }
  0xa3   : > { %v3817_v45 = vor.u32 %v4446_v39, %v3816_v37  ;;  %v4040_v52 = vld [vmem:[%s4831_s6 + $0x888] sm:$0xf]  ;;  %v4202_v30 = vld [vmem:[%s4831_s6 + $0x9e8] sm:$0xf0] }
  0xa4   : > { %2334 = vmatpush.bf16.msra.mxu0 %v3717_v46  ;;  %2360 = vmatpush.bf16.msra.mxu2 %v2953_v51  ;;  %v4073_v46 = vor.u32 %v4510_v41, %v4072_v40  ;;  %v4438_v51 = vld [vmem:[%s4831_s6 + $0x6a4] sm:$0xf0]  ;;  %v4338_v36 = vld [vmem:[%s4831_s6 + $0x38c] sm:$0xf]  ;;  %v4205_v39 = vor.u32 %v4538_v26, %v4202_v30 }
  0xa5   : > { %2348 = vmatmul.bf16.vlgmr.msra.gmra.mxu1 %v5002_v25  ;;  %v4502_v53 = vld [vmem:[%s4831_s6 + $0x8a4] sm:$0xf0]  ;;  %v3402_v37 = vld [vmem:[%s4831_s6 + $0x3a8] sm:$0xf0] }
  0xa6   : > { %2373 = vmatpush.bf16.msra.mxu3 %v3209_v54  ;;  %2392 = vmatpush.bf16.msrb.mxu1 %v3945_v56  ;;  %v4242_v54 = vld [vmem:[%s4831_s6 + $0x8c] sm:$0xf]  ;;  %v3529_v56 = vor.u32 %v4374_v48, %v3528_v47  ;;  %v4041_v58 = vor.u32 %v4502_v53, %v4040_v52  ;;  %v3496_v59 = vld [vmem:[%s4831_s6 + $0x448] sm:$0xf] }
  0xa7   : > { %2335 = vmatmul.bf16.vlgmr.msra.gmra.mxu0 %v4955_v29  ;;  %2361 = vmatmul.bf16.vlgmr.msra.gmra.mxu2 %v4951_v27  ;;  %v4366_v60 = vld [vmem:[%s4831_s6 + $0x464] sm:$0xf0]  ;;  %v3658_v40 = vld [vmem:[%s4831_s6 + $0x5a8] sm:$0xf0] }
  0xa8   : > { %2379 = vmatpush.bf16.msrb.mxu0 %v3689_v55  ;;  %2405 = vmatpush.bf16.msrb.mxu2 %v4201_v57  ;;  %v3018_v55 = vld [vmem:[%s4831_s6 + $0xa8] sm:$0xf0]  ;;  %v3785_v57 = vor.u32 %v4438_v51, %v3784_v49  ;;  %v4430_v63 = vld [vmem:[%s4831_s6 + $0x664] sm:$0xf0] }
  0xa9   : > { %2374 = vmatmul.bf16.vlgmr.msra.gmra.mxu3 %v4959_v34  ;;  %v3021_v62 = vor.u32 %v4242_v54, %v3018_v55  ;;  %v4008_v0 = vld [vmem:[%s4831_s6 + $0x848] sm:$0xf]  ;;  %v4466_v41 = vld [vmem:[%s4831_s6 + $0x78c] sm:$0xf] }
  0xaa   : > { %2418 = vmatpush.bf16.msrb.mxu3 %v3181_v61  ;;  %2393 = vmatpush.bf16.msrb.mxu1 %v3913_v4  ;;  %v3752_v61 = vld [vmem:[%s4831_s6 + $0x648] sm:$0xf]  ;;  %v3497_v4 = vor.u32 %v4366_v60, %v3496_v59  ;;  %v3914_v42 = vld [vmem:[%s4831_s6 + $0x7a8] sm:$0xf0] }
  0xab   : > { %v4494_v1 = vld [vmem:[%s4831_s6 + $0x864] sm:$0xf0]  ;;  %v3753_v7 = vor.u32 %v4430_v63, %v3752_v61  ;;  %v4530_v43 = vld [vmem:[%s4831_s6 + $0x98c] sm:$0xf]  ;;  %v3917_v47 = vor.u32 %v4466_v41, %v3914_v42 }
  0xac   : > { %2380 = vmatpush.bf16.msrb.mxu0 %v3657_v3  ;;  %2406 = vmatpush.bf16.msrb.mxu2 %v4169_v5  ;;  %v2986_v3 = vld [vmem:[%s4831_s6 + $0x68] sm:$0xf0]  ;;  %v3464_v5 = vld [vmem:[%s4831_s6 + $0x408] sm:$0xf]  ;;  %v4009_v8 = vor.u32 %v4494_v1, %v4008_v0 }
  0xad   : > { %v4358_v6 = vld [vmem:[%s4831_s6 + $0x424] sm:$0xf0]  ;;  %v2989_v12 = vor.u32 %v4234_v2, %v2986_v3  ;;  %v4330_v48 = vld [vmem:[%s4831_s6 + $0x34c] sm:$0xf] }
  0xae   : > { %2419 = vmatpush.bf16.msrb.mxu3 %v3149_v9  ;;  %2394 = vmatpush.bf16.msrb.mxu1 %v3881_v16  ;;  %v3720_v9 = vld [vmem:[%s4831_s6 + $0x608] sm:$0xf]  ;;  %v4346_v16 = vld [vmem:[%s4831_s6 + $0x3cc] sm:$0xf]  ;;  %v3465_v19 = vor.u32 %v4358_v6, %v3464_v5 }
  0xaf   : > { %v4422_v10 = vld [vmem:[%s4831_s6 + $0x624] sm:$0xf0]  ;;  %v3370_v49 = vld [vmem:[%s4831_s6 + $0x368] sm:$0xf0] }
  0xb0   : > { %2381 = vmatpush.bf16.msrb.mxu0 %v3625_v15  ;;  %2407 = vmatpush.bf16.msrb.mxu2 %v4137_v17  ;;  %v3976_v11 = vld [vmem:[%s4831_s6 + $0x808] sm:$0xf]  ;;  %v2954_v15 = vld [vmem:[%s4831_s6 + $0x28] sm:$0xf0]  ;;  %v3721_v23 = vor.u32 %v4422_v10, %v3720_v9 }
  0xb1   : > { %v4486_v13 = vld [vmem:[%s4831_s6 + $0x824] sm:$0xf0]  ;;  %v3434_v17 = vld [vmem:[%s4831_s6 + $0x3e8] sm:$0xf0] }
  0xb2   : > { %2420 = vmatpush.bf16.msrb.mxu3 %v3117_v21  ;;  %2395 = vmatpush.bf16.msrb.mxu1 %v3849_v32  ;;  %v4474_v21 = vld [vmem:[%s4831_s6 + $0x7cc] sm:$0xf]  ;;  %v3977_v24 = vor.u32 %v4486_v13, %v3976_v11  ;;  %v3437_v32 = vor.u32 %v4346_v16, %v3434_v17 }
  0xb3   : > { %v3949_v35 = vor.u32 %v4474_v21, %v3946_v22  ;;  %v3626_v52 = vld [vmem:[%s4831_s6 + $0x568] sm:$0xf0] }
  0xb4   : > { %2382 = vmatpush.bf16.msrb.mxu0 %v3593_v31  ;;  %2408 = vmatpush.bf16.msrb.mxu2 %v4105_v33  ;;  %v2957_v31 = vor.u32 %v4226_v14, %v2954_v15  ;;  %v3693_v33 = vor.u32 %v4410_v18, %v3690_v20  ;;  %v4458_v53 = vld [vmem:[%s4831_s6 + $0x74c] sm:$0xf] }
  0xb5   : > { %v3882_v54 = vld [vmem:[%s4831_s6 + $0x768] sm:$0xf0] }
  0xb6   : > { %2421 = vmatpush.bf16.msrb.mxu3 %v3085_v38  ;;  %2396 = vmatpush.bf16.msrb.mxu1 %v3817_v45  ;;  %v4402_v38 = vld [vmem:[%s4831_s6 + $0x58c] sm:$0xf]  ;;  %v3405_v45 = vor.u32 %v4338_v36, %v3402_v37  ;;  %v3885_v59 = vor.u32 %v4458_v53, %v3882_v54 }
  0xb7   : > { %v4522_v55 = vld [vmem:[%s4831_s6 + $0x94c] sm:$0xf] }
  0xb8   : > { %2383 = vmatpush.bf16.msrb.mxu0 %v3561_v44  ;;  %2409 = vmatpush.bf16.msrb.mxu2 %v4073_v46  ;;  %v4170_v44 = vld [vmem:[%s4831_s6 + $0x9a8] sm:$0xf0]  ;;  %v3661_v46 = vor.u32 %v4402_v38, %v3658_v40 }
  0xb9   : > { %v4173_v51 = vor.u32 %v4530_v43, %v4170_v44  ;;  %v4322_v60 = vld [vmem:[%s4831_s6 + $0x30c] sm:$0xf] }
  0xba   : > { %2422 = vmatpush.bf16.msrb.mxu3 %v3053_v50  ;;  %2397 = vmatpush.bf16.msrb.mxu1 %v3785_v57  ;;  %v4394_v50 = vld [vmem:[%s4831_s6 + $0x54c] sm:$0xf]  ;;  %v3373_v57 = vor.u32 %v4330_v48, %v3370_v49 }
  0xbb   : > { %v3338_v61 = vld [vmem:[%s4831_s6 + $0x328] sm:$0xf0] }
  0xbc   : > { %2384 = vmatpush.bf16.msrb.mxu0 %v3529_v56  ;;  %2410 = vmatpush.bf16.msrb.mxu2 %v4041_v58  ;;  %v4138_v56 = vld [vmem:[%s4831_s6 + $0x968] sm:$0xf0]  ;;  %v3629_v58 = vor.u32 %v4394_v50, %v3626_v52 }
  0xbd   : > { %v4141_v63 = vor.u32 %v4522_v55, %v4138_v56  ;;  %v3594_v0 = vld [vmem:[%s4831_s6 + $0x528] sm:$0xf0] }
  0xbe   : > { %2423 = vmatpush.bf16.msrb.mxu3 %v3021_v62  ;;  %2398 = vmatpush.bf16.msrb.mxu1 %v3753_v7  ;;  %v4386_v62 = vld [vmem:[%s4831_s6 + $0x50c] sm:$0xf] }
  0xbf   : > { %v4450_v1 = vld [vmem:[%s4831_s6 + $0x70c] sm:$0xf]  ;;  %v3597_v5 = vor.u32 %v4386_v62, %v3594_v0  ;;  %v3696_v62 = vld [vmem:[%s4831_s6 + $0x5d0] sm:$0xf] }
  0xc0   : > { %2385 = vmatpush.bf16.msrb.mxu0 %v3497_v4  ;;  %2411 = vmatpush.bf16.msrb.mxu2 %v4009_v8  ;;  %v3850_v2 = vld [vmem:[%s4831_s6 + $0x728] sm:$0xf0]  ;;  %v3341_v4 = vor.u32 %v4322_v60, %v3338_v61  ;;  %v4351_v61 = vld [vmem:[%s4831_s6 + $0x3ec] sm:$0xf0] }
  0xc1   : > { %v4514_v3 = vld [vmem:[%s4831_s6 + $0x90c] sm:$0xf]  ;;  %v3853_v6 = vor.u32 %v4450_v1, %v3850_v2  ;;  %v3952_v2 = vld [vmem:[%s4831_s6 + $0x7d0] sm:$0xf] }
  0xc2   : > { %2424 = vmatpush.bf16.msrb.mxu3 %v2989_v12  ;;  %2399 = vmatpush.bf16.msrb.mxu1 %v3721_v23  ;;  %v4314_v7 = vld [vmem:[%s4831_s6 + $0x2cc] sm:$0xf] }
  0xc3   : > { %v3306_v8 = vld [vmem:[%s4831_s6 + $0x2e8] sm:$0xf0] }
  0xc4   : > { %2386 = vmatpush.bf16.msrb.mxu0 %v3465_v19  ;;  %2412 = vmatpush.bf16.msrb.mxu2 %v3977_v24  ;;  %v4378_v9 = vld [vmem:[%s4831_s6 + $0x4cc] sm:$0xf]  ;;  %v3309_v16 = vor.u32 %v4314_v7, %v3306_v8  ;;  %v3152_v7 = vld [vmem:[%s4831_s6 + $0x190] sm:$0xf] }
  0xc5   : > { %2400 = vmatmul.bf16.vlgmr.msrb.gmra.mxu1 %v4955_v29  ;;  %v3562_v11 = vld [vmem:[%s4831_s6 + $0x4e8] sm:$0xf0]  ;;  %v4279_v8 = vld [vmem:[%s4831_s6 + $0x1ac] sm:$0xf0] }
  0xc6   : > { %2425 = vmatpush.bf16.msrb.mxu3 %v2957_v31  ;;  %2444 = vmatpush.bf16.msra.mxu1 %v3693_v33  ;;  %v4442_v12 = vld [vmem:[%s4831_s6 + $0x6cc] sm:$0xf]  ;;  %v3565_v17 = vor.u32 %v4378_v9, %v3562_v11  ;;  %v3408_v9 = vld [vmem:[%s4831_s6 + $0x390] sm:$0xf] }
  0xc7   : > { %2413 = vmatmul.bf16.vlgmr.msrb.gmra.mxu2 %v5002_v25  ;;  %2387 = vmatmul.bf16.vlgmr.msrb.gmra.mxu0 %v4953_v28  ;;  %v3818_v13 = vld [vmem:[%s4831_s6 + $0x6e8] sm:$0xf0]  ;;  %v4343_v11 = vld [vmem:[%s4831_s6 + $0x3ac] sm:$0xf0] }
  0xc8   : > { %2431 = vmatpush.bf16.msra.mxu0 %v3437_v32  ;;  %2457 = vmatpush.bf16.msra.mxu2 %v3949_v35  ;;  %v4506_v14 = vld [vmem:[%s4831_s6 + $0x8cc] sm:$0xf]  ;;  %v3821_v18 = vor.u32 %v4442_v12, %v3818_v13  ;;  %v3664_v12 = vld [vmem:[%s4831_s6 + $0x590] sm:$0xf] }
  0xc9   : > { %2426 = vmatmul.bf16.vlgmr.msrb.gmra.mxu3 %v4951_v27  ;;  %v4106_v27 = vld [vmem:[%s4831_s6 + $0x928] sm:$0xf0]  ;;  %v4407_v13 = vld [vmem:[%s4831_s6 + $0x5ac] sm:$0xf0] }
  0xca   : > { %2470 = vmatpush.bf16.msra.mxu3 %v4205_v39  ;;  %2445 = vmatpush.bf16.msra.mxu1 %v3661_v46  ;;  %v4109_v10 = vor.u32 %v4514_v3, %v4106_v27  ;;  %v4074_v15 = vld [vmem:[%s4831_s6 + $0x8e8] sm:$0xf0]  ;;  %v4479_v3 = vld [vmem:[%s4831_s6 + $0x7ec] sm:$0xf0] }
  0xcb   : > { %v4306_v19 = vld [vmem:[%s4831_s6 + $0x28c] sm:$0xf]  ;;  %v4077_v22 = vor.u32 %v4506_v14, %v4074_v15  ;;  %v3920_v14 = vld [vmem:[%s4831_s6 + $0x790] sm:$0xf] }
  0xcc   : > { %2432 = vmatpush.bf16.msra.mxu0 %v3405_v45  ;;  %2458 = vmatpush.bf16.msra.mxu2 %v3917_v47  ;;  %v3274_v20 = vld [vmem:[%s4831_s6 + $0x2a8] sm:$0xf0]  ;;  %v4471_v15 = vld [vmem:[%s4831_s6 + $0x7ac] sm:$0xf0] }
  0xcd   : > { %v4370_v21 = vld [vmem:[%s4831_s6 + $0x48c] sm:$0xf]  ;;  %v3277_v32 = vor.u32 %v4306_v19, %v3274_v20  ;;  %v3120_v19 = vld [vmem:[%s4831_s6 + $0x150] sm:$0xf] }
  0xce   : > { %2471 = vmatpush.bf16.msra.mxu3 %v4173_v51  ;;  %2446 = vmatpush.bf16.msra.mxu1 %v3629_v58  ;;  %v3530_v23 = vld [vmem:[%s4831_s6 + $0x4a8] sm:$0xf0]  ;;  %v4287_v58 = vld [vmem:[%s4831_s6 + $0x1ec] sm:$0xf0] }
  0xcf   : > { %v4434_v24 = vld [vmem:[%s4831_s6 + $0x68c] sm:$0xf]  ;;  %v3533_v33 = vor.u32 %v4370_v21, %v3530_v23  ;;  %v4271_v20 = vld [vmem:[%s4831_s6 + $0x16c] sm:$0xf0] }
  0xd0   : > { %2433 = vmatpush.bf16.msra.mxu0 %v3373_v57  ;;  %2459 = vmatpush.bf16.msra.mxu2 %v3885_v59  ;;  %v3786_v26 = vld [vmem:[%s4831_s6 + $0x6a8] sm:$0xf0]  ;;  %v3184_v57 = vld [vmem:[%s4831_s6 + $0x1d0] sm:$0xf] }
  0xd1   : > { %v4498_v30 = vld [vmem:[%s4831_s6 + $0x88c] sm:$0xf]  ;;  %v3789_v35 = vor.u32 %v4434_v24, %v3786_v26  ;;  %v3440_v59 = vld [vmem:[%s4831_s6 + $0x3d0] sm:$0xf] }
  0xd2   : > { %2472 = vmatpush.bf16.msra.mxu3 %v4141_v63  ;;  %2447 = vmatpush.bf16.msra.mxu1 %v3597_v5  ;;  %v4042_v31 = vld [vmem:[%s4831_s6 + $0x8a8] sm:$0xf0]  ;;  %v4415_v63 = vld [vmem:[%s4831_s6 + $0x5ec] sm:$0xf0]  ;;  %v3441_v5 = vor.u32 %v4351_v61, %v3440_v59 }
  0xd3   : > { %v4298_v36 = vld [vmem:[%s4831_s6 + $0x24c] sm:$0xf]  ;;  %v4045_v39 = vor.u32 %v4498_v30, %v4042_v31  ;;  %v3376_v21 = vld [vmem:[%s4831_s6 + $0x350] sm:$0xf] }
  0xd4   : > { %2434 = vmatpush.bf16.msra.mxu0 %v3341_v4  ;;  %2460 = vmatpush.bf16.msra.mxu2 %v3853_v6  ;;  %v3242_v37 = vld [vmem:[%s4831_s6 + $0x268] sm:$0xf0]  ;;  %v3185_v4 = vor.u32 %v4287_v58, %v3184_v57  ;;  %v3697_v6 = vor.u32 %v4415_v63, %v3696_v62  ;;  %v4335_v23 = vld [vmem:[%s4831_s6 + $0x36c] sm:$0xf0] }
  0xd5   : > { %v4362_v38 = vld [vmem:[%s4831_s6 + $0x44c] sm:$0xf]  ;;  %v3245_v45 = vor.u32 %v4298_v36, %v3242_v37  ;;  %v3632_v24 = vld [vmem:[%s4831_s6 + $0x550] sm:$0xf] }
  0xd6   : > { %2473 = vmatpush.bf16.msra.mxu3 %v4109_v10  ;;  %2448 = vmatpush.bf16.msra.mxu1 %v3565_v17  ;;  %v3498_v40 = vld [vmem:[%s4831_s6 + $0x468] sm:$0xf0]  ;;  %v3953_v10 = vor.u32 %v4479_v3, %v3952_v2  ;;  %v3409_v17 = vor.u32 %v4343_v11, %v3408_v9  ;;  %v4399_v26 = vld [vmem:[%s4831_s6 + $0x56c] sm:$0xf0] }
  0xd7   : > { %v4426_v41 = vld [vmem:[%s4831_s6 + $0x64c] sm:$0xf]  ;;  %v3501_v48 = vor.u32 %v4362_v38, %v3498_v40  ;;  %v3888_v30 = vld [vmem:[%s4831_s6 + $0x750] sm:$0xf] }
  0xd8   : > { %2435 = vmatpush.bf16.msra.mxu0 %v3309_v16  ;;  %2461 = vmatpush.bf16.msra.mxu2 %v3821_v18  ;;  %v3754_v42 = vld [vmem:[%s4831_s6 + $0x668] sm:$0xf0]  ;;  %v3153_v16 = vor.u32 %v4279_v8, %v3152_v7  ;;  %v3665_v18 = vor.u32 %v4407_v13, %v3664_v12  ;;  %v4463_v31 = vld [vmem:[%s4831_s6 + $0x76c] sm:$0xf0] }
  0xd9   : > { %v4490_v43 = vld [vmem:[%s4831_s6 + $0x84c] sm:$0xf]  ;;  %v3757_v49 = vor.u32 %v4426_v41, %v3754_v42  ;;  %v3344_v36 = vld [vmem:[%s4831_s6 + $0x310] sm:$0xf] }
  0xda   : > { %2474 = vmatpush.bf16.msra.mxu3 %v4077_v22  ;;  %v4010_v44 = vld [vmem:[%s4831_s6 + $0x868] sm:$0xf0]  ;;  %2449 = vmatpush.bf16.msra.mxu1 %v3533_v33  ;;  %v3921_v22 = vor.u32 %v4471_v15, %v3920_v14  ;;  %v3633_v33 = vor.u32 %v4399_v26, %v3632_v24  ;;  %v4327_v37 = vld [vmem:[%s4831_s6 + $0x32c] sm:$0xf0] }
  0xdb   : > { %v4290_v46 = vld [vmem:[%s4831_s6 + $0x20c] sm:$0xf]  ;;  %v4013_v53 = vor.u32 %v4490_v43, %v4010_v44  ;;  %v3600_v38 = vld [vmem:[%s4831_s6 + $0x510] sm:$0xf]  ;;  %v3345_v42 = vor.u32 %v4327_v37, %v3344_v36  ;;  %v4347_v37 = vld [vmem:[%s4831_s6 + $0x3d4] sm:$0xf] }
  0xdc   : > { %2436 = vmatpush.bf16.msra.mxu0 %v3277_v32  ;;  %v3210_v47 = vld [vmem:[%s4831_s6 + $0x228] sm:$0xf0]  ;;  %2462 = vmatpush.bf16.msra.mxu2 %v3789_v35  ;;  %v3377_v32 = vor.u32 %v4335_v23, %v3376_v21  ;;  %v3088_v35 = vld [vmem:[%s4831_s6 + $0x110] sm:$0xf] }
  0xdd   : > { %v4354_v50 = vld [vmem:[%s4831_s6 + $0x40c] sm:$0xf]  ;;  %v3213_v60 = vor.u32 %v4290_v46, %v3210_v47  ;;  %v4455_v40 = vld [vmem:[%s4831_s6 + $0x72c] sm:$0xf0] }
  0xde   : > { %v3466_v51 = vld [vmem:[%s4831_s6 + $0x428] sm:$0xf0]  ;;  %2475 = vmatpush.bf16.msra.mxu3 %v4045_v39  ;;  %2450 = vmatpush.bf16.msra.mxu1 %v3501_v48  ;;  %v4391_v39 = vld [vmem:[%s4831_s6 + $0x52c] sm:$0xf0] }
  0xdf   : > { %v4418_v52 = vld [vmem:[%s4831_s6 + $0x60c] sm:$0xf]  ;;  %v3469_v0 = vor.u32 %v4354_v50, %v3466_v51  ;;  %v3601_v43 = vor.u32 %v4391_v39, %v3600_v38  ;;  %v3056_v44 = vld [vmem:[%s4831_s6 + $0xd0] sm:$0xf]  ;;  %v3442_v38 = vld [vmem:[%s4831_s6 + $0x3f0] sm:$0xf0] }
  0xe0   : > { %v3722_v54 = vld [vmem:[%s4831_s6 + $0x628] sm:$0xf0]  ;;  %2437 = vmatpush.bf16.msra.mxu0 %v3245_v45  ;;  %2463 = vmatpush.bf16.msra.mxu2 %v3757_v49  ;;  %v4255_v45 = vld [vmem:[%s4831_s6 + $0xec] sm:$0xf0] }
  0xe1   : > { %v4482_v55 = vld [vmem:[%s4831_s6 + $0x80c] sm:$0xf]  ;;  %v3725_v1 = vor.u32 %v4418_v52, %v3722_v54  ;;  %v3312_v46 = vld [vmem:[%s4831_s6 + $0x2d0] sm:$0xf] }
  0xe2   : > { %v3978_v56 = vld [vmem:[%s4831_s6 + $0x828] sm:$0xf0]  ;;  %2476 = vmatpush.bf16.msra.mxu3 %v4013_v53  ;;  %2451 = vmatpush.bf16.msra.mxu1 %v3469_v0  ;;  %v4319_v48 = vld [vmem:[%s4831_s6 + $0x2ec] sm:$0xf0]  ;;  %v3057_v53 = vor.u32 %v4255_v45, %v3056_v44  ;;  %v2232_v14 = vpop.f32.mrf.mxu0 }
  0xe3   : > { %v3981_v27 = vor.u32 %v4482_v55, %v3978_v56  ;;  %v3568_v49 = vld [vmem:[%s4831_s6 + $0x4d0] sm:$0xf]  ;;  %v3313_v55 = vor.u32 %v4319_v48, %v3312_v46  ;;  %v5240_v59 = vld [vmem:[%s4837_s9] sm:$0xff] }
  0xe4   : > { %2438 = vmatpush.bf16.msra.mxu0 %v3213_v60  ;;  %2464 = vmatpush.bf16.msra.mxu2 %v3725_v1  ;;  %v4383_v50 = vld [vmem:[%s4831_s6 + $0x4ec] sm:$0xf0]  ;;  %v595_v3 = vperm.slane %v5240_v59, 0 }
  0xe5   : > { %2452 = vmatmul.bf16.vlgmr.msra.gmra.mxu1 %v4953_v28  ;;  %v3856_v28 = vld [vmem:[%s4831_s6 + $0x710] sm:$0xf]  ;;  %v3569_v56 = vor.u32 %v4383_v50, %v3568_v49  ;;  %v4275_v50 = vld [vmem:[%s4831_s6 + $0x194] sm:$0xf] }
  0xe6   : > { %2477 = vmatpush.bf16.msra.mxu3 %v3981_v27  ;;  %2496 = vmatpush.bf16.msrb.mxu1 %v3441_v5  ;;  %v3857_v47 = vor.u32 %v4455_v40, %v3856_v28  ;;  %v3824_v51 = vld [vmem:[%s4831_s6 + $0x6d0] sm:$0xf]  ;;  %v4411_v40 = vld [vmem:[%s4831_s6 + $0x5d4] sm:$0xf] }
  0xe7   : > { %2465 = vmatmul.bf16.vlgmr.msra.gmra.mxu2 %v4955_v29  ;;  %2439 = vmatmul.bf16.vlgmr.msra.gmra.mxu0 %v4959_v34  ;;  %v3121_v29 = vor.u32 %v4271_v20, %v3120_v19  ;;  %v4263_v34 = vld [vmem:[%s4831_s6 + $0x12c] sm:$0xf0] }
  0xe8   : > { %2483 = vmatpush.bf16.msrb.mxu0 %v3185_v4  ;;  %2509 = vmatpush.bf16.msrb.mxu2 %v3697_v6  ;;  %v3089_v41 = vor.u32 %v4263_v34, %v3088_v35  ;;  %v4447_v52 = vld [vmem:[%s4831_s6 + $0x6ec] sm:$0xf0]  ;;  %v4283_v34 = vld [vmem:[%s4831_s6 + $0x1d4] sm:$0xf] }
  0xe9   : > { %2478 = vmatmul.bf16.vlgmr.msra.gmra.mxu3 %v5002_v25  ;;  %v3889_v25 = vor.u32 %v4463_v31, %v3888_v30  ;;  %v3024_v54 = vld [vmem:[%s4831_s6 + $0x90] sm:$0xf]  ;;  %v3825_v60 = vor.u32 %v4447_v52, %v3824_v51 }
  0xea   : > { %2522 = vmatpush.bf16.msrb.mxu3 %v3953_v10  ;;  %2497 = vmatpush.bf16.msrb.mxu1 %v3409_v17  ;;  %v4247_v57 = vld [vmem:[%s4831_s6 + $0xac] sm:$0xf0]  ;;  %v2258_v44 = vpop.f32.mrf.mxu2  ;;  %v2234_v52 = vpop.f32.mrf.mxu0 }
  0xeb   : > { %v3280_v58 = vld [vmem:[%s4831_s6 + $0x290] sm:$0xf]  ;;  %v3025_v2 = vor.u32 %v4247_v57, %v3024_v54  ;;  %v3154_v54 = vld [vmem:[%s4831_s6 + $0x1b0] sm:$0xf0] }
  0xec   : > { %2484 = vmatpush.bf16.msrb.mxu0 %v3153_v16  ;;  %2510 = vmatpush.bf16.msrb.mxu2 %v3665_v18  ;;  %v4311_v61 = vld [vmem:[%s4831_s6 + $0x2ac] sm:$0xf0]  ;;  %v2233_v18 = vadd.f32 %v2232_v14, %v595_v3  ;;  %v2271_v45 = vpop.f32.mrf.mxu3  ;;  %v4403_v57 = vld [vmem:[%s4831_s6 + $0x594] sm:$0xf] }
  0xed   : > { %v3536_v62 = vld [vmem:[%s4831_s6 + $0x490] sm:$0xf]  ;;  %v3281_v27 = vor.u32 %v4311_v61, %v3280_v58  ;;  %v3666_v58 = vld [vmem:[%s4831_s6 + $0x5b0] sm:$0xf0] }
  0xee   : > { %2523 = vmatpush.bf16.msrb.mxu3 %v3921_v22  ;;  %2498 = vmatpush.bf16.msrb.mxu1 %v3377_v32  ;;  %v4375_v63 = vld [vmem:[%s4831_s6 + $0x4ac] sm:$0xf0]  ;;  %v2245_v24 = vpop.f32.mrf.mxu1  ;;  %v4267_v3 = vld [vmem:[%s4831_s6 + $0x154] sm:$0xf] }
  0xef   : > { %v3792_v0 = vld [vmem:[%s4831_s6 + $0x690] sm:$0xf]  ;;  %v3537_v4 = vor.u32 %v4375_v63, %v3536_v62  ;;  %v2246_v32 = vadd.f32 %v2245_v24, %v2233_v18  ;;  %v3157_v63 = vor.u32 %v4275_v50, %v3154_v54  ;;  %v3346_v24 = vld [vmem:[%s4831_s6 + $0x330] sm:$0xf0] }
  0xf0   : > { %2485 = vmatpush.bf16.msrb.mxu0 %v3121_v29  ;;  %2511 = vmatpush.bf16.msrb.mxu2 %v3633_v33  ;;  %v4439_v1 = vld [vmem:[%s4831_s6 + $0x6ac] sm:$0xf0]  ;;  %v4243_v50 = vld [vmem:[%s4831_s6 + $0x94] sm:$0xf] }
  0xf1   : > { %v2992_v5 = vld [vmem:[%s4831_s6 + $0x50] sm:$0xf]  ;;  %v3793_v8 = vor.u32 %v4439_v1, %v3792_v0  ;;  %v2259_v51 = vadd.f32 %v2258_v44, %v2246_v32  ;;  %v3026_v52 = vld [vmem:[%s4831_s6 + $0xb0] sm:$0xf0] }
  0xf2   : > { %2524 = vmatpush.bf16.msrb.mxu3 %v3889_v25  ;;  %2499 = vmatpush.bf16.msrb.mxu1 %v3345_v42  ;;  %v4239_v6 = vld [vmem:[%s4831_s6 + $0x6c] sm:$0xf0]  ;;  %v3186_v25 = vld [vmem:[%s4831_s6 + $0x1f0] sm:$0xf0] }
  0xf3   : > { %v3248_v7 = vld [vmem:[%s4831_s6 + $0x250] sm:$0xf]  ;;  %v2993_v15 = vor.u32 %v4239_v6, %v2992_v5  ;;  %v3189_v46 = vor.u32 %v4283_v34, %v3186_v25  ;;  %v4331_v5 = vld [vmem:[%s4831_s6 + $0x354] sm:$0xf] }
  0xf4   : > { %2486 = vmatpush.bf16.msrb.mxu0 %v3089_v41  ;;  %2512 = vmatpush.bf16.msrb.mxu2 %v3601_v43  ;;  %v4303_v9 = vld [vmem:[%s4831_s6 + $0x26c] sm:$0xf0]  ;;  %v3698_v41 = vld [vmem:[%s4831_s6 + $0x5f0] sm:$0xf0]  ;;  %v2273_v14 = vpop.f32.mrf.mxu3 }
  0xf5   : > { %v3504_v10 = vld [vmem:[%s4831_s6 + $0x450] sm:$0xf]  ;;  %v3249_v19 = vor.u32 %v4303_v9, %v3248_v7  ;;  %v3378_v6 = vld [vmem:[%s4831_s6 + $0x370] sm:$0xf0]  ;;  %v5286_v7 = vld [vmem:[#allocation1] sm:$0xff] }
  0xf6   : > { %2525 = vmatpush.bf16.msrb.mxu3 %v3857_v47  ;;  %2500 = vmatpush.bf16.msrb.mxu1 %v3313_v55  ;;  %v4367_v11 = vld [vmem:[%s4831_s6 + $0x46c] sm:$0xf0]  ;;  %v3445_v47 = vor.u32 %v4347_v37, %v3442_v38  ;;  %v4339_v55 = vld [vmem:[%s4831_s6 + $0x394] sm:$0xf]  ;;  %v2247_v61 = vpop.f32.mrf.mxu1 }
  0xf7   : > { %v3760_v12 = vld [vmem:[%s4831_s6 + $0x650] sm:$0xf]  ;;  %v3505_v20 = vor.u32 %v4367_v11, %v3504_v10  ;;  %v3634_v9 = vld [vmem:[%s4831_s6 + $0x570] sm:$0xf0] }
  0xf8   : > { %2487 = vmatpush.bf16.msrb.mxu0 %v3057_v53  ;;  %2513 = vmatpush.bf16.msrb.mxu2 %v3569_v56  ;;  %v4431_v13 = vld [vmem:[%s4831_s6 + $0x66c] sm:$0xf0]  ;;  %v3701_v53 = vor.u32 %v4411_v40, %v3698_v41  ;;  %v3410_v56 = vld [vmem:[%s4831_s6 + $0x3b0] sm:$0xf0] }
  0xf9   : > { %v2960_v16 = vld [vmem:[%s4831_s6 + $0x10] sm:$0xf]  ;;  %v3761_v26 = vor.u32 %v4431_v13, %v3760_v12  ;;  %v3413_v0 = vor.u32 %v4339_v55, %v3410_v56  ;;  %v2260_v13 = vpop.f32.mrf.mxu2  ;;  %v4251_v38 = vld [vmem:[%s4831_s6 + $0xd4] sm:$0xf] }
  0xfa   : > { %2526 = vmatpush.bf16.msrb.mxu3 %v3825_v60  ;;  %v4231_v17 = vld [vmem:[%s4831_s6 + $0x2c] sm:$0xf0]  ;;  %2501 = vmatpush.bf16.msrb.mxu1 %v3281_v27  ;;  %v2272_v60 = vadd.f32 %v2271_v45, %v2259_v51  ;;  %v3669_v27 = vor.u32 %v4403_v57, %v3666_v58  ;;  %v4315_v40 = vld [vmem:[%s4831_s6 + $0x2d4] sm:$0xf] }
  0xfb   : > { %v3216_v21 = vld [vmem:[%s4831_s6 + $0x210] sm:$0xf]  ;;  %v2961_v36 = vor.u32 %v4231_v17, %v2960_v16  ;;  %v3381_v17 = vor.u32 %v4331_v5, %v3378_v6  ;;  %v3314_v41 = vld [vmem:[%s4831_s6 + $0x2f0] sm:$0xf0] }
  0xfc   : > { %2488 = vmatpush.bf16.msrb.mxu0 %v3025_v2  ;;  %2514 = vmatpush.bf16.msrb.mxu2 %v3537_v4  ;;  %v4295_v22 = vld [vmem:[%s4831_s6 + $0x22c] sm:$0xf0]  ;;  %v3122_v4 = vld [vmem:[%s4831_s6 + $0x170] sm:$0xf0] }
  0xfd   : > { %v3472_v23 = vld [vmem:[%s4831_s6 + $0x410] sm:$0xf]  ;;  %v3217_v39 = vor.u32 %v4295_v22, %v3216_v21  ;;  %v3125_v16 = vor.u32 %v4267_v3, %v3122_v4  ;;  %v3090_v22 = vld [vmem:[%s4831_s6 + $0x130] sm:$0xf0] }
  0xfe   : > { %2527 = vmatpush.bf16.msrb.mxu3 %v3793_v8  ;;  %v4359_v30 = vld [vmem:[%s4831_s6 + $0x42c] sm:$0xf0]  ;;  %2502 = vmatpush.bf16.msrb.mxu1 %v3249_v19  ;;  %v4395_v8 = vld [vmem:[%s4831_s6 + $0x554] sm:$0xf] }
  0xff   : > { %v3728_v31 = vld [vmem:[%s4831_s6 + $0x610] sm:$0xf]  ;;  %v3473_v28 = vor.u32 %v4359_v30, %v3472_v23  ;;  %v3637_v21 = vor.u32 %v4395_v8, %v3634_v9  ;;  %v4323_v23 = vld [vmem:[%s4831_s6 + $0x314] sm:$0xf] }
 0x100   : > { %v4423_v29 = vld [vmem:[%s4831_s6 + $0x62c] sm:$0xf0]  ;;  %2489 = vmatpush.bf16.msrb.mxu0 %v2993_v15  ;;  %2515 = vmatpush.bf16.msrb.mxu2 %v3505_v20  ;;  %v5297_v15 = vld [vmem:[#allocation1 + $0x9] sm:$0xff]  ;;  %v4259_v20 = vld [vmem:[%s4831_s6 + $0x114] sm:$0xf] }
 0x101   : > { %v4208_v33 = vld [vmem:[%s4831_s6 + $0x9d0] sm:$0xf]  ;;  %v3729_v42 = vor.u32 %v4423_v29, %v3728_v31  ;;  %v3602_v30 = vld [vmem:[%s4831_s6 + $0x530] sm:$0xf0]  ;;  %v596_v29 = vperm.slane %v5240_v59, 1  ;;  %v3093_v34 = vor.u32 %v4259_v20, %v3090_v22 }
 0x102   : > { %v4543_v35 = vld [vmem:[%s4831_s6 + $0x9ec] sm:$0xf0]  ;;  %2528 = vmatpush.bf16.msrb.mxu3 %v3761_v26  ;;  %2503 = vmatpush.bf16.msrb.mxu1 %v3217_v39  ;;  %v4387_v26 = vld [vmem:[%s4831_s6 + $0x514] sm:$0xf] }
 0x103   : > { %v4209_v43 = vor.u32 %v4543_v35, %v4208_v33  ;;  %v4176_v48 = vld [vmem:[%s4831_s6 + $0x990] sm:$0xf]  ;;  %v2297_v35 = vpop.f32.mrf.mxu1  ;;  %v3605_v39 = vor.u32 %v4387_v26, %v3602_v30  ;;  %v3282_v54 = vld [vmem:[%s4831_s6 + $0x2b0] sm:$0xf0] }
 0x104   : > { %v4535_v49 = vld [vmem:[%s4831_s6 + $0x9ac] sm:$0xf0]  ;;  %2490 = vmatpush.bf16.msrb.mxu0 %v2961_v36  ;;  %2516 = vmatpush.bf16.msrb.mxu2 %v3473_v28  ;;  %v2284_v31 = vpop.f32.mrf.mxu0  ;;  %v3349_v36 = vor.u32 %v4323_v23, %v3346_v24  ;;  %v3058_v28 = vld [vmem:[%s4831_s6 + $0xf0] sm:$0xf0]  ;;  %v2298_v44 = vadd.f32 %v2297_v35, %v596_v29 }
 0x105   : > { %v4177_v62 = vor.u32 %v4535_v49, %v4176_v48  ;;  %v4144_v1 = vld [vmem:[%s4831_s6 + $0x950] sm:$0xf]  ;;  %2504 = vmatmul.bf16.vlgmr.msrb.gmra.mxu1 %v5297_v15  ;;  %v5309_v33 = vadd.f32 %v2284_v31, %v2272_v60  ;;  %v4371_v56 = vld [vmem:[%s4831_s6 + $0x494] sm:$0xf] }
 0x106   : > { %2529 = vmatpush.bf16.msrb.mxu3 %v3729_v42  ;;  %2548 = vmatpush.bf16.msra.mxu1 %v3189_v46  ;;  %v4527_v2 = vld [vmem:[%s4831_s6 + $0x96c] sm:$0xf0]  ;;  %v4379_v42 = vld [vmem:[%s4831_s6 + $0x4d4] sm:$0xf]  ;;  %v3061_v46 = vor.u32 %v4251_v38, %v3058_v28  ;;  %v4288_v38 = vld [vmem:[%s4831_s6 + $0x1f4] sm:$0xf0] }
 0x107   : > { %2491 = vmatmul.bf16.vlgmr.msrb.gmra.mxu0 %v5286_v7  ;;  %v5291_v10 = vld [vmem:[#allocation1 + $0x12] sm:$0xff]  ;;  %v5294_v11 = vld [vmem:[#allocation1 + $0x1b] sm:$0xff]  ;;  %v4145_v12 = vor.u32 %v4527_v2, %v4144_v1  ;;  %vm2743_vm0 = vcmp.gt.f32.partialorder %v5309_v33, 0.0 }
 0x108   : > { %2535 = vmatpush.bf16.msra.mxu0 %v4209_v43  ;;  %2561 = vmatpush.bf16.msra.mxu2 %v3445_v47  ;;  %v4112_v18 = vld [vmem:[%s4831_s6 + $0x910] sm:$0xf]  ;;  %v3570_v43 = vld [vmem:[%s4831_s6 + $0x4f0] sm:$0xf0]  ;;  %v3317_v47 = vor.u32 %v4315_v40, %v3314_v41  ;;  %v3448_v40 = vld [vmem:[%s4831_s6 + $0x3d8] sm:$0xf] }
 0x109   : > { %2517 = vmatmul.bf16.vlgmr.msrb.gmra.mxu2 %v5291_v10  ;;  %2530 = vmatmul.bf16.vlgmr.msrb.gmra.mxu3 %v5294_v11  ;;  %v4519_v19 = vld [vmem:[%s4831_s6 + $0x92c] sm:$0xf0]  ;;  %v3573_v51 = vor.u32 %v4379_v42, %v3570_v43  ;;  %v3538_v57 = vld [vmem:[%s4831_s6 + $0x4b0] sm:$0xf0]  ;;  %v4352_v41 = vld [vmem:[%s4831_s6 + $0x3f4] sm:$0xf0] }
 0x10a   : > { %2574 = vmatpush.bf16.msra.mxu3 %v3701_v53  ;;  %2549 = vmatpush.bf16.msra.mxu1 %v3157_v63  ;;  %v4113_v32 = vor.u32 %v4519_v19, %v4112_v18  ;;  %v4080_v25 = vld [vmem:[%s4831_s6 + $0x8d0] sm:$0xf]  ;;  %v4307_v53 = vld [vmem:[%s4831_s6 + $0x294] sm:$0xf]  ;;  %v2310_v55 = vpop.f32.mrf.mxu2  ;;  %v3541_v5 = vor.u32 %v4371_v56, %v3538_v57 }
 0x10b   : > { %v4511_v37 = vld [vmem:[%s4831_s6 + $0x8ec] sm:$0xf0]  ;;  %v2311_v60 = vadd.f32 %v2310_v55, %v2298_v44  ;;  %v2299_v63 = vpop.f32.mrf.mxu1  ;;  %v3285_v1 = vor.u32 %v4307_v53, %v3282_v54  ;;  %v2994_v6 = vld [vmem:[%s4831_s6 + $0x70] sm:$0xf0]  ;;  %v3416_v53 = vld [vmem:[%s4831_s6 + $0x398] sm:$0xf] }
 0x10c   : > { %2536 = vmatpush.bf16.msra.mxu0 %v4177_v62  ;;  %2562 = vmatpush.bf16.msra.mxu2 %v3413_v0  ;;  %v4081_v45 = vor.u32 %v4511_v37, %v4080_v25  ;;  %v4048_v48 = vld [vmem:[%s4831_s6 + $0x890] sm:$0xf]  ;;  %v2286_v58 = vpop.f32.mrf.mxu0  ;;  %v2323_v61 = vpop.f32.mrf.mxu3  ;;  %v3029_v0 = vor.u32 %v4243_v50, %v3026_v52  ;;  %v4299_v8 = vld [vmem:[%s4831_s6 + $0x254] sm:$0xf]  ;;  %v3192_v37 = vld [vmem:[%s4831_s6 + $0x1d8] sm:$0xf] }
 0x10d   : > { %v4503_v49 = vld [vmem:[%s4831_s6 + $0x8ac] sm:$0xf0]  ;;  %v5330_v4 = vadd.f32 %v2323_v61, %v2311_v60  ;;  %v3250_v9 = vld [vmem:[%s4831_s6 + $0x270] sm:$0xf0]  ;;  %v4280_v52 = vld [vmem:[%s4831_s6 + $0x1b4] sm:$0xf0] }
 0x10e   : > { %2575 = vmatpush.bf16.msra.mxu3 %v3669_v27  ;;  %2550 = vmatpush.bf16.msra.mxu1 %v3125_v16  ;;  %v4049_v62 = vor.u32 %v4503_v49, %v4048_v48  ;;  %v4016_v2 = vld [vmem:[%s4831_s6 + $0x850] sm:$0xf]  ;;  %v4235_v27 = vld [vmem:[%s4831_s6 + $0x54] sm:$0xf]  ;;  %v3253_v19 = vor.u32 %v4299_v8, %v3250_v9  ;;  %v3449_v49 = vor.u32 %v4352_v41, %v3448_v40  ;;  %v4344_v54 = vld [vmem:[%s4831_s6 + $0x3b4] sm:$0xf0] }
 0x10f   : > { %v4495_v3 = vld [vmem:[%s4831_s6 + $0x86c] sm:$0xf0]  ;;  %v3506_v13 = vld [vmem:[%s4831_s6 + $0x470] sm:$0xf0]  ;;  %v2997_v18 = vor.u32 %v4235_v27, %v2994_v6  ;;  %v5364_v63 = vld [vmem:[#allocation1 + $0x24] sm:$0xff] }
 0x110   : > { %2537 = vmatpush.bf16.msra.mxu0 %v4145_v12  ;;  %2563 = vmatpush.bf16.msra.mxu2 %v3381_v17  ;;  %v4363_v12 = vld [vmem:[%s4831_s6 + $0x454] sm:$0xf]  ;;  %v4017_v14 = vor.u32 %v4495_v3, %v4016_v2  ;;  %v3984_v16 = vld [vmem:[%s4831_s6 + $0x810] sm:$0xf]  ;;  %v4272_v2 = vld [vmem:[%s4831_s6 + $0x174] sm:$0xf0] }
 0x111   : > { %v4487_v17 = vld [vmem:[%s4831_s6 + $0x82c] sm:$0xf0]  ;;  %v4227_v20 = vld [vmem:[%s4831_s6 + $0x14] sm:$0xf]  ;;  %v3509_v23 = vor.u32 %v4363_v12, %v3506_v13  ;;  %v3384_v3 = vld [vmem:[%s4831_s6 + $0x358] sm:$0xf] }
 0x112   : > { %2576 = vmatpush.bf16.msra.mxu3 %v3637_v21  ;;  %2551 = vmatpush.bf16.msra.mxu1 %v3093_v34  ;;  %v2962_v21 = vld [vmem:[%s4831_s6 + $0x30] sm:$0xf0]  ;;  %v2312_v31 = vpop.f32.mrf.mxu2  ;;  %v4336_v27 = vld [vmem:[%s4831_s6 + $0x374] sm:$0xf0] }
 0x113   : > { %v4291_v22 = vld [vmem:[%s4831_s6 + $0x214] sm:$0xf] }
 0x114   : > { %2538 = vmatpush.bf16.msra.mxu0 %v4113_v32  ;;  %2564 = vmatpush.bf16.msra.mxu2 %v3349_v36  ;;  %v3218_v24 = vld [vmem:[%s4831_s6 + $0x230] sm:$0xf0]  ;;  %v2325_v34 = vpop.f32.mrf.mxu3  ;;  %v3985_v36 = vor.u32 %v4487_v17, %v3984_v16  ;;  %v3096_v17 = vld [vmem:[%s4831_s6 + $0x118] sm:$0xf] }
 0x115   : > { %v4355_v26 = vld [vmem:[%s4831_s6 + $0x414] sm:$0xf]  ;;  %v3221_v28 = vor.u32 %v4291_v22, %v3218_v24  ;;  %v2751_v22 = vmul.f32 0.2, %v5309_v33 }
 0x116   : > { %2577 = vmatpush.bf16.msra.mxu3 %v3605_v39  ;;  %2552 = vmatpush.bf16.msra.mxu1 %v3061_v46  ;;  %v3474_v30 = vld [vmem:[%s4831_s6 + $0x430] sm:$0xf0]  ;;  %v2965_v39 = vor.u32 %v4227_v20, %v2962_v21  ;;  %v3352_v20 = vld [vmem:[%s4831_s6 + $0x318] sm:$0xf] }
 0x117   : > { %v4475_v29 = vld [vmem:[%s4831_s6 + $0x7d4] sm:$0xf]  ;;  %v3477_v42 = vor.u32 %v4355_v26, %v3474_v30  ;;  %v4328_v21 = vld [vmem:[%s4831_s6 + $0x334] sm:$0xf0] }
 0x118   : > { %2539 = vmatpush.bf16.msra.mxu0 %v4081_v45  ;;  %2565 = vmatpush.bf16.msra.mxu2 %v3317_v47  ;;  %v3954_v32 = vld [vmem:[%s4831_s6 + $0x7f0] sm:$0xf0]  ;;  %v3193_v45 = vor.u32 %v4288_v38, %v3192_v37  ;;  %v3353_v34 = vor.u32 %v4328_v21, %v3352_v20  ;;  %v3064_v37 = vld [vmem:[%s4831_s6 + $0xd8] sm:$0xf] }
 0x119   : > { %v4539_v35 = vld [vmem:[%s4831_s6 + $0x9d4] sm:$0xf]  ;;  %v3957_v43 = vor.u32 %v4475_v29, %v3954_v32  ;;  %v3320_v38 = vld [vmem:[%s4831_s6 + $0x2d8] sm:$0xf] }
 0x11a   : > { %2578 = vmatpush.bf16.msra.mxu3 %v3573_v51  ;;  %2553 = vmatpush.bf16.msra.mxu1 %v3029_v0  ;;  %v4210_v25 = vld [vmem:[%s4831_s6 + $0x9f0] sm:$0xf0]  ;;  %v3160_v51 = vld [vmem:[%s4831_s6 + $0x198] sm:$0xf] }
 0x11b   : > { %v4213_v44 = vor.u32 %v4539_v35, %v4210_v25  ;;  %v4467_v46 = vld [vmem:[%s4831_s6 + $0x794] sm:$0xf]  ;;  %v3161_v57 = vor.u32 %v4280_v52, %v3160_v51  ;;  %v4248_v51 = vld [vmem:[%s4831_s6 + $0xb4] sm:$0xf0] }
 0x11c   : > { %2540 = vmatpush.bf16.msra.mxu0 %v4049_v62  ;;  %2566 = vmatpush.bf16.msra.mxu2 %v3285_v1  ;;  %v3922_v47 = vld [vmem:[%s4831_s6 + $0x7b0] sm:$0xf0]  ;;  %v3417_v62 = vor.u32 %v4344_v54, %v3416_v53  ;;  %v3128_v1 = vld [vmem:[%s4831_s6 + $0x158] sm:$0xf] }
 0x11d   : > { %v4531_v48 = vld [vmem:[%s4831_s6 + $0x994] sm:$0xf]  ;;  %v3925_v55 = vor.u32 %v4467_v46, %v3922_v47  ;;  %v3129_v8 = vor.u32 %v4272_v2, %v3128_v1  ;;  %v2759_v47 = vsel %vm2743_vm0, %v5309_v33, %v2751_v22  ;;  %v3288_v54 = vld [vmem:[%s4831_s6 + $0x298] sm:$0xf] }
 0x11e   : > { %2579 = vmatpush.bf16.msra.mxu3 %v3541_v5  ;;  %2554 = vmatpush.bf16.msra.mxu1 %v2997_v18  ;;  %v4178_v50 = vld [vmem:[%s4831_s6 + $0x9b0] sm:$0xf0]  ;;  %v4264_v18 = vld [vmem:[%s4831_s6 + $0x134] sm:$0xf0] }
 0x11f   : > { %v4181_v56 = vor.u32 %v4531_v48, %v4178_v50  ;;  %v4459_v58 = vld [vmem:[%s4831_s6 + $0x754] sm:$0xf]  ;;  %v3097_v31 = vor.u32 %v4264_v18, %v3096_v17  ;;  %v3032_v50 = vld [vmem:[%s4831_s6 + $0x98] sm:$0xf] }
 0x120   : > { %2541 = vmatpush.bf16.msra.mxu0 %v4017_v14  ;;  %2567 = vmatpush.bf16.msra.mxu2 %v3253_v19  ;;  %v3890_v60 = vld [vmem:[%s4831_s6 + $0x770] sm:$0xf0]  ;;  %v3385_v14 = vor.u32 %v4336_v27, %v3384_v3  ;;  %v2968_v21 = vld [vmem:[%s4831_s6 + $0x18] sm:$0xf] }
 0x121   : > { %v4523_v61 = vld [vmem:[%s4831_s6 + $0x954] sm:$0xf]  ;;  %v3893_v5 = vor.u32 %v4459_v58, %v3890_v60 }
 0x122   : > { %2580 = vmatpush.bf16.msra.mxu3 %v3509_v23  ;;  %2555 = vmatpush.bf16.msra.mxu1 %v2965_v39  ;;  %v4146_v0 = vld [vmem:[%s4831_s6 + $0x970] sm:$0xf0]  ;;  %v2349_v26 = vpop.f32.mrf.mxu1  ;;  %v4320_v39 = vld [vmem:[%s4831_s6 + $0x2f4] sm:$0xf0] }
 0x123   : > { %v4149_v6 = vor.u32 %v4523_v61, %v4146_v0  ;;  %v4451_v9 = vld [vmem:[%s4831_s6 + $0x714] sm:$0xf]  ;;  %v3321_v48 = vor.u32 %v4320_v39, %v3320_v38  ;;  %v4284_v39 = vld [vmem:[%s4831_s6 + $0x1dc] sm:$0xf] }
 0x124   : > { %2542 = vmatpush.bf16.msra.mxu0 %v3985_v36  ;;  %2568 = vmatpush.bf16.msra.mxu2 %v3221_v28  ;;  %v3858_v12 = vld [vmem:[%s4831_s6 + $0x730] sm:$0xf0]  ;;  %v2336_v19 = vpop.f32.mrf.mxu0  ;;  %v597_v28 = vperm.slane %v5240_v59, 2 }
 0x125   : > { %2556 = vmatmul.bf16.vlgmr.msra.gmra.mxu1 %v5286_v7  ;;  %v4515_v13 = vld [vmem:[%s4831_s6 + $0x914] sm:$0xf]  ;;  %v2337_v23 = vadd.f32 %v2336_v19, %v5330_v4  ;;  %v3861_v24 = vor.u32 %v4451_v9, %v3858_v12  ;;  %v4256_v4 = vld [vmem:[%s4831_s6 + $0xf4] sm:$0xf0] }
 0x126   : > { %2581 = vmatpush.bf16.msra.mxu3 %v3477_v42  ;;  %2600 = vmatpush.bf16.msrb.mxu1 %v4213_v44  ;;  %v4114_v16 = vld [vmem:[%s4831_s6 + $0x930] sm:$0xf0]  ;;  %v3256_v9 = vld [vmem:[%s4831_s6 + $0x258] sm:$0xf] }
 0x127   : > { %2543 = vmatmul.bf16.vlgmr.msra.gmra.mxu0 %v5364_v63  ;;  %2569 = vmatmul.bf16.vlgmr.msra.gmra.mxu2 %v5297_v15  ;;  %v4117_v30 = vor.u32 %v4515_v13, %v4114_v16  ;;  %v4443_v29 = vld [vmem:[%s4831_s6 + $0x6d4] sm:$0xf]  ;;  %v2350_v36 = vadd.f32 %v2349_v26, %v2337_v23  ;;  %v4304_v12 = vld [vmem:[%s4831_s6 + $0x274] sm:$0xf0] }
 0x128   : > { %2587 = vmatpush.bf16.msrb.mxu0 %v3957_v43  ;;  %2613 = vmatpush.bf16.msrb.mxu2 %v3193_v45  ;;  %v3826_v32 = vld [vmem:[%s4831_s6 + $0x6f0] sm:$0xf0]  ;;  %v3065_v43 = vor.u32 %v4256_v4, %v3064_v37  ;;  %v3257_v22 = vor.u32 %v4304_v12, %v3256_v9  ;;  %v4232_v23 = vld [vmem:[%s4831_s6 + $0x34] sm:$0xf0] }
 0x129   : > { %2582 = vmatmul.bf16.vlgmr.msra.gmra.mxu3 %v5291_v10  ;;  %v4507_v35 = vld [vmem:[%s4831_s6 + $0x8d4] sm:$0xf]  ;;  %vm2744_vm1 = vcmp.gt.f32.partialorder %v2350_v36, 0.0  ;;  %v2752_v40 = vmul.f32 0.2, %v2350_v36  ;;  %v3829_v41 = vor.u32 %v4443_v29, %v3826_v32  ;;  %v2969_v38 = vor.u32 %v4232_v23, %v2968_v21 }
 0x12a   : > { %2626 = vmatpush.bf16.msrb.mxu3 %v3449_v49  ;;  %2601 = vmatpush.bf16.msrb.mxu1 %v4181_v56  ;;  %v4082_v25 = vld [vmem:[%s4831_s6 + $0x8f0] sm:$0xf0]  ;;  %v2362_v52 = vpop.f32.mrf.mxu2  ;;  %v2351_v60 = vpop.f32.mrf.mxu1  ;;  %v4296_v26 = vld [vmem:[%s4831_s6 + $0x234] sm:$0xf0] }
 0x12b   : > { %v4085_v42 = vor.u32 %v4507_v35, %v4082_v25  ;;  %v4435_v44 = vld [vmem:[%s4831_s6 + $0x694] sm:$0xf]  ;;  %v2760_v59 = vsel %vm2744_vm1, %v2350_v36, %v2752_v40  ;;  %v2363_v56 = vadd.f32 %v2362_v52, %v597_v28  ;;  %v4416_v29 = vld [vmem:[%s4831_s6 + $0x5f4] sm:$0xf0]  ;;  %v3194_v28 = vld [vmem:[%s4831_s6 + $0x1f8] sm:$0xf0] }
 0x12c   : > { %2588 = vmatpush.bf16.msrb.mxu0 %v3925_v55  ;;  %2614 = vmatpush.bf16.msrb.mxu2 %v3161_v57  ;;  %v3794_v45 = vld [vmem:[%s4831_s6 + $0x6b0] sm:$0xf0]  ;;  %v5402_v53 = vpack.c.bf16 %v2760_v59, %v2759_v47  ;;  %v4312_v55 = vld [vmem:[%s4831_s6 + $0x2b4] sm:$0xf0]  ;;  %v2338_v57 = vpop.f32.mrf.mxu0  ;;  %v2375_v58 = vpop.f32.mrf.mxu3  ;;  %v3197_v47 = vor.u32 %v4284_v39, %v3194_v28 }
 0x12d   : > { %v4499_v46 = vld [vmem:[%s4831_s6 + $0x894] sm:$0xf]  ;;  %v3797_v33 = vor.u32 %v4435_v44, %v3794_v45  ;;  %v5409_v3 = vadd.f32 %v2375_v58, %v2363_v56  ;;  %v3289_v27 = vor.u32 %v4312_v55, %v3288_v54  ;;  %v3960_v32 = vld [vmem:[%s4831_s6 + $0x7d8] sm:$0xf] }
 0x12e   : > { %2627 = vmatpush.bf16.msrb.mxu3 %v3417_v62  ;;  %2602 = vmatpush.bf16.msrb.mxu1 %v4149_v6  ;;  %v4050_v49 = vld [vmem:[%s4831_s6 + $0x8b0] sm:$0xf0]  ;;  %v3033_v62 = vor.u32 %v4248_v51, %v3032_v50  ;;  %v3000_v6 = vld [vmem:[%s4831_s6 + $0x58] sm:$0xf]  ;;  %v4276_v50 = vld [vmem:[%s4831_s6 + $0x19c] sm:$0xf] }
 0x12f   : > { %v4053_v61 = vor.u32 %v4499_v46, %v4050_v49  ;;  %v4427_v0 = vld [vmem:[%s4831_s6 + $0x654] sm:$0xf]  ;;  %v4480_v36 = vld [vmem:[%s4831_s6 + $0x7f4] sm:$0xf0]  ;;  %v3162_v51 = vld [vmem:[%s4831_s6 + $0x1b8] sm:$0xf0] }
 0x130   : > { %2589 = vmatpush.bf16.msrb.mxu0 %v3893_v5  ;;  %2615 = vmatpush.bf16.msrb.mxu2 %v3129_v8  ;;  %v3762_v1 = vld [vmem:[%s4831_s6 + $0x670] sm:$0xf0]  ;;  %v4240_v8 = vld [vmem:[%s4831_s6 + $0x74] sm:$0xf0] }
 0x131   : > { %v4491_v2 = vld [vmem:[%s4831_s6 + $0x854] sm:$0xf]  ;;  %v3765_v13 = vor.u32 %v4427_v0, %v3762_v1  ;;  %v3001_v18 = vor.u32 %v4240_v8, %v3000_v6  ;;  %v4216_v25 = vld [vmem:[%s4831_s6 + $0x9d8] sm:$0xf]  ;;  %v4268_v0 = vld [vmem:[%s4831_s6 + $0x15c] sm:$0xf] }
 0x132   : > { %2628 = vmatpush.bf16.msrb.mxu3 %v3385_v14  ;;  %2603 = vmatpush.bf16.msrb.mxu1 %v4117_v30  ;;  %v4018_v5 = vld [vmem:[%s4831_s6 + $0x870] sm:$0xf0]  ;;  %v2364_v30 = vpop.f32.mrf.mxu2  ;;  %v4544_v37 = vld [vmem:[%s4831_s6 + $0x9f4] sm:$0xf0]  ;;  %v3130_v1 = vld [vmem:[%s4831_s6 + $0x178] sm:$0xf0] }
 0x133   : > { %v4419_v14 = vld [vmem:[%s4831_s6 + $0x614] sm:$0xf]  ;;  %v4021_v17 = vor.u32 %v4491_v2, %v4018_v5  ;;  %v3672_v44 = vld [vmem:[%s4831_s6 + $0x598] sm:$0xf]  ;;  %v3133_v12 = vor.u32 %v4268_v0, %v3130_v1 }
 0x134   : > { %2590 = vmatpush.bf16.msrb.mxu0 %v3861_v24  ;;  %2616 = vmatpush.bf16.msrb.mxu2 %v3097_v31  ;;  %v3730_v16 = vld [vmem:[%s4831_s6 + $0x630] sm:$0xf0]  ;;  %v3224_v24 = vld [vmem:[%s4831_s6 + $0x218] sm:$0xf]  ;;  %v2377_v35 = vpop.f32.mrf.mxu3 }
 0x135   : > { %v4483_v19 = vld [vmem:[%s4831_s6 + $0x814] sm:$0xf]  ;;  %v3704_v31 = vld [vmem:[%s4831_s6 + $0x5d8] sm:$0xf]  ;;  %v3225_v40 = vor.u32 %v4296_v26, %v3224_v24 }
 0x136   : > { %2629 = vmatpush.bf16.msrb.mxu3 %v3353_v34  ;;  %2604 = vmatpush.bf16.msrb.mxu1 %v4085_v42  ;;  %v3986_v20 = vld [vmem:[%s4831_s6 + $0x830] sm:$0xf0]  ;;  %v3733_v34 = vor.u32 %v4419_v14, %v3730_v16  ;;  %v3961_v42 = vor.u32 %v4480_v36, %v3960_v32  ;;  %v4408_v45 = vld [vmem:[%s4831_s6 + $0x5b4] sm:$0xf0]  ;;  %v3066_v36 = vld [vmem:[%s4831_s6 + $0xf8] sm:$0xf0] }
 0x137   : > { %v3989_v4 = vor.u32 %v4483_v19, %v3986_v20  ;;  %v3928_v46 = vld [vmem:[%s4831_s6 + $0x798] sm:$0xf]  ;;  %v3673_v52 = vor.u32 %v4408_v45, %v3672_v44 }
 0x138   : > { %2591 = vmatpush.bf16.msrb.mxu0 %v3829_v41  ;;  %2617 = vmatpush.bf16.msrb.mxu2 %v3065_v43  ;;  %v3705_v41 = vor.u32 %v4416_v29, %v3704_v31  ;;  %v4217_v43 = vor.u32 %v4544_v37, %v4216_v25  ;;  %v4472_v59 = vld [vmem:[%s4831_s6 + $0x7b4] sm:$0xf0] }
 0x139   : > { %v4536_v49 = vld [vmem:[%s4831_s6 + $0x9b4] sm:$0xf0]  ;;  %v3929_v54 = vor.u32 %v4472_v59, %v3928_v46  ;;  %v4244_v46 = vld [vmem:[%s4831_s6 + $0x9c] sm:$0xf] }
 0x13a   : > { %2630 = vmatpush.bf16.msrb.mxu3 %v3321_v48  ;;  %2605 = vmatpush.bf16.msrb.mxu1 %v4053_v61  ;;  %v4184_v48 = vld [vmem:[%s4831_s6 + $0x998] sm:$0xf] }
 0x13b   : > { %v4185_v55 = vor.u32 %v4536_v49, %v4184_v48  ;;  %v3640_v56 = vld [vmem:[%s4831_s6 + $0x558] sm:$0xf] }
 0x13c   : > { %2592 = vmatpush.bf16.msrb.mxu0 %v3797_v33  ;;  %2618 = vmatpush.bf16.msrb.mxu2 %v3033_v62  ;;  %v4400_v57 = vld [vmem:[%s4831_s6 + $0x574] sm:$0xf0]  ;;  %v3165_v33 = vor.u32 %v4276_v50, %v3162_v51 }
 0x13d   : > { %v3896_v58 = vld [vmem:[%s4831_s6 + $0x758] sm:$0xf]  ;;  %v3641_v2 = vor.u32 %v4400_v57, %v3640_v56 }
 0x13e   : > { %2631 = vmatpush.bf16.msrb.mxu3 %v3289_v27  ;;  %2606 = vmatpush.bf16.msrb.mxu1 %v4021_v17  ;;  %v4464_v60 = vld [vmem:[%s4831_s6 + $0x774] sm:$0xf0]  ;;  %v4260_v17 = vld [vmem:[%s4831_s6 + $0x11c] sm:$0xf] }
 0x13f   : > { %v4152_v61 = vld [vmem:[%s4831_s6 + $0x958] sm:$0xf]  ;;  %v3897_v27 = vor.u32 %v4464_v60, %v3896_v58 }
 0x140   : > { %2593 = vmatpush.bf16.msrb.mxu0 %v3765_v13  ;;  %2619 = vmatpush.bf16.msrb.mxu2 %v3001_v18  ;;  %v4528_v62 = vld [vmem:[%s4831_s6 + $0x974] sm:$0xf0]  ;;  %v3098_v18 = vld [vmem:[%s4831_s6 + $0x138] sm:$0xf0] }
 0x141   : > { %v4153_v5 = vor.u32 %v4528_v62, %v4152_v61  ;;  %v3608_v6 = vld [vmem:[%s4831_s6 + $0x518] sm:$0xf]  ;;  %v3101_v31 = vor.u32 %v4260_v17, %v3098_v18  ;;  %v4236_v61 = vld [vmem:[%s4831_s6 + $0x5c] sm:$0xf] }
 0x142   : > { %2632 = vmatpush.bf16.msrb.mxu3 %v3257_v22  ;;  %2607 = vmatpush.bf16.msrb.mxu1 %v3989_v4  ;;  %v4392_v8 = vld [vmem:[%s4831_s6 + $0x534] sm:$0xf0]  ;;  %v2401_v20 = vpop.f32.mrf.mxu1  ;;  %v3002_v62 = vld [vmem:[%s4831_s6 + $0x78] sm:$0xf0] }
 0x143   : > { %v3864_v9 = vld [vmem:[%s4831_s6 + $0x718] sm:$0xf]  ;;  %v2970_v17 = vld [vmem:[%s4831_s6 + $0x38] sm:$0xf0] }
 0x144   : > { %2594 = vmatpush.bf16.msrb.mxu0 %v3733_v34  ;;  %2620 = vmatpush.bf16.msrb.mxu2 %v2969_v38  ;;  %v4456_v13 = vld [vmem:[%s4831_s6 + $0x734] sm:$0xf0]  ;;  %v2388_v19 = vpop.f32.mrf.mxu0  ;;  %v4252_v34 = vld [vmem:[%s4831_s6 + $0xdc] sm:$0xf] }
 0x145   : > { %2608 = vmatmul.bf16.vlgmr.msrb.gmra.mxu1 %v5364_v63  ;;  %v4120_v14 = vld [vmem:[%s4831_s6 + $0x918] sm:$0xf]  ;;  %v3865_v21 = vor.u32 %v4456_v13, %v3864_v9  ;;  %v2389_v30 = vadd.f32 %v2388_v19, %v5409_v3  ;;  %v3005_v13 = vor.u32 %v4236_v61, %v3002_v62  ;;  %v4348_v18 = vld [vmem:[%s4831_s6 + $0x3dc] sm:$0xf] }
 0x146   : > { %2633 = vmatpush.bf16.msrb.mxu3 %v3225_v40  ;;  %2652 = vmatpush.bf16.msra.mxu1 %v3961_v42  ;;  %v4520_v16 = vld [vmem:[%s4831_s6 + $0x934] sm:$0xf0]  ;;  %v4412_v19 = vld [vmem:[%s4831_s6 + $0x5dc] sm:$0xf] }
 0x147   : > { %2595 = vmatmul.bf16.vlgmr.msrb.gmra.mxu0 %v5294_v11  ;;  %2621 = vmatmul.bf16.vlgmr.msrb.gmra.mxu2 %v5286_v7  ;;  %v4121_v22 = vor.u32 %v4520_v16, %v4120_v14  ;;  %v3576_v23 = vld [vmem:[%s4831_s6 + $0x4d8] sm:$0xf]  ;;  %v2402_v25 = vadd.f32 %v2401_v20, %v2389_v30  ;;  %v4228_v16 = vld [vmem:[%s4831_s6 + $0x1c] sm:$0xf] }
 0x148   : > { %2639 = vmatpush.bf16.msra.mxu0 %v3705_v41  ;;  %2665 = vmatpush.bf16.msra.mxu2 %v4217_v43  ;;  %v4384_v24 = vld [vmem:[%s4831_s6 + $0x4f4] sm:$0xf0]  ;;  %v3069_v41 = vor.u32 %v4252_v34, %v3066_v36  ;;  %v3354_v62 = vld [vmem:[%s4831_s6 + $0x338] sm:$0xf0] }
 0x149   : > { %2634 = vmatmul.bf16.vlgmr.msrb.gmra.mxu3 %v5297_v15  ;;  %v3609_v15 = vor.u32 %v4392_v8, %v3608_v6  ;;  %v3832_v26 = vld [vmem:[%s4831_s6 + $0x6d8] sm:$0xf]  ;;  %v3577_v37 = vor.u32 %v4384_v24, %v3576_v23  ;;  %v4476_v23 = vld [vmem:[%s4831_s6 + $0x7dc] sm:$0xf] }
 0x14a   : > { %2678 = vmatpush.bf16.msra.mxu3 %v3197_v47  ;;  %2653 = vmatpush.bf16.msra.mxu1 %v3929_v54  ;;  %v4448_v29 = vld [vmem:[%s4831_s6 + $0x6f4] sm:$0xf0]  ;;  %v2414_v40 = vpop.f32.mrf.mxu2  ;;  %v3034_v47 = vld [vmem:[%s4831_s6 + $0xb8] sm:$0xf0]  ;;  %v2403_v50 = vpop.f32.mrf.mxu1 }
 0x14b   : > { %v4088_v32 = vld [vmem:[%s4831_s6 + $0x8d8] sm:$0xf]  ;;  %v3833_v3 = vor.u32 %v4448_v29, %v3832_v26  ;;  %v5475_v45 = vadd.f32 %v2414_v40, %v2402_v25  ;;  %v3037_v57 = vor.u32 %v4244_v46, %v3034_v47  ;;  %v3962_v24 = vld [vmem:[%s4831_s6 + $0x7f8] sm:$0xf0] }
 0x14c   : > { %2640 = vmatpush.bf16.msra.mxu0 %v3673_v52  ;;  %2666 = vmatpush.bf16.msra.mxu2 %v4185_v55  ;;  %v4512_v35 = vld [vmem:[%s4831_s6 + $0x8f4] sm:$0xf0]  ;;  %v5479_v59 = vpop.f32.mrf.mxu3  ;;  %v2390_v49 = vpop.f32.mrf.mxu0  ;;  %v4218_v29 = vld [vmem:[%s4831_s6 + $0x9f8] sm:$0xf0]  ;;  %v3965_v36 = vor.u32 %v4476_v23, %v3962_v24 }
 0x14d   : > { %v4089_v4 = vor.u32 %v4512_v35, %v4088_v32  ;;  %v3544_v38 = vld [vmem:[%s4831_s6 + $0x498] sm:$0xf]  ;;  %v2973_v32 = vor.u32 %v4228_v16, %v2970_v17  ;;  %v4340_v25 = vld [vmem:[%s4831_s6 + $0x39c] sm:$0xf]  ;;  %vm2745_vm2 = vcmp.gt.f32.partialorder %v5475_v45, 0.0 }
 0x14e   : > { %2679 = vmatpush.bf16.msra.mxu3 %v3165_v33  ;;  %2654 = vmatpush.bf16.msra.mxu1 %v3897_v27  ;;  %v4376_v39 = vld [vmem:[%s4831_s6 + $0x4b4] sm:$0xf0]  ;;  %v4532_v40 = vld [vmem:[%s4831_s6 + $0x99c] sm:$0xf] }
 0x14f   : > { %v3800_v28 = vld [vmem:[%s4831_s6 + $0x698] sm:$0xf]  ;;  %v3545_v48 = vor.u32 %v4376_v39, %v3544_v38  ;;  %v3674_v38 = vld [vmem:[%s4831_s6 + $0x5b8] sm:$0xf0] }
 0x150   : > { %2641 = vmatpush.bf16.msra.mxu0 %v3641_v2  ;;  %2667 = vmatpush.bf16.msra.mxu2 %v4153_v5  ;;  %v4440_v42 = vld [vmem:[%s4831_s6 + $0x6b4] sm:$0xf0]  ;;  %v4468_v39 = vld [vmem:[%s4831_s6 + $0x79c] sm:$0xf] }
 0x151   : > { %v4056_v43 = vld [vmem:[%s4831_s6 + $0x898] sm:$0xf]  ;;  %v3801_v51 = vor.u32 %v4440_v42, %v3800_v28  ;;  %v3930_v28 = vld [vmem:[%s4831_s6 + $0x7b8] sm:$0xf0]  ;;  %v5514_v42 = vld [vmem:[%s4837_s9] sm:$0xff] }
 0x152   : > { %2680 = vmatpush.bf16.msra.mxu3 %v3133_v12  ;;  %2655 = vmatpush.bf16.msra.mxu1 %v3865_v21  ;;  %v4504_v44 = vld [vmem:[%s4831_s6 + $0x8b4] sm:$0xf0]  ;;  %v2416_v12 = vpop.f32.mrf.mxu2  ;;  %v3933_v47 = vor.u32 %v4468_v39, %v3930_v28  ;;  %v3386_v49 = vld [vmem:[%s4831_s6 + $0x378] sm:$0xf0] }
 0x153   : > { %v4057_v52 = vor.u32 %v4504_v44, %v4056_v43  ;;  %v3512_v54 = vld [vmem:[%s4831_s6 + $0x458] sm:$0xf]  ;;  %v598_v43 = vperm.slane %v5514_v42, 3  ;;  %v4396_v50 = vld [vmem:[%s4831_s6 + $0x55c] sm:$0xf] }
 0x154   : > { %2642 = vmatpush.bf16.msra.mxu0 %v3609_v15  ;;  %2668 = vmatpush.bf16.msra.mxu2 %v4121_v22  ;;  %v4368_v55 = vld [vmem:[%s4831_s6 + $0x474] sm:$0xf0]  ;;  %v3450_v15 = vld [vmem:[%s4831_s6 + $0x3f8] sm:$0xf0]  ;;  %v2429_v20 = vpop.f32.mrf.mxu3 }
 0x155   : > { %v3768_v56 = vld [vmem:[%s4831_s6 + $0x658] sm:$0xf]  ;;  %v3513_v0 = vor.u32 %v4368_v55, %v3512_v54  ;;  %v3706_v22 = vld [vmem:[%s4831_s6 + $0x5f8] sm:$0xf0]  ;;  %v3453_v35 = vor.u32 %v4348_v18, %v3450_v15 }
 0x156   : > { %2681 = vmatpush.bf16.msra.mxu3 %v3101_v31  ;;  %2656 = vmatpush.bf16.msra.mxu1 %v3833_v3  ;;  %v4432_v58 = vld [vmem:[%s4831_s6 + $0x674] sm:$0xf0]  ;;  %v4540_v31 = vld [vmem:[%s4831_s6 + $0x9dc] sm:$0xf]  ;;  %v3709_v34 = vor.u32 %v4412_v19, %v3706_v22 }
 0x157   : > { %v4024_v33 = vld [vmem:[%s4831_s6 + $0x858] sm:$0xf]  ;;  %v3769_v27 = vor.u32 %v4432_v58, %v3768_v56  ;;  %v4404_v3 = vld [vmem:[%s4831_s6 + $0x59c] sm:$0xf] }
 0x158   : > { %2643 = vmatpush.bf16.msra.mxu0 %v3577_v37  ;;  %2669 = vmatpush.bf16.msra.mxu2 %v4089_v4  ;;  %v4496_v60 = vld [vmem:[%s4831_s6 + $0x874] sm:$0xf0]  ;;  %v3418_v37 = vld [vmem:[%s4831_s6 + $0x3b8] sm:$0xf0]  ;;  %v4221_v4 = vor.u32 %v4540_v31, %v4218_v29  ;;  %v3677_v46 = vor.u32 %v4404_v3, %v3674_v38  ;;  %v2753_v38 = vmul.f32 0.2, %v5475_v45 }
 0x159   : > { %v3480_v1 = vld [vmem:[%s4831_s6 + $0x418] sm:$0xf]  ;;  %v4025_v5 = vor.u32 %v4496_v60, %v4024_v33  ;;  %v3421_v44 = vor.u32 %v4340_v25, %v3418_v37  ;;  %v4460_v54 = vld [vmem:[%s4831_s6 + $0x75c] sm:$0xf]  ;;  %v2428_v33 = vadd.f32 %v5479_v59, %v598_v43 }
 0x15a   : > { %2682 = vmatpush.bf16.msra.mxu3 %v3069_v41  ;;  %v4360_v2 = vld [vmem:[%s4831_s6 + $0x434] sm:$0xf0]  ;;  %2657 = vmatpush.bf16.msra.mxu1 %v3801_v51  ;;  %v4186_v41 = vld [vmem:[%s4831_s6 + $0x9b8] sm:$0xf0] }
 0x15b   : > { %v3736_v6 = vld [vmem:[%s4831_s6 + $0x618] sm:$0xf]  ;;  %v3481_v21 = vor.u32 %v4360_v2, %v3480_v1  ;;  %v4189_v51 = vor.u32 %v4532_v40, %v4186_v41  ;;  %v3898_v55 = vld [vmem:[%s4831_s6 + $0x778] sm:$0xf0] }
 0x15c   : > { %2644 = vmatpush.bf16.msra.mxu0 %v3545_v48  ;;  %2670 = vmatpush.bf16.msra.mxu2 %v4057_v52  ;;  %v4424_v8 = vld [vmem:[%s4831_s6 + $0x634] sm:$0xf0]  ;;  %v4332_v48 = vld [vmem:[%s4831_s6 + $0x35c] sm:$0xf]  ;;  %v3901_v61 = vor.u32 %v4460_v54, %v3898_v55 }
 0x15d   : > { %v3992_v9 = vld [vmem:[%s4831_s6 + $0x818] sm:$0xf]  ;;  %v3737_v26 = vor.u32 %v4424_v8, %v3736_v6  ;;  %v3642_v52 = vld [vmem:[%s4831_s6 + $0x578] sm:$0xf0]  ;;  %v3389_v58 = vor.u32 %v4332_v48, %v3386_v49 }
 0x15e   : > { %2683 = vmatpush.bf16.msra.mxu3 %v3037_v57  ;;  %v4488_v14 = vld [vmem:[%s4831_s6 + $0x834] sm:$0xf0]  ;;  %2658 = vmatpush.bf16.msra.mxu1 %v3769_v27  ;;  %v4524_v56 = vld [vmem:[%s4831_s6 + $0x95c] sm:$0xf]  ;;  %v3645_v60 = vor.u32 %v4396_v50, %v3642_v52 }
 0x15f   : > { %v3993_v30 = vor.u32 %v4488_v14, %v3992_v9  ;;  %v4154_v57 = vld [vmem:[%s4831_s6 + $0x978] sm:$0xf0] }
 0x160   : > { %2645 = vmatpush.bf16.msra.mxu0 %v3513_v0  ;;  %2671 = vmatpush.bf16.msra.mxu2 %v4025_v5  ;;  %v4388_v0 = vld [vmem:[%s4831_s6 + $0x51c] sm:$0xf]  ;;  %v4157_v1 = vor.u32 %v4524_v56, %v4154_v57  ;;  %v2775_v57 = vrot.slane %v5402_v53, 3 }
 0x161   : > { %v4452_v2 = vld [vmem:[%s4831_s6 + $0x71c] sm:$0xf] }
 0x162   : > { %2684 = vmatpush.bf16.msra.mxu3 %v3005_v13  ;;  %2659 = vmatpush.bf16.msra.mxu1 %v3737_v26  ;;  %v3866_v27 = vld [vmem:[%s4831_s6 + $0x738] sm:$0xf0]  ;;  %v2453_v13 = vpop.f32.mrf.mxu1 }
 0x163   : > { %v4516_v5 = vld [vmem:[%s4831_s6 + $0x91c] sm:$0xf]  ;;  %v3869_v9 = vor.u32 %v4452_v2, %v3866_v27 }
 0x164   : > { %2646 = vmatpush.bf16.msra.mxu0 %v3481_v21  ;;  %2672 = vmatpush.bf16.msra.mxu2 %v3993_v30  ;;  %v2440_v6 = vpop.f32.mrf.mxu0  ;;  %v4316_v14 = vld [vmem:[%s4831_s6 + $0x2dc] sm:$0xf] }
 0x165   : > { %2660 = vmatmul.bf16.vlgmr.msra.gmra.mxu1 %v5294_v11  ;;  %v3610_v11 = vld [vmem:[%s4831_s6 + $0x538] sm:$0xf0]  ;;  %v2441_v12 = vadd.f32 %v2440_v6, %v2428_v33 }
 0x166   : > { %2685 = vmatpush.bf16.msra.mxu3 %v2973_v32  ;;  %2704 = vmatpush.bf16.msrb.mxu1 %v3709_v34  ;;  %v3613_v8 = vor.u32 %v4388_v0, %v3610_v11  ;;  %v3322_v16 = vld [vmem:[%s4831_s6 + $0x2f8] sm:$0xf0] }
 0x167   : > { %2673 = vmatmul.bf16.vlgmr.msra.gmra.mxu2 %v5364_v63  ;;  %2647 = vmatmul.bf16.vlgmr.msra.gmra.mxu0 %v5291_v10  ;;  %v4324_v10 = vld [vmem:[%s4831_s6 + $0x31c] sm:$0xf]  ;;  %v2454_v21 = vadd.f32 %v2453_v13, %v2441_v12  ;;  %v3325_v24 = vor.u32 %v4316_v14, %v3322_v16  ;;  %v2785_v16 = vsel %vm2782_vm4, %v5402_v53, %v2775_v57  ;;  %v4617_v53 = vld [vmem:[#allocation1 + $0x12] sm:$0xff] }
 0x168   : > { %2691 = vmatpush.bf16.msrb.mxu0 %v3453_v35  ;;  %2717 = vmatpush.bf16.msrb.mxu2 %v3965_v36  ;;  %v3357_v59 = vor.u32 %v4324_v10, %v3354_v62  ;;  %v4380_v17 = vld [vmem:[%s4831_s6 + $0x4dc] sm:$0xf] }
 0x169   : > { %2686 = vmatmul.bf16.vlgmr.msra.gmra.mxu3 %v5286_v7  ;;  %v4122_v7 = vld [vmem:[%s4831_s6 + $0x938] sm:$0xf0] }
 0x16a   : > { %2730 = vmatpush.bf16.msrb.mxu3 %v4221_v4  ;;  %2705 = vmatpush.bf16.msrb.mxu1 %v3677_v46  ;;  %v4125_v18 = vor.u32 %v4516_v5, %v4122_v7  ;;  %v3578_v15 = vld [vmem:[%s4831_s6 + $0x4f8] sm:$0xf0]  ;;  %v2466_v31 = vpop.f32.mrf.mxu2  ;;  %v2455_v52 = vpop.f32.mrf.mxu1 }
 0x16b   : > { %v4444_v19 = vld [vmem:[%s4831_s6 + $0x6dc] sm:$0xf]  ;;  %v3581_v26 = vor.u32 %v4380_v17, %v3578_v15  ;;  %v2467_v36 = vadd.f32 %v2466_v31, %v2454_v21 }
 0x16c   : > { %2692 = vmatpush.bf16.msrb.mxu0 %v3421_v44  ;;  %2718 = vmatpush.bf16.msrb.mxu2 %v3933_v47  ;;  %v3834_v20 = vld [vmem:[%s4831_s6 + $0x6f8] sm:$0xf0]  ;;  %v2479_v25 = vpop.f32.mrf.mxu3  ;;  %v2442_v46 = vpop.f32.mrf.mxu0 }
 0x16d   : > { %v4508_v22 = vld [vmem:[%s4831_s6 + $0x8dc] sm:$0xf]  ;;  %v3837_v30 = vor.u32 %v4444_v19, %v3834_v20  ;;  %v2480_v40 = vadd.f32 %v2479_v25, %v2467_v36 }
 0x16e   : > { %2731 = vmatpush.bf16.msrb.mxu3 %v4189_v51  ;;  %2706 = vmatpush.bf16.msrb.mxu1 %v3645_v60  ;;  %v4090_v23 = vld [vmem:[%s4831_s6 + $0x8f8] sm:$0xf0] }
 0x16f   : > { %v4308_v29 = vld [vmem:[%s4831_s6 + $0x29c] sm:$0xf]  ;;  %v4093_v34 = vor.u32 %v4508_v22, %v4090_v23  ;;  %vm2746_vm3 = vcmp.gt.f32.partialorder %v2480_v40, 0.0  ;;  %v2754_v54 = vmul.f32 0.2, %v2480_v40  ;;  %v4616_v22 = vld [vmem:[#allocation1 + $0x9] sm:$0xff] }
 0x170   : > { %2693 = vmatpush.bf16.msrb.mxu0 %v3389_v58  ;;  %2719 = vmatpush.bf16.msrb.mxu2 %v3901_v61  ;;  %v3290_v32 = vld [vmem:[%s4831_s6 + $0x2b8] sm:$0xf0]  ;;  %v2761_v58 = vsel %vm2745_vm2, %v5475_v45, %v2753_v38  ;;  %v4618_v23 = vld [vmem:[#allocation1 + $0x1b] sm:$0xff] }
 0x171   : > { %v4372_v35 = vld [vmem:[%s4831_s6 + $0x49c] sm:$0xf]  ;;  %v3293_v41 = vor.u32 %v4308_v29, %v3290_v32  ;;  %v2762_v61 = vsel %vm2746_vm3, %v2480_v40, %v2754_v54 }
 0x172   : > { %2732 = vmatpush.bf16.msrb.mxu3 %v4157_v1  ;;  %2707 = vmatpush.bf16.msrb.mxu1 %v3613_v8  ;;  %v3546_v37 = vld [vmem:[%s4831_s6 + $0x4b8] sm:$0xf0]  ;;  %v2768_v62 = vpack.c.bf16 %v2762_v61, %v2761_v58  ;;  %v2468_v27 = vpop.f32.mrf.mxu2 }
 0x173   : > { %v4436_v3 = vld [vmem:[%s4831_s6 + $0x69c] sm:$0xf]  ;;  %v3549_v47 = vor.u32 %v4372_v35, %v3546_v37 }
 0x174   : > { %2694 = vmatpush.bf16.msrb.mxu0 %v3357_v59  ;;  %2720 = vmatpush.bf16.msrb.mxu2 %v3869_v9  ;;  %v3802_v4 = vld [vmem:[%s4831_s6 + $0x6b8] sm:$0xf0]  ;;  %v2481_v8 = vpop.f32.mrf.mxu3  ;;  %v2776_v9 = vrot.slane %v2768_v62, 6  ;;  %v2777_v12 = vrot.slane %v2768_v62, 1 }
 0x175   : > { %v4500_v39 = vld [vmem:[%s4831_s6 + $0x89c] sm:$0xf]  ;;  %v3805_v48 = vor.u32 %v4436_v3, %v3802_v4  ;;  %v601_v8 = vperm.slane %v5514_v42, 6 }
 0x176   : > { %2733 = vmatpush.bf16.msrb.mxu3 %v4125_v18  ;;  %v4058_v28 = vld [vmem:[%s4831_s6 + $0x8b8] sm:$0xf0]  ;;  %2708 = vmatpush.bf16.msrb.mxu1 %v3581_v26  ;;  %v2789_v18 = vsel %vm2786_vm5, %v2776_v9, %v2777_v12 }
 0x177   : > { %v4300_v43 = vld [vmem:[%s4831_s6 + $0x25c] sm:$0xf]  ;;  %v4061_v55 = vor.u32 %v4500_v39, %v4058_v28  ;;  %v5580_v20 = vsel %vm2790_vm6, %v2785_v16, %v2789_v18  ;;  %v600_v39 = vperm.slane %v5514_v42, 5 }
 0x178   : > { %2695 = vmatpush.bf16.msrb.mxu0 %v3325_v24  ;;  %v3258_v44 = vld [vmem:[%s4831_s6 + $0x278] sm:$0xf0]  ;;  %2721 = vmatpush.bf16.msrb.mxu2 %v3837_v30  ;;  %v599_v24 = vperm.slane %v5514_v42, 4 }
 0x179   : > { %v4364_v49 = vld [vmem:[%s4831_s6 + $0x45c] sm:$0xf]  ;;  %v3261_v10 = vor.u32 %v4300_v43, %v3258_v44 }
 0x17a   : > { %v3514_v50 = vld [vmem:[%s4831_s6 + $0x478] sm:$0xf0]  ;;  %2734 = vmatpush.bf16.msrb.mxu3 %v4093_v34  ;;  %2709 = vmatpush.bf16.msrb.mxu1 %v3549_v47 }
 0x17b   : > { %v4428_v51 = vld [vmem:[%s4831_s6 + $0x65c] sm:$0xf]  ;;  %v3517_v0 = vor.u32 %v4364_v49, %v3514_v50 }
 0x17c   : > { %v3770_v56 = vld [vmem:[%s4831_s6 + $0x678] sm:$0xf0]  ;;  %2696 = vmatpush.bf16.msrb.mxu0 %v3293_v41  ;;  %2722 = vmatpush.bf16.msrb.mxu2 %v3805_v48 }
 0x17d   : > { %v4492_v33 = vld [vmem:[%s4831_s6 + $0x85c] sm:$0xf]  ;;  %v3773_v1 = vor.u32 %v4428_v51, %v3770_v56 }
 0x17e   : > { %v4026_v60 = vld [vmem:[%s4831_s6 + $0x878] sm:$0xf0]  ;;  %2735 = vmatpush.bf16.msrb.mxu3 %v4061_v55  ;;  %2710 = vmatpush.bf16.msrb.mxu1 %v3517_v0 }
 0x17f   : > { %v4292_v11 = vld [vmem:[%s4831_s6 + $0x21c] sm:$0xf]  ;;  %v4029_v5 = vor.u32 %v4492_v33, %v4026_v60 }
 0x180   : > { %v3226_v2 = vld [vmem:[%s4831_s6 + $0x238] sm:$0xf0]  ;;  %2697 = vmatpush.bf16.msrb.mxu0 %v3261_v10  ;;  %2723 = vmatpush.bf16.msrb.mxu2 %v3773_v1 }
 0x181   : > { %v4356_v45 = vld [vmem:[%s4831_s6 + $0x41c] sm:$0xf]  ;;  %v3229_v17 = vor.u32 %v4292_v11, %v3226_v2 }
 0x182   : > { %v3482_v7 = vld [vmem:[%s4831_s6 + $0x438] sm:$0xf0]  ;;  %2736 = vmatpush.bf16.msrb.mxu3 %v4029_v5  ;;  %v2505_v31 = vpop.f32.mrf.mxu1 }
 0x183   : > { %v4420_v59 = vld [vmem:[%s4831_s6 + $0x61c] sm:$0xf]  ;;  %v3485_v15 = vor.u32 %v4356_v45, %v3482_v7 }
 0x184   : > { %v3738_v6 = vld [vmem:[%s4831_s6 + $0x638] sm:$0xf0]  ;;  %2698 = vmatpush.bf16.msrb.mxu0 %v3229_v17  ;;  %v2492_v26 = vpop.f32.mrf.mxu0 }
 0x185   : > { %v4484_v13 = vld [vmem:[%s4831_s6 + $0x81c] sm:$0xf]  ;;  %v3741_v19 = vor.u32 %v4420_v59, %v3738_v6  ;;  %2711 = vmatpush.bf16.msrb.mxu1 %v3485_v15  ;;  %v2493_v30 = vadd.f32 %v2492_v26, %v599_v24 }
 0x186   : > { %v3994_v14 = vld [vmem:[%s4831_s6 + $0x838] sm:$0xf0] }
 0x187   : > { %v3997_v21 = vor.u32 %v4484_v13, %v3994_v14  ;;  %2724 = vmatpush.bf16.msrb.mxu2 %v3741_v19  ;;  %2699 = vmatmul.bf16.vlgmr.msrb.gmra.mxu0 %v4616_v22  ;;  %v2506_v29 = vadd.f32 %v2505_v31, %v2493_v30  ;;  %v602_v14 = vperm.slane %v5514_v42, 7 }
 0x188   : > { %2712 = vmatmul.bf16.vlgmr.msrb.gmra.mxu1 %v4617_v53 }
 0x189   : > { %2737 = vmatpush.bf16.msrb.mxu3 %v3997_v21 }
 0x18a   : > { %2725 = vmatmul.bf16.vlgmr.msrb.gmra.mxu2 %v4618_v23  ;;  %v2507_v37 = vpop.f32.mrf.mxu1 }
 0x18c   : > { %2738 = vmatmul.bf16.vlgmr.msrb.gmra.mxu3 %v5364_v63  ;;  %v2518_v32 = vpop.f32.mrf.mxu2  ;;  %v2531_v35 = vpop.f32.mrf.mxu3 }
 0x18d   : > { %v2519_v34 = vadd.f32 %v2518_v32, %v2506_v29  ;;  %v2494_v36 = vpop.f32.mrf.mxu0 }
 0x18f   : > { %v2532_v25 = vadd.f32 %v2531_v35, %v2519_v34 }
 0x194   : > { %v2520_v3 = vpop.f32.mrf.mxu2  ;;  %v2533_v4 = vpop.f32.mrf.mxu3 }
 0x1a2   : > { %v2557_v40 = vpop.f32.mrf.mxu1 }
 0x1a3   : > { %v2558_v63 = vadd.f32 %v2557_v40, %v600_v39 }
 0x1a4   : > { %v2544_v38 = vpop.f32.mrf.mxu0 }
 0x1a5   : > { %v2545_v28 = vadd.f32 %v2544_v38, %v2532_v25 }
 0x1a7   : > { %v2755_v55 = vmul.f32 0.2, %v2545_v28  ;;  %vm2747_vm7 = vcmp.gt.f32.partialorder %v2545_v28, 0.0 }
 0x1a9   : > { %v2763_v58 = vsel %vm2747_vm7, %v2545_v28, %v2755_v55 }
 0x1aa   : > { %v2570_v41 = vpop.f32.mrf.mxu2  ;;  %v2559_v47 = vpop.f32.mrf.mxu1 }
 0x1ab   : > { %v2571_v44 = vadd.f32 %v2570_v41, %v2558_v63 }
 0x1ac   : > { %v2546_v43 = vpop.f32.mrf.mxu0  ;;  %v2583_v46 = vpop.f32.mrf.mxu3 }
 0x1ad   : > { %v2584_v48 = vadd.f32 %v2583_v46, %v2571_v44 }
 0x1b2   : > { %v2572_v49 = vpop.f32.mrf.mxu2 }
 0x1b4   : > { %v2585_v50 = vpop.f32.mrf.mxu3 }
 0x1c2   : > { %v2609_v54 = vpop.f32.mrf.mxu1 }
 0x1c4   : > { %v2596_v51 = vpop.f32.mrf.mxu0 }
 0x1c5   : > { %v2597_v52 = vadd.f32 %v2596_v51, %v2584_v48 }
 0x1c7   : > { %v2610_v56 = vadd.f32 %v2609_v54, %v2597_v52 }
 0x1c9   : > { %vm2748_vm8 = vcmp.gt.f32.partialorder %v2610_v56, 0.0  ;;  %v2756_v57 = vmul.f32 0.2, %v2610_v56 }
 0x1ca   : > { %v2622_v60 = vpop.f32.mrf.mxu2  ;;  %v2611_v0 = vpop.f32.mrf.mxu1 }
 0x1cb   : > { %v2764_v33 = vsel %vm2748_vm8, %v2610_v56, %v2756_v57  ;;  %v2623_v12 = vadd.f32 %v2622_v60, %v601_v8 }
 0x1cc   : > { %v2769_v61 = vpack.c.bf16 %v2764_v33, %v2763_v58  ;;  %v2598_v10 = vpop.f32.mrf.mxu0  ;;  %v2635_v62 = vpop.f32.mrf.mxu3 }
 0x1cd   : > { %v2636_v13 = vadd.f32 %v2635_v62, %v2623_v12 }
 0x1ce   : > { %v2778_v36 = vrot.slane %v2769_v61, 4  ;;  %v2779_v25 = vrot.slane %v2769_v61, 7 }
 0x1d0   : > { %v2795_v28 = vsel %vm2792_vm11, %v2778_v36, %v2779_v25 }
 0x1d2   : > { %v2624_v1 = vpop.f32.mrf.mxu2 }
 0x1d4   : > { %v2637_v11 = vpop.f32.mrf.mxu3 }
 0x1e2   : > { %v2661_v45 = vpop.f32.mrf.mxu1 }
 0x1e4   : > { %v2648_v2 = vpop.f32.mrf.mxu0 }
 0x1e5   : > { %v2649_v16 = vadd.f32 %v2648_v2, %v2636_v13 }
 0x1e7   : > { %v2662_v19 = vadd.f32 %v2661_v45, %v2649_v16 }
 0x1ea   : > { %v2674_v27 = vpop.f32.mrf.mxu2  ;;  %v2663_v59 = vpop.f32.mrf.mxu1 }
 0x1eb   : > { %v2675_v22 = vadd.f32 %v2674_v27, %v2662_v19 }
 0x1ec   : > { %v2687_v5 = vpop.f32.mrf.mxu3  ;;  %v2650_v7 = vpop.f32.mrf.mxu0 }
 0x1ed   : > { %v2688_v17 = vadd.f32 %v2687_v5, %v602_v14  ;;  %v2757_v29 = vmul.f32 0.2, %v2675_v22  ;;  %vm2749_vm9 = vcmp.gt.f32.partialorder %v2675_v22, 0.0 }
 0x1ef   : > { %v2765_v35 = vsel %vm2749_vm9, %v2675_v22, %v2757_v29 }
 0x1f2   : > { %v2676_v6 = vpop.f32.mrf.mxu2 }
 0x1f4   : > { %v2689_v9 = vpop.f32.mrf.mxu3 }
 0x204   : > { %v2700_v18 = vpop.f32.mrf.mxu0 }
 0x205   : > { %v2713_v15 = vpop.f32.mrf.mxu1  ;;  %v2701_v21 = vadd.f32 %v2700_v18, %v2688_v17 }
 0x207   : > { %v2714_v53 = vadd.f32 %v2713_v15, %v2701_v21 }
 0x20c   : > { %v2702_v30 = vpop.f32.mrf.mxu0 }
 0x20d   : > { %v2726_v23 = vpop.f32.mrf.mxu2  ;;  %v2715_v31 = vpop.f32.mrf.mxu1 }
 0x20e   : > { %v2727_v24 = vadd.f32 %v2726_v23, %v2714_v53 }
 0x20f   : > { %v2739_v26 = vpop.f32.mrf.mxu3 }
 0x210   : > { %v2740_v32 = vadd.f32 %v2739_v26, %v2727_v24 }
 0x212   : > { %vm2750_vm10 = vcmp.gt.f32.partialorder %v2740_v32, 0.0  ;;  %v2758_v42 = vmul.f32 0.2, %v2740_v32 }
 0x214   : > { %v2766_v34 = vsel %vm2750_vm10, %v2740_v32, %v2758_v42 }
 0x215   : > { %v2770_v37 = vpack.c.bf16 %v2766_v34, %v2765_v35  ;;  %v2728_v3 = vpop.f32.mrf.mxu2 }
 0x217   : > { %v2741_v4 = vpop.f32.mrf.mxu3  ;;  %v2780_v38 = vrot.slane %v2770_v37, 2  ;;  %v2781_v39 = vrot.slane %v2770_v37, 5 }
 0x219   : > { %v2799_v40 = vsel %vm2796_vm12, %v2780_v38, %v2781_v39 }
 0x21a   : > { %v2801_v63 = vsel %vm2800_vm13, %v2795_v28, %v2799_v40 }
 0x21b   : > { %v2803_v41 = vsel %vm2802_vm14, %v5580_v20, %v2801_v63 }
 0x21c   : > { %2805 = vst [vmem:[%s270_s11] sm:$0xff] %v2803_v41 }
 0x21d PF: > { %s19_s17 = sadd.s32 1, %s4733_s17   ;;  %s5616_s12 = smov %s4717_s13 }
 0x21e   : > { %p16_p0 = scmp.ge.s32.totalorder %s19_s17, 4   ;;  %s5617_s13 = smov %s4721_s14 }
 0x21f   : > { %s5618_s14 = smov %s4803_s23  ;;  %s5619_s15 = smov %s4729_s16 }
 0x220   : > { %s5620_s16 = smov %s5622_s19  ;;  %18 = sbr.rel (!%p16_p0) target bundleno = 6 (0x6), region = 88 }
 0x225   :  { %2834 = vsyncpa [#allocation3], 1 }
 0x226   :  { %2836 = vsyncpa [#allocation3 + $0x1], 1 }
 0x227   :  { %2837 = vsyncpa [#allocation5], 1 }
 0x228   :  { %2839 = vsyncpa [#allocation5 + $0x1], 1 }

// kernel: generator_forward.8
= control target key start
LH: loop header
LB: loop body
LE: loop exit
PB: predicated region body
PF: predicated region fallthrough
CT: control target
= control target key end

     0   :  { %s1054_s9 = smov 0   ;;  %s1056_s10 = smov 0   ;;  %s1394_s0 = inlined_call_operand.vmem [shape: bf16[128,64], index: 0, kind: input, shape index: {}]   ;;  %s1395_s1 = inlined_call_operand.vmem [shape: bf16[64,896], index: 1, kind: input, shape index: {}]   ;;  %s1396_s2 = inlined_call_operand.vmem [shape: bf16[128,896], index: 2, kind: output, shape index: {}]  }
   0x1   :  { %s1058_s11 = smov 0  }
   0x2 LB: > { %s24_s12 = sadd.s32 1, %s1033_s10  ;;  %p783_p0 = scmp.ge.s32.totalorder %s1037_s11, 1  ;;  %s1037_s11 = sphi %s1058_s11, %s12_s11   ;;  %s1033_s10 = sphi %s1056_s10, %s1398_s10   ;;  %s1029_s9 = sphi %s1054_s9, %s1397_s9  }
   0x3   : > { %p26_p1 = scmp.ge.s32.totalorder %s24_s12, 2  ;;  %p138_p2 = scmp.lt.s32.totalorder %s1037_s11, 3 }
   0x5   : > { %s1400_s12 = smov (%p26_p1, %s24_s12), 0  ;;  %p139_p3 = pnand %p783_p0, %p138_p2 }
   0x6   : > { %s784_s7 = sshll.u32 (!%p139_p3), %s1029_s9, 3 }
   0x7   : > { %142 = sbr.rel (%p139_p3) target bundleno = 272 (0x110), region = 28  ;;  %p171_p4 = scmp.lt.s32.totalorder (!%p139_p3), %s784_s7, 15 }
   0xc   : > { %v890_v0 = vld [vmem:[%s1395_s1 + $0xa8] sm:$0xf]  ;;  %v974_v1 = vld [vmem:[%s1395_s1 + $0xc0] sm:$0xf0]  ;;  %v971_v2 = vld [vmem:[%s1395_s1 + $0xac] sm:$0xf] }
   0xd   : > { %v891_v3 = vor.u32 %v974_v1, %v890_v0  ;;  %v892_v4 = vld [vmem:[%s1395_s1 + $0xc4] sm:$0xf0]  ;;  %v898_v5 = vld [vmem:[%s1395_s1 + $0xb0] sm:$0xf]  ;;  %v975_v6 = vld [vmem:[%s1395_s1 + $0xc8] sm:$0xf0] }
   0xe   : > { %v1092_v7 = vor.u32 %v971_v2, %v892_v4  ;;  %v1094_v8 = vor.u32 %v975_v6, %v898_v5  ;;  %v862_v9 = vld [vmem:[%s1395_s1 + $0x70] sm:$0xf]  ;;  %v967_v10 = vld [vmem:[%s1395_s1 + $0x88] sm:$0xf0]  ;;  %v964_v11 = vld [vmem:[%s1395_s1 + $0x74] sm:$0xf] }
   0xf   : > { %416 = vmatpush.bf16.msra.mxu0 %v891_v3  ;;  %978 = vmatpush.bf16.msra.mxu3 %v891_v3  ;;  %v863_v12 = vor.u32 %v967_v10, %v862_v9  ;;  %v864_v13 = vld [vmem:[%s1395_s1 + $0x8c] sm:$0xf0]  ;;  %v870_v14 = vld [vmem:[%s1395_s1 + $0x78] sm:$0xf]  ;;  %v968_v15 = vld [vmem:[%s1395_s1 + $0x90] sm:$0xf0] }
  0x10   : > { %982 = vmatpush.bf16.msra.mxu1 %v1092_v7  ;;  %986 = vmatpush.bf16.msra.mxu2 %v1094_v8  ;;  %v1116_v16 = vor.u32 %v964_v11, %v864_v13  ;;  %v1118_v17 = vor.u32 %v968_v15, %v870_v14  ;;  %v834_v18 = vld [vmem:[%s1395_s1 + $0x38] sm:$0xf]  ;;  %v960_v19 = vld [vmem:[%s1395_s1 + $0x50] sm:$0xf0]  ;;  %v957_v20 = vld [vmem:[%s1395_s1 + $0x3c] sm:$0xf] }
  0x11   : > { %v836_v21 = vld [vmem:[%s1395_s1 + $0x54] sm:$0xf0]  ;;  %v842_v22 = vld [vmem:[%s1395_s1 + $0x40] sm:$0xf]  ;;  %v961_v23 = vld [vmem:[%s1395_s1 + $0x58] sm:$0xf0]  ;;  %v835_v24 = vor.u32 %v960_v19, %v834_v18 }
  0x12   : > { %v806_v25 = vld [vmem:[%s1395_s1] sm:$0xf]  ;;  %v953_v26 = vld [vmem:[%s1395_s1 + $0x18] sm:$0xf0]  ;;  %v950_v27 = vld [vmem:[%s1395_s1 + $0x4] sm:$0xf]  ;;  %v1149_v28 = vor.u32 %v957_v20, %v836_v21  ;;  %v1151_v29 = vor.u32 %v961_v23, %v842_v22 }
  0x13   : > { %417 = vmatpush.bf16.msra.mxu0 %v863_v12  ;;  %979 = vmatpush.bf16.msra.mxu3 %v863_v12  ;;  %v808_v30 = vld [vmem:[%s1395_s1 + $0x1c] sm:$0xf0]  ;;  %v814_v31 = vld [vmem:[%s1395_s1 + $0x8] sm:$0xf]  ;;  %v954_v32 = vld [vmem:[%s1395_s1 + $0x20] sm:$0xf0]  ;;  %v807_v37 = vor.u32 %v953_v26, %v806_v25 }
  0x14   : > { %983 = vmatpush.bf16.msra.mxu1 %v1116_v16  ;;  %987 = vmatpush.bf16.msra.mxu2 %v1118_v17  ;;  %v972_v33 = vld [vmem:[%s1395_s1 + $0xb4] sm:$0xf]  ;;  %v900_v34 = vld [vmem:[%s1395_s1 + $0xcc] sm:$0xf0]  ;;  %v914_v35 = vld [vmem:[%s1395_s1 + $0xc0] sm:$0xf]  ;;  %v811_v38 = vor.u32 %v950_v27, %v808_v30  ;;  %v1179_v39 = vor.u32 %v954_v32, %v814_v31 }
  0x15   : > { %v977_v36 = vld [vmem:[%s1395_s1 + $0xd8] sm:$0xf0]  ;;  %s1402_s7 = smov (!%p171_p4, %s784_s7), 15  ;;  %v903_v41 = vor.u32 %v972_v33, %v900_v34  ;;  %v908_v43 = vld [vmem:[%s1395_s1 + $0xd4] sm:$0xf0]  ;;  %vm399_vm0 = vcmask 523264  }
  0x16   : > { %v973_v40 = vld [vmem:[%s1395_s1 + $0xbc] sm:$0xf]  ;;  %s785_s23 = sshll.u32 %s1402_s7, 2  ;;  %v915_v42 = vor.u32 %v977_v36, %v914_v35  ;;  %v872_v45 = vld [vmem:[%s1395_s1 + $0x94] sm:$0xf0]  ;;  %s990_s6 = smul.u32 28, %s1402_s7 }
  0x17   : > { %418 = vmatpush.bf16.msra.mxu0 %v835_v24  ;;  %980 = vmatpush.bf16.msra.mxu3 %v835_v24  ;;  %v965_v44 = vld [vmem:[%s1395_s1 + $0x7c] sm:$0xf]  ;;  %s1194_s30 = scalar_lea.vmem %s1394_s0, %s785_s23  ;;  %v886_v46 = vld [vmem:[%s1395_s1 + $0x88] sm:$0xf]  ;;  %v970_v47 = vld [vmem:[%s1395_s1 + $0xa0] sm:$0xf0]  ;;  %v911_v50 = vor.u32 %v973_v40, %v908_v43 }
  0x18   : > { %984 = vmatpush.bf16.msra.mxu1 %v1149_v28  ;;  %988 = vmatpush.bf16.msra.mxu2 %v1151_v29  ;;  %v1206_v48 = vld [vmem:[%s1194_s30] sm:$0xff]  ;;  %v1209_v49 = vld [vmem:[%s1194_s30 + $0x8] sm:$0xff]  ;;  %v875_v51 = vor.u32 %v965_v44, %v872_v45  ;;  %v887_v52 = vor.u32 %v970_v47, %v886_v46  ;;  %v858_v57 = vld [vmem:[%s1395_s1 + $0x50] sm:$0xf]  ;;  %s1333_s14 = scalar_lea.vmem %s1396_s2, %s990_s6 }
  0x19   : > { %v966_v53 = vld [vmem:[%s1395_s1 + $0x84] sm:$0xf]  ;;  %v880_v54 = vld [vmem:[%s1395_s1 + $0x9c] sm:$0xf0]  ;;  %v963_v58 = vld [vmem:[%s1395_s1 + $0x68] sm:$0xf0] }
  0x1a   : > { %v958_v55 = vld [vmem:[%s1395_s1 + $0x44] sm:$0xf]  ;;  %v844_v56 = vld [vmem:[%s1395_s1 + $0x5c] sm:$0xf0]  ;;  %v883_v59 = vor.u32 %v966_v53, %v880_v54  ;;  %v859_v61 = vor.u32 %v963_v58, %v858_v57  ;;  %v959_v62 = vld [vmem:[%s1395_s1 + $0x4c] sm:$0xf] }
  0x1b   : > { %419 = vmatpush.bf16.msra.mxu0 %v807_v37  ;;  %981 = vmatpush.bf16.msra.mxu3 %v807_v37  ;;  %v847_v60 = vor.u32 %v958_v55, %v844_v56  ;;  %v852_v63 = vld [vmem:[%s1395_s1 + $0x64] sm:$0xf0]  ;;  %v951_v0 = vld [vmem:[%s1395_s1 + $0xc] sm:$0xf]  ;;  %v830_v2 = vld [vmem:[%s1395_s1 + $0x18] sm:$0xf] }
  0x1c   : > { %985 = vmatpush.bf16.msra.mxu1 %v811_v38  ;;  %989 = vmatpush.bf16.msra.mxu2 %v1179_v39  ;;  %v816_v1 = vld [vmem:[%s1395_s1 + $0x24] sm:$0xf0]  ;;  %v956_v3 = vld [vmem:[%s1395_s1 + $0x30] sm:$0xf0]  ;;  %v855_v4 = vor.u32 %v959_v62, %v852_v63  ;;  %v824_v9 = vld [vmem:[%s1395_s1 + $0x2c] sm:$0xf0] }
  0x1d   : > { %v819_v5 = vor.u32 %v951_v0, %v816_v1  ;;  %v831_v6 = vor.u32 %v956_v3, %v830_v2  ;;  %v948_v11 = vld [vmem:[%s1194_s30 + $0x10] sm:$0xff]  ;;  %v906_v12 = vld [vmem:[%s1395_s1 + $0xb8] sm:$0xf]  ;;  %v878_v14 = vld [vmem:[%s1395_s1 + $0x80] sm:$0xf] }
  0x1e   : > { %916 = vmatmul.msk.bf16.vlgmr.msra.gmra.mxu0 %vm399_vm0, %v1206_v48  ;;  %917 = vmatmul.msk.bf16.vlgmr.msra.gmra.mxu3 %vm399_vm0, %v1209_v49  ;;  %v976_v13 = vld [vmem:[%s1395_s1 + $0xd0] sm:$0xf0]  ;;  %v969_v15 = vld [vmem:[%s1395_s1 + $0x98] sm:$0xf0]  ;;  %v850_v18 = vld [vmem:[%s1395_s1 + $0x48] sm:$0xf] }
  0x1f   : > { %503 = vmatpush.bf16.msrb.mxu3 %v903_v41  ;;  %921 = vmatmul.msk.bf16.vlgmr.msra.gmra.mxu1 %vm399_vm0, %v1209_v49  ;;  %v962_v19 = vld [vmem:[%s1395_s1 + $0x60] sm:$0xf0]  ;;  %v822_v21 = vld [vmem:[%s1395_s1 + $0x10] sm:$0xf]  ;;  %v955_v22 = vld [vmem:[%s1395_s1 + $0x28] sm:$0xf0] }
  0x20   : > { %590 = vmatpush.bf16.msrb.mxu2 %v915_v42  ;;  %445 = vmatpush.bf16.msrb.mxu0 %v1092_v7  ;;  %v952_v7 = vld [vmem:[%s1395_s1 + $0x14] sm:$0xf]  ;;  %v851_v20 = vor.u32 %v962_v19, %v850_v18  ;;  %v823_v23 = vor.u32 %v955_v22, %v822_v21 }
  0x21   : > { %925 = vmatmul.msk.bf16.vlgmr.msra.gmra.mxu2 %vm399_vm0, %v1209_v49  ;;  %561 = vmatpush.bf16.msrb.mxu1 %v911_v50  ;;  %v827_v10 = vor.u32 %v952_v7, %v824_v9 }
  0x23   : > { %504 = vmatpush.bf16.msrb.mxu3 %v875_v51 }
  0x24   : > { %591 = vmatpush.bf16.msrb.mxu2 %v887_v52  ;;  %446 = vmatpush.bf16.msrb.mxu0 %v1116_v16  ;;  %v949_v16 = vld [vmem:[%s1194_s30 + $0x18] sm:$0xff] }
  0x25   : > { %562 = vmatpush.bf16.msrb.mxu1 %v883_v59 }
  0x27   : > { %505 = vmatpush.bf16.msrb.mxu3 %v847_v60 }
  0x28   : > { %592 = vmatpush.bf16.msrb.mxu2 %v859_v61  ;;  %447 = vmatpush.bf16.msrb.mxu0 %v1149_v28 }
  0x29   : > { %563 = vmatpush.bf16.msrb.mxu1 %v855_v4 }
  0x2b   : > { %506 = vmatpush.bf16.msrb.mxu3 %v819_v5 }
  0x2c   : > { %593 = vmatpush.bf16.msrb.mxu2 %v831_v6  ;;  %448 = vmatpush.bf16.msrb.mxu0 %v811_v38 }
  0x2d   : > { %564 = vmatpush.bf16.msrb.mxu1 %v827_v10 }
  0x2e   : > { %918 = vmatmul.msk.bf16.gmra.mxu3 %vm399_vm0, %v948_v11 }
  0x2f   : > { %920 = vmatmul.msk.bf16.vlgmr.msrb.gmra.mxu0 %vm399_vm0, %v1206_v48  ;;  %922 = vmatmul.msk.bf16.gmra.mxu1 %vm399_vm0, %v948_v11 }
  0x30   : > { %474 = vmatpush.bf16.msra.mxu0 %v1094_v8  ;;  %v907_v8 = vor.u32 %v976_v13, %v906_v12 }
  0x31   : > { %926 = vmatmul.msk.bf16.gmra.mxu2 %vm399_vm0, %v948_v11 }
  0x34   : > { %475 = vmatpush.bf16.msra.mxu0 %v1118_v17  ;;  %v879_v17 = vor.u32 %v969_v15, %v878_v14 }
  0x38   : > { %476 = vmatpush.bf16.msra.mxu0 %v1151_v29 }
  0x3c   : > { %477 = vmatpush.bf16.msra.mxu0 %v1179_v39 }
  0x3e   : > { %919 = vmatmul.msk.bf16.gmra.mxu3 %vm399_vm0, %v949_v16 }
  0x3f   : > { %923 = vmatmul.msk.bf16.gmra.mxu1 %vm399_vm0, %v949_v16  ;;  %924 = vmatmul.msk.bf16.vlgmr.msra.gmra.mxu0 %vm399_vm0, %v1206_v48 }
  0x40   : > { %532 = vmatpush.bf16.msrb.mxu0 %v907_v8 }
  0x41   : > { %927 = vmatmul.msk.bf16.gmra.mxu2 %vm399_vm0, %v949_v16 }
  0x44   : > { %533 = vmatpush.bf16.msrb.mxu0 %v879_v17 }
  0x48   : > { %534 = vmatpush.bf16.msrb.mxu0 %v851_v20 }
  0x4c   : > { %535 = vmatpush.bf16.msrb.mxu0 %v823_v23 }
  0x4e   : > { %928 = vmatmul.msk.bf16.vlgmr.msrb.gmra.mxu3 %vm399_vm0, %v1206_v48 }
  0x4f   : > { %932 = vmatmul.msk.bf16.vlgmr.msrb.gmra.mxu0 %vm399_vm0, %v1206_v48  ;;  %936 = vmatmul.msk.bf16.vlgmr.msrb.gmra.mxu1 %vm399_vm0, %v1206_v48 }
  0x51   : > { %940 = vmatmul.msk.bf16.vlgmr.msrb.gmra.mxu2 %vm399_vm0, %v1206_v48 }
  0x5e   : > { %929 = vmatmul.msk.bf16.gmra.mxu3 %vm399_vm0, %v1209_v49 }
  0x5f   : > { %933 = vmatmul.msk.bf16.gmra.mxu0 %vm399_vm0, %v1209_v49  ;;  %937 = vmatmul.msk.bf16.gmra.mxu1 %vm399_vm0, %v1209_v49 }
  0x61   : > { %941 = vmatmul.msk.bf16.gmra.mxu2 %vm399_vm0, %v1209_v49 }
  0x6e   : > { %930 = vmatmul.msk.bf16.gmra.mxu3 %vm399_vm0, %v948_v11 }
  0x6f   : > { %934 = vmatmul.msk.bf16.gmra.mxu0 %vm399_vm0, %v948_v11  ;;  %938 = vmatmul.msk.bf16.gmra.mxu1 %vm399_vm0, %v948_v11 }
  0x71   : > { %942 = vmatmul.msk.bf16.gmra.mxu2 %vm399_vm0, %v948_v11 }
  0x7e   : > { %931 = vmatmul.msk.bf16.gmra.mxu3 %vm399_vm0, %v949_v16 }
  0x7f   : > { %935 = vmatmul.msk.bf16.gmra.mxu0 %vm399_vm0, %v949_v16  ;;  %939 = vmatmul.msk.bf16.gmra.mxu1 %vm399_vm0, %v949_v16 }
  0x81   : > { %943 = vmatmul.msk.bf16.gmra.mxu2 %vm399_vm0, %v949_v16 }
  0x9b   : > { %v421_v24 = vpop.f32.mrf.mxu0 }
  0x9c   : > { %v455_v25 = vpop.f32.mrf.mxu1 }
  0xa1   : > { %v426_v26 = vpop.f32.mrf.mxu3 }
  0xa2   : > { %v623_v27 = vpack.c.bf16 %v455_v25, %v426_v26 }
  0xa3   : > { %v423_v29 = vpop.f32.mrf.mxu0 }
  0xa4   : > { %v1335_v28 = vpop.f32.mrf.mxu2  ;;  %655 = vst [vmem:[%s1333_s14 + $0x38] sm:$0xff] %v623_v27  ;;  %v457_v30 = vpop.f32.mrf.mxu1 }
  0xa9   : > { %v428_v31 = vpop.f32.mrf.mxu3 }
  0xaa   : > { %v627_v32 = vpack.c.bf16 %v457_v30, %v428_v31 }
  0xac   : > { %v1338_v33 = vpop.f32.mrf.mxu2  ;;  %659 = vst [vmem:[%s1333_s14 + $0x54] sm:$0xff] %v627_v32  ;;  %v450_v34 = vpop.f32.mrf.mxu0 }
  0xad   : > { %v460_v35 = vpop.f32.mrf.mxu1  ;;  %v615_v36 = vpack.c.bf16 %v450_v34, %v421_v24 }
  0xaf   : > { %647 = vst [vmem:[%s1333_s14] sm:$0xff] %v615_v36 }
  0xb1   : > { %v431_v37 = vpop.f32.mrf.mxu3 }
  0xb2   : > { %v631_v38 = vpack.c.bf16 %v460_v35, %v431_v37 }
  0xb4   : > { %v1342_v39 = vpop.f32.mrf.mxu2  ;;  %663 = vst [vmem:[%s1333_s14 + $0x70] sm:$0xff] %v631_v38  ;;  %v452_v40 = vpop.f32.mrf.mxu0 }
  0xb5   : > { %v462_v41 = vpop.f32.mrf.mxu1  ;;  %v619_v42 = vpack.c.bf16 %v452_v40, %v423_v29 }
  0xb7   : > { %651 = vst [vmem:[%s1333_s14 + $0x1c] sm:$0xff] %v619_v42 }
  0xb9   : > { %v433_v43 = vpop.f32.mrf.mxu3 }
  0xba   : > { %v635_v44 = vpack.c.bf16 %v462_v41, %v433_v43 }
  0xbc   : > { %v1346_v45 = vpop.f32.mrf.mxu2  ;;  %667 = vst [vmem:[%s1333_s14 + $0x8c] sm:$0xff] %v635_v44  ;;  %v479_v47 = vpop.f32.mrf.mxu0 }
  0xbd   : > { %v465_v46 = vpop.f32.mrf.mxu1 }
  0xc1   : > { %v436_v48 = vpop.f32.mrf.mxu3 }
  0xc2   : > { %v639_v49 = vpack.c.bf16 %v465_v46, %v436_v48 }
  0xc4   : > { %v1349_v50 = vpop.f32.mrf.mxu2  ;;  %671 = vst [vmem:[%s1333_s14 + $0xa8] sm:$0xff] %v639_v49  ;;  %v481_v52 = vpop.f32.mrf.mxu0 }
  0xc5   : > { %v467_v51 = vpop.f32.mrf.mxu1 }
  0xc9   : > { %v438_v53 = vpop.f32.mrf.mxu3 }
  0xca   : > { %v643_v54 = vpack.c.bf16 %v467_v51, %v438_v53 }
  0xcc   : > { %v1352_v55 = vpop.f32.mrf.mxu2  ;;  %675 = vst [vmem:[%s1333_s14 + $0xc4] sm:$0xff] %v643_v54  ;;  %v537_v56 = vpop.f32.mrf.mxu0 }
  0xcd   : > { %v566_v57 = vpop.f32.mrf.mxu1 }
  0xce   : > { %v617_v58 = vpack.c.bf16 %v566_v57, %v537_v56 }
  0xd0   : > { %649 = vst [vmem:[%s1333_s14 + $0x10] sm:$0xff] %v617_v58 }
  0xd1   : > { %v508_v59 = vpop.f32.mrf.mxu3 }
  0xd2   : > { %v616_v60 = vpack.c.bf16 %v508_v59, %v479_v47 }
  0xd4   : > { %v595_v61 = vpop.f32.mrf.mxu2  ;;  %648 = vst [vmem:[%s1333_s14 + $0x8] sm:$0xff] %v616_v60  ;;  %v539_v63 = vpop.f32.mrf.mxu0 }
  0xd5   : > { %v618_v62 = vpack.c.bf16 %v595_v61, %v595_v61  ;;  %v568_v0 = vpop.f32.mrf.mxu1 }
  0xd6   : > { %v621_v1 = vpack.c.bf16 %v568_v0, %v539_v63 }
  0xd7   : > { %650 = vst [vmem:[%s1333_s14 + $0x18] sm:$0xf] %v618_v62 }
  0xd8   : > { %653 = vst [vmem:[%s1333_s14 + $0x2c] sm:$0xff] %v621_v1 }
  0xd9   : > { %v510_v2 = vpop.f32.mrf.mxu3 }
  0xda   : > { %v620_v3 = vpack.c.bf16 %v510_v2, %v481_v52 }
  0xdc   : > { %v597_v4 = vpop.f32.mrf.mxu2  ;;  %652 = vst [vmem:[%s1333_s14 + $0x24] sm:$0xff] %v620_v3  ;;  %v542_v6 = vpop.f32.mrf.mxu0 }
  0xdd   : > { %v622_v5 = vpack.c.bf16 %v597_v4, %v597_v4  ;;  %v571_v7 = vpop.f32.mrf.mxu1 }
  0xde   : > { %v625_v9 = vpack.c.bf16 %v571_v7, %v542_v6 }
  0xdf   : > { %654 = vst [vmem:[%s1333_s14 + $0x34] sm:$0xf] %v622_v5 }
  0xe0   : > { %657 = vst [vmem:[%s1333_s14 + $0x48] sm:$0xff] %v625_v9 }
  0xe1   : > { %v513_v10 = vpop.f32.mrf.mxu3 }
  0xe2   : > { %v624_v11 = vpack.c.bf16 %v513_v10, %v1335_v28 }
  0xe4   : > { %v600_v12 = vpop.f32.mrf.mxu2  ;;  %656 = vst [vmem:[%s1333_s14 + $0x40] sm:$0xff] %v624_v11  ;;  %v544_v8 = vpop.f32.mrf.mxu0 }
  0xe5   : > { %v626_v13 = vpack.c.bf16 %v600_v12, %v600_v12  ;;  %v573_v14 = vpop.f32.mrf.mxu1 }
  0xe6   : > { %v629_v15 = vpack.c.bf16 %v573_v14, %v544_v8 }
  0xe7   : > { %658 = vst [vmem:[%s1333_s14 + $0x50] sm:$0xf] %v626_v13 }
  0xe8   : > { %661 = vst [vmem:[%s1333_s14 + $0x64] sm:$0xff] %v629_v15 }
  0xe9   : > { %v515_v16 = vpop.f32.mrf.mxu3 }
  0xea   : > { %v628_v17 = vpack.c.bf16 %v515_v16, %v1338_v33 }
  0xec   : > { %v602_v18 = vpop.f32.mrf.mxu2  ;;  %660 = vst [vmem:[%s1333_s14 + $0x5c] sm:$0xff] %v628_v17  ;;  %v547_v20 = vpop.f32.mrf.mxu0 }
  0xed   : > { %v630_v19 = vpack.c.bf16 %v602_v18, %v602_v18  ;;  %v576_v21 = vpop.f32.mrf.mxu1 }
  0xee   : > { %v633_v22 = vpack.c.bf16 %v576_v21, %v547_v20 }
  0xef   : > { %662 = vst [vmem:[%s1333_s14 + $0x6c] sm:$0xf] %v630_v19 }
  0xf0   : > { %665 = vst [vmem:[%s1333_s14 + $0x80] sm:$0xff] %v633_v22 }
  0xf1   : > { %v518_v23 = vpop.f32.mrf.mxu3 }
  0xf2   : > { %v632_v24 = vpack.c.bf16 %v518_v23, %v1342_v39 }
  0xf4   : > { %v605_v25 = vpop.f32.mrf.mxu2  ;;  %664 = vst [vmem:[%s1333_s14 + $0x78] sm:$0xff] %v632_v24  ;;  %v549_v27 = vpop.f32.mrf.mxu0 }
  0xf5   : > { %v634_v26 = vpack.c.bf16 %v605_v25, %v605_v25  ;;  %v578_v28 = vpop.f32.mrf.mxu1 }
  0xf6   : > { %v637_v29 = vpack.c.bf16 %v578_v28, %v549_v27 }
  0xf7   : > { %666 = vst [vmem:[%s1333_s14 + $0x88] sm:$0xf] %v634_v26 }
  0xf8   : > { %669 = vst [vmem:[%s1333_s14 + $0x9c] sm:$0xff] %v637_v29 }
  0xf9   : > { %v520_v30 = vpop.f32.mrf.mxu3 }
  0xfa   : > { %v636_v31 = vpack.c.bf16 %v520_v30, %v1346_v45 }
  0xfc   : > { %v607_v32 = vpop.f32.mrf.mxu2  ;;  %668 = vst [vmem:[%s1333_s14 + $0x94] sm:$0xff] %v636_v31  ;;  %v552_v34 = vpop.f32.mrf.mxu0 }
  0xfd   : > { %v638_v33 = vpack.c.bf16 %v607_v32, %v607_v32  ;;  %v581_v35 = vpop.f32.mrf.mxu1 }
  0xfe   : > { %v641_v36 = vpack.c.bf16 %v581_v35, %v552_v34 }
  0xff   : > { %670 = vst [vmem:[%s1333_s14 + $0xa4] sm:$0xf] %v638_v33 }
 0x100   : > { %673 = vst [vmem:[%s1333_s14 + $0xb8] sm:$0xff] %v641_v36 }
 0x101   : > { %v523_v37 = vpop.f32.mrf.mxu3 }
 0x102   : > { %v640_v38 = vpack.c.bf16 %v523_v37, %v1349_v50 }
 0x104   : > { %v610_v39 = vpop.f32.mrf.mxu2  ;;  %672 = vst [vmem:[%s1333_s14 + $0xb0] sm:$0xff] %v640_v38  ;;  %v554_v41 = vpop.f32.mrf.mxu0 }
 0x105   : > { %v642_v40 = vpack.c.bf16 %v610_v39, %v610_v39  ;;  %v583_v42 = vpop.f32.mrf.mxu1 }
 0x106   : > { %v645_v43 = vpack.c.bf16 %v583_v42, %v554_v41 }
 0x107   : > { %674 = vst [vmem:[%s1333_s14 + $0xc0] sm:$0xf] %v642_v40 }
 0x108   : > { %677 = vst [vmem:[%s1333_s14 + $0xd4] sm:$0xff] %v645_v43 }
 0x109   : > { %v525_v44 = vpop.f32.mrf.mxu3 }
 0x10a   : > { %v644_v45 = vpack.c.bf16 %v525_v44, %v1352_v55 }
 0x10c   : > { %v612_v46 = vpop.f32.mrf.mxu2  ;;  %676 = vst [vmem:[%s1333_s14 + $0xcc] sm:$0xff] %v644_v45 }
 0x10d   : > { %v646_v47 = vpack.c.bf16 %v612_v46, %v612_v46 }
 0x10f   : > { %678 = vst [vmem:[%s1333_s14 + $0xdc] sm:$0xf] %v646_v47 }
 0x110 PF: > { %s12_s11 = sadd.s32 1, %s1037_s11   ;;  %s1397_s9 = smov %s1033_s10 }
 0x111   : > { %p9_p5 = scmp.ge.s32.totalorder %s12_s11, 4   ;;  %s1398_s10 = smov %s1400_s12 }
 0x113   :  { %11 = sbr.rel (!%p9_p5) target bundleno = 2 (0x2), region = 61 }

// kernel: generator_forward.9
= control target key start
LH: loop header
LB: loop body
LE: loop exit
PB: predicated region body
PF: predicated region fallthrough
CT: control target
= control target key end

     0   :  { %s1248_s9 = smov 0   ;;  %s1250_s10 = smov 0   ;;  %s1484_s0 = inlined_call_operand.vmem [shape: bf16[512,32], index: 0, kind: input, shape index: {}]   ;;  %s1485_s1 = inlined_call_operand.vmem [shape: bf16[32,512], index: 1, kind: input, shape index: {}]   ;;  %s1486_s2 = inlined_call_operand.vmem [shape: bf16[512,512], index: 2, kind: output, shape index: {}]  }
   0x1   :  { %s1252_s11 = smov 0  }
   0x2 LB: > { %s24_s12 = sadd.s32 1, %s1227_s10  ;;  %p992_p0 = scmp.ge.s32.totalorder %s1231_s11, 1  ;;  %s1231_s11 = sphi %s1252_s11, %s12_s11   ;;  %s1227_s10 = sphi %s1250_s10, %s1488_s10   ;;  %s1223_s9 = sphi %s1248_s9, %s1487_s9  }
   0x3   : > { %p26_p1 = scmp.ge.s32.totalorder %s24_s12, 2  ;;  %p138_p2 = scmp.lt.s32.totalorder %s1231_s11, 3 }
   0x5   : > { %s1490_s12 = smov (%p26_p1, %s24_s12), 0  ;;  %p139_p3 = pnand %p992_p0, %p138_p2 }
   0x6   : > { %s993_s21 = sshll.u32 (!%p139_p3), %s1223_s9, 5 }
   0x7   : > { %142 = sbr.rel (%p139_p3) target bundleno = 407 (0x197), region = 28  ;;  %p171_p4 = scmp.lt.s32.totalorder (!%p139_p3), %s993_s21, 63 }
   0xc   : > { %v1080_v0 = vld [vmem:[%s1485_s1 + $0x20] sm:$0xf]  ;;  %v1183_v1 = vld [vmem:[%s1485_s1 + $0x2c] sm:$0xf0]  ;;  %v1181_v2 = vld [vmem:[%s1485_s1 + $0x24] sm:$0xf] }
   0xd   : > { %v1081_v3 = vor.u32 %v1183_v1, %v1080_v0  ;;  %v1082_v4 = vld [vmem:[%s1485_s1 + $0x30] sm:$0xf0]  ;;  %v1088_v5 = vld [vmem:[%s1485_s1 + $0x28] sm:$0xf]  ;;  %v1184_v6 = vld [vmem:[%s1485_s1 + $0x34] sm:$0xf0] }
   0xe   : > { %v1085_v7 = vor.u32 %v1181_v2, %v1082_v4  ;;  %v1089_v8 = vor.u32 %v1184_v6, %v1088_v5  ;;  %v1182_v9 = vld [vmem:[%s1485_s1 + $0x2c] sm:$0xf]  ;;  %v1090_v10 = vld [vmem:[%s1485_s1 + $0x38] sm:$0xf0]  ;;  %v1064_v11 = vld [vmem:[%s1485_s1] sm:$0xf] }
   0xf   : > { %410 = vmatpush.bf16.msra.mxu0 %v1081_v3  ;;  %v1093_v12 = vor.u32 %v1182_v9, %v1090_v10  ;;  %v1179_v13 = vld [vmem:[%s1485_s1 + $0xc] sm:$0xf0]  ;;  %v1177_v14 = vld [vmem:[%s1485_s1 + $0x4] sm:$0xf]  ;;  %v1066_v15 = vld [vmem:[%s1485_s1 + $0x10] sm:$0xf0] }
  0x10   : > { %499 = vmatpush.bf16.msra.mxu1 %v1085_v7  ;;  %588 = vmatpush.bf16.msra.mxu2 %v1089_v8  ;;  %v1065_v16 = vor.u32 %v1179_v13, %v1064_v11  ;;  %v1069_v17 = vor.u32 %v1177_v14, %v1066_v15  ;;  %v1072_v18 = vld [vmem:[%s1485_s1 + $0x8] sm:$0xf]  ;;  %v1180_v19 = vld [vmem:[%s1485_s1 + $0x14] sm:$0xf0]  ;;  %v1178_v20 = vld [vmem:[%s1485_s1 + $0xc] sm:$0xf] }
  0x11   : > { %677 = vmatpush.bf16.msra.mxu3 %v1093_v12  ;;  %v1073_v21 = vor.u32 %v1180_v19, %v1072_v18  ;;  %v1074_v22 = vld [vmem:[%s1485_s1 + $0x18] sm:$0xf0]  ;;  %s1492_s21 = smov (!%p171_p4, %s993_s21), 63  ;;  %vm355_vm0 = vcmask 261120  }
  0x12   : > { %v1077_v23 = vor.u32 %v1178_v20, %v1074_v22  ;;  %s994_s22 = sshll.u32 %s1492_s21, 2  ;;  %s1160_s9 = sshll.u32 %s1492_s21, 4 }
  0x13   : > { %411 = vmatpush.bf16.msra.mxu0 %v1065_v16  ;;  %s1323_s25 = scalar_lea.vmem %s1484_s0, %s994_s22  ;;  %s1370_s28 = scalar_lea.vmem %s1486_s2, %s1160_s9 }
  0x14   : > { %500 = vmatpush.bf16.msra.mxu1 %v1069_v17  ;;  %589 = vmatpush.bf16.msra.mxu2 %v1073_v21  ;;  %v1161_v24 = vld [vmem:[%s1323_s25] sm:$0xff]  ;;  %v1162_v25 = vld [vmem:[%s1323_s25 + $0x8] sm:$0xff]  ;;  %v1163_v26 = vld [vmem:[%s1323_s25 + $0x10] sm:$0xff] }
  0x15   : > { %678 = vmatpush.bf16.msra.mxu3 %v1077_v23  ;;  %v1164_v27 = vld [vmem:[%s1323_s25 + $0x18] sm:$0xff]  ;;  %v1165_v28 = vld [vmem:[%s1323_s25 + $0x20] sm:$0xff]  ;;  %v1166_v29 = vld [vmem:[%s1323_s25 + $0x28] sm:$0xff] }
  0x16   : > { %1094 = vmatmul.msk.bf16.vlgmr.msra.gmra.mxu0 %vm355_vm0, %v1161_v24  ;;  %v1167_v30 = vld [vmem:[%s1323_s25 + $0x30] sm:$0xff]  ;;  %v1168_v31 = vld [vmem:[%s1323_s25 + $0x38] sm:$0xff]  ;;  %v1169_v32 = vld [vmem:[%s1323_s25 + $0x40] sm:$0xff] }
  0x17   : > { %1110 = vmatmul.msk.bf16.vlgmr.msra.gmra.mxu1 %vm355_vm0, %v1161_v24  ;;  %1126 = vmatmul.msk.bf16.vlgmr.msra.gmra.mxu2 %vm355_vm0, %v1161_v24  ;;  %v1170_v44 = vld [vmem:[%s1323_s25 + $0x48] sm:$0xff]  ;;  %v1171_v57 = vld [vmem:[%s1323_s25 + $0x50] sm:$0xff]  ;;  %v1172_v6 = vld [vmem:[%s1323_s25 + $0x58] sm:$0xff] }
  0x18   : > { %1142 = vmatmul.msk.bf16.vlgmr.msra.gmra.mxu3 %vm355_vm0, %v1161_v24  ;;  %v1173_v19 = vld [vmem:[%s1323_s25 + $0x60] sm:$0xff] }
  0x26   : > { %1095 = vmatmul.msk.bf16.gmra.mxu0 %vm355_vm0, %v1162_v25 }
  0x27   : > { %1111 = vmatmul.msk.bf16.gmra.mxu1 %vm355_vm0, %v1162_v25  ;;  %1127 = vmatmul.msk.bf16.gmra.mxu2 %vm355_vm0, %v1162_v25 }
  0x28   : > { %1143 = vmatmul.msk.bf16.gmra.mxu3 %vm355_vm0, %v1162_v25 }
  0x36   : > { %1096 = vmatmul.msk.bf16.gmra.mxu0 %vm355_vm0, %v1163_v26 }
  0x37   : > { %1112 = vmatmul.msk.bf16.gmra.mxu1 %vm355_vm0, %v1163_v26  ;;  %1128 = vmatmul.msk.bf16.gmra.mxu2 %vm355_vm0, %v1163_v26 }
  0x38   : > { %1144 = vmatmul.msk.bf16.gmra.mxu3 %vm355_vm0, %v1163_v26 }
  0x46   : > { %1097 = vmatmul.msk.bf16.gmra.mxu0 %vm355_vm0, %v1164_v27 }
  0x47   : > { %1113 = vmatmul.msk.bf16.gmra.mxu1 %vm355_vm0, %v1164_v27  ;;  %1129 = vmatmul.msk.bf16.gmra.mxu2 %vm355_vm0, %v1164_v27 }
  0x48   : > { %1145 = vmatmul.msk.bf16.gmra.mxu3 %vm355_vm0, %v1164_v27 }
  0x56   : > { %1098 = vmatmul.msk.bf16.gmra.mxu0 %vm355_vm0, %v1165_v28 }
  0x57   : > { %1114 = vmatmul.msk.bf16.gmra.mxu1 %vm355_vm0, %v1165_v28  ;;  %1130 = vmatmul.msk.bf16.gmra.mxu2 %vm355_vm0, %v1165_v28 }
  0x58   : > { %1146 = vmatmul.msk.bf16.gmra.mxu3 %vm355_vm0, %v1165_v28 }
  0x66   : > { %1099 = vmatmul.msk.bf16.gmra.mxu0 %vm355_vm0, %v1166_v29 }
  0x67   : > { %1115 = vmatmul.msk.bf16.gmra.mxu1 %vm355_vm0, %v1166_v29  ;;  %1131 = vmatmul.msk.bf16.gmra.mxu2 %vm355_vm0, %v1166_v29 }
  0x68   : > { %1147 = vmatmul.msk.bf16.gmra.mxu3 %vm355_vm0, %v1166_v29 }
  0x76   : > { %1100 = vmatmul.msk.bf16.gmra.mxu0 %vm355_vm0, %v1167_v30 }
  0x77   : > { %1116 = vmatmul.msk.bf16.gmra.mxu1 %vm355_vm0, %v1167_v30  ;;  %1132 = vmatmul.msk.bf16.gmra.mxu2 %vm355_vm0, %v1167_v30 }
  0x78   : > { %1148 = vmatmul.msk.bf16.gmra.mxu3 %vm355_vm0, %v1167_v30 }
  0x86   : > { %1101 = vmatmul.msk.bf16.gmra.mxu0 %vm355_vm0, %v1168_v31 }
  0x87   : > { %1117 = vmatmul.msk.bf16.gmra.mxu1 %vm355_vm0, %v1168_v31  ;;  %1133 = vmatmul.msk.bf16.gmra.mxu2 %vm355_vm0, %v1168_v31 }
  0x88   : > { %1149 = vmatmul.msk.bf16.gmra.mxu3 %vm355_vm0, %v1168_v31 }
  0x93   : > { %v413_v33 = vpop.f32.mrf.mxu0 }
  0x94   : > { %v502_v34 = vpop.f32.mrf.mxu1 }
  0x95   : > { %v760_v35 = vpack.c.bf16 %v502_v34, %v413_v33 }
  0x96   : > { %1102 = vmatmul.msk.bf16.gmra.mxu0 %vm355_vm0, %v1169_v32 }
  0x97   : > { %824 = vst [vmem:[%s1370_s28] sm:$0xff] %v760_v35  ;;  %1118 = vmatmul.msk.bf16.gmra.mxu1 %vm355_vm0, %v1169_v32  ;;  %1134 = vmatmul.msk.bf16.gmra.mxu2 %vm355_vm0, %v1169_v32 }
  0x98   : > { %1150 = vmatmul.msk.bf16.gmra.mxu3 %vm355_vm0, %v1169_v32  ;;  %v1174_v32 = vld [vmem:[%s1323_s25 + $0x68] sm:$0xff] }
  0x9a   : > { %v591_v36 = vpop.f32.mrf.mxu2 }
  0x9b   : > { %v680_v37 = vpop.f32.mrf.mxu3  ;;  %v415_v39 = vpop.f32.mrf.mxu0 }
  0x9c   : > { %v761_v38 = vpack.c.bf16 %v680_v37, %v591_v36  ;;  %v504_v40 = vpop.f32.mrf.mxu1 }
  0x9d   : > { %v762_v41 = vpack.c.bf16 %v504_v40, %v415_v39 }
  0x9e   : > { %825 = vst [vmem:[%s1370_s28 + $0x8] sm:$0xff] %v761_v38 }
  0x9f   : > { %826 = vst [vmem:[%s1370_s28 + $0x10] sm:$0xff] %v762_v41 }
  0xa2   : > { %v593_v42 = vpop.f32.mrf.mxu2 }
  0xa3   : > { %v682_v43 = vpop.f32.mrf.mxu3  ;;  %v418_v46 = vpop.f32.mrf.mxu0 }
  0xa4   : > { %v763_v45 = vpack.c.bf16 %v682_v43, %v593_v42  ;;  %v507_v47 = vpop.f32.mrf.mxu1 }
  0xa5   : > { %v764_v48 = vpack.c.bf16 %v507_v47, %v418_v46 }
  0xa6   : > { %827 = vst [vmem:[%s1370_s28 + $0x18] sm:$0xff] %v763_v45  ;;  %1103 = vmatmul.msk.bf16.gmra.mxu0 %vm355_vm0, %v1170_v44  ;;  %v1175_v45 = vld [vmem:[%s1323_s25 + $0x70] sm:$0xff] }
  0xa7   : > { %828 = vst [vmem:[%s1370_s28 + $0x20] sm:$0xff] %v764_v48  ;;  %1119 = vmatmul.msk.bf16.gmra.mxu1 %vm355_vm0, %v1170_v44  ;;  %1135 = vmatmul.msk.bf16.gmra.mxu2 %vm355_vm0, %v1170_v44 }
  0xa8   : > { %1151 = vmatmul.msk.bf16.gmra.mxu3 %vm355_vm0, %v1170_v44 }
  0xaa   : > { %v596_v49 = vpop.f32.mrf.mxu2 }
  0xab   : > { %v685_v50 = vpop.f32.mrf.mxu3  ;;  %v420_v52 = vpop.f32.mrf.mxu0 }
  0xac   : > { %v765_v51 = vpack.c.bf16 %v685_v50, %v596_v49  ;;  %v509_v53 = vpop.f32.mrf.mxu1 }
  0xad   : > { %v766_v54 = vpack.c.bf16 %v509_v53, %v420_v52 }
  0xae   : > { %829 = vst [vmem:[%s1370_s28 + $0x28] sm:$0xff] %v765_v51 }
  0xaf   : > { %830 = vst [vmem:[%s1370_s28 + $0x30] sm:$0xff] %v766_v54 }
  0xb2   : > { %v598_v55 = vpop.f32.mrf.mxu2 }
  0xb3   : > { %v687_v56 = vpop.f32.mrf.mxu3  ;;  %v423_v59 = vpop.f32.mrf.mxu0 }
  0xb4   : > { %v767_v58 = vpack.c.bf16 %v687_v56, %v598_v55  ;;  %v512_v60 = vpop.f32.mrf.mxu1 }
  0xb5   : > { %v768_v61 = vpack.c.bf16 %v512_v60, %v423_v59 }
  0xb6   : > { %831 = vst [vmem:[%s1370_s28 + $0x38] sm:$0xff] %v767_v58  ;;  %1104 = vmatmul.msk.bf16.gmra.mxu0 %vm355_vm0, %v1171_v57  ;;  %v1176_v58 = vld [vmem:[%s1323_s25 + $0x78] sm:$0xff] }
  0xb7   : > { %832 = vst [vmem:[%s1370_s28 + $0x40] sm:$0xff] %v768_v61  ;;  %1120 = vmatmul.msk.bf16.gmra.mxu1 %vm355_vm0, %v1171_v57  ;;  %1136 = vmatmul.msk.bf16.gmra.mxu2 %vm355_vm0, %v1171_v57 }
  0xb8   : > { %1152 = vmatmul.msk.bf16.gmra.mxu3 %vm355_vm0, %v1171_v57 }
  0xba   : > { %v601_v62 = vpop.f32.mrf.mxu2 }
  0xbb   : > { %v690_v63 = vpop.f32.mrf.mxu3  ;;  %v425_v1 = vpop.f32.mrf.mxu0 }
  0xbc   : > { %v769_v0 = vpack.c.bf16 %v690_v63, %v601_v62  ;;  %v514_v2 = vpop.f32.mrf.mxu1 }
  0xbd   : > { %v770_v3 = vpack.c.bf16 %v514_v2, %v425_v1 }
  0xbe   : > { %833 = vst [vmem:[%s1370_s28 + $0x48] sm:$0xff] %v769_v0 }
  0xbf   : > { %834 = vst [vmem:[%s1370_s28 + $0x50] sm:$0xff] %v770_v3 }
  0xc2   : > { %v603_v4 = vpop.f32.mrf.mxu2 }
  0xc3   : > { %v692_v5 = vpop.f32.mrf.mxu3  ;;  %v428_v8 = vpop.f32.mrf.mxu0 }
  0xc4   : > { %v771_v7 = vpack.c.bf16 %v692_v5, %v603_v4  ;;  %v517_v9 = vpop.f32.mrf.mxu1 }
  0xc5   : > { %v772_v10 = vpack.c.bf16 %v517_v9, %v428_v8 }
  0xc6   : > { %835 = vst [vmem:[%s1370_s28 + $0x58] sm:$0xff] %v771_v7  ;;  %1105 = vmatmul.msk.bf16.gmra.mxu0 %vm355_vm0, %v1172_v6 }
  0xc7   : > { %836 = vst [vmem:[%s1370_s28 + $0x60] sm:$0xff] %v772_v10  ;;  %1121 = vmatmul.msk.bf16.gmra.mxu1 %vm355_vm0, %v1172_v6  ;;  %1137 = vmatmul.msk.bf16.gmra.mxu2 %vm355_vm0, %v1172_v6 }
  0xc8   : > { %1153 = vmatmul.msk.bf16.gmra.mxu3 %vm355_vm0, %v1172_v6 }
  0xca   : > { %v606_v11 = vpop.f32.mrf.mxu2 }
  0xcb   : > { %v695_v12 = vpop.f32.mrf.mxu3  ;;  %v430_v14 = vpop.f32.mrf.mxu0 }
  0xcc   : > { %v773_v13 = vpack.c.bf16 %v695_v12, %v606_v11  ;;  %v519_v15 = vpop.f32.mrf.mxu1 }
  0xcd   : > { %v774_v16 = vpack.c.bf16 %v519_v15, %v430_v14 }
  0xce   : > { %837 = vst [vmem:[%s1370_s28 + $0x68] sm:$0xff] %v773_v13 }
  0xcf   : > { %838 = vst [vmem:[%s1370_s28 + $0x70] sm:$0xff] %v774_v16 }
  0xd2   : > { %v608_v17 = vpop.f32.mrf.mxu2 }
  0xd3   : > { %v697_v18 = vpop.f32.mrf.mxu3  ;;  %v433_v21 = vpop.f32.mrf.mxu0 }
  0xd4   : > { %v775_v20 = vpack.c.bf16 %v697_v18, %v608_v17  ;;  %v522_v22 = vpop.f32.mrf.mxu1 }
  0xd5   : > { %v776_v23 = vpack.c.bf16 %v522_v22, %v433_v21 }
  0xd6   : > { %839 = vst [vmem:[%s1370_s28 + $0x78] sm:$0xff] %v775_v20  ;;  %1106 = vmatmul.msk.bf16.gmra.mxu0 %vm355_vm0, %v1173_v19 }
  0xd7   : > { %840 = vst [vmem:[%s1370_s28 + $0x80] sm:$0xff] %v776_v23  ;;  %1122 = vmatmul.msk.bf16.gmra.mxu1 %vm355_vm0, %v1173_v19  ;;  %1138 = vmatmul.msk.bf16.gmra.mxu2 %vm355_vm0, %v1173_v19 }
  0xd8   : > { %1154 = vmatmul.msk.bf16.gmra.mxu3 %vm355_vm0, %v1173_v19 }
  0xda   : > { %v611_v24 = vpop.f32.mrf.mxu2 }
  0xdb   : > { %v700_v25 = vpop.f32.mrf.mxu3  ;;  %v435_v27 = vpop.f32.mrf.mxu0 }
  0xdc   : > { %v777_v26 = vpack.c.bf16 %v700_v25, %v611_v24  ;;  %v524_v28 = vpop.f32.mrf.mxu1 }
  0xdd   : > { %v778_v29 = vpack.c.bf16 %v524_v28, %v435_v27 }
  0xde   : > { %841 = vst [vmem:[%s1370_s28 + $0x88] sm:$0xff] %v777_v26 }
  0xdf   : > { %842 = vst [vmem:[%s1370_s28 + $0x90] sm:$0xff] %v778_v29 }
  0xe2   : > { %v613_v30 = vpop.f32.mrf.mxu2 }
  0xe3   : > { %v702_v31 = vpop.f32.mrf.mxu3  ;;  %v438_v34 = vpop.f32.mrf.mxu0 }
  0xe4   : > { %v779_v33 = vpack.c.bf16 %v702_v31, %v613_v30  ;;  %v527_v35 = vpop.f32.mrf.mxu1 }
  0xe5   : > { %v780_v36 = vpack.c.bf16 %v527_v35, %v438_v34 }
  0xe6   : > { %843 = vst [vmem:[%s1370_s28 + $0x98] sm:$0xff] %v779_v33  ;;  %1107 = vmatmul.msk.bf16.gmra.mxu0 %vm355_vm0, %v1174_v32 }
  0xe7   : > { %844 = vst [vmem:[%s1370_s28 + $0xa0] sm:$0xff] %v780_v36  ;;  %1123 = vmatmul.msk.bf16.gmra.mxu1 %vm355_vm0, %v1174_v32  ;;  %1139 = vmatmul.msk.bf16.gmra.mxu2 %vm355_vm0, %v1174_v32 }
  0xe8   : > { %1155 = vmatmul.msk.bf16.gmra.mxu3 %vm355_vm0, %v1174_v32 }
  0xea   : > { %v616_v37 = vpop.f32.mrf.mxu2 }
  0xeb   : > { %v705_v38 = vpop.f32.mrf.mxu3  ;;  %v440_v40 = vpop.f32.mrf.mxu0 }
  0xec   : > { %v781_v39 = vpack.c.bf16 %v705_v38, %v616_v37  ;;  %v529_v41 = vpop.f32.mrf.mxu1 }
  0xed   : > { %v782_v42 = vpack.c.bf16 %v529_v41, %v440_v40 }
  0xee   : > { %845 = vst [vmem:[%s1370_s28 + $0xa8] sm:$0xff] %v781_v39 }
  0xef   : > { %846 = vst [vmem:[%s1370_s28 + $0xb0] sm:$0xff] %v782_v42 }
  0xf2   : > { %v618_v43 = vpop.f32.mrf.mxu2 }
  0xf3   : > { %v707_v44 = vpop.f32.mrf.mxu3  ;;  %v443_v47 = vpop.f32.mrf.mxu0 }
  0xf4   : > { %v783_v46 = vpack.c.bf16 %v707_v44, %v618_v43  ;;  %v532_v48 = vpop.f32.mrf.mxu1 }
  0xf5   : > { %v784_v49 = vpack.c.bf16 %v532_v48, %v443_v47 }
  0xf6   : > { %847 = vst [vmem:[%s1370_s28 + $0xb8] sm:$0xff] %v783_v46  ;;  %1108 = vmatmul.msk.bf16.gmra.mxu0 %vm355_vm0, %v1175_v45 }
  0xf7   : > { %848 = vst [vmem:[%s1370_s28 + $0xc0] sm:$0xff] %v784_v49  ;;  %1124 = vmatmul.msk.bf16.gmra.mxu1 %vm355_vm0, %v1175_v45  ;;  %1140 = vmatmul.msk.bf16.gmra.mxu2 %vm355_vm0, %v1175_v45 }
  0xf8   : > { %1156 = vmatmul.msk.bf16.gmra.mxu3 %vm355_vm0, %v1175_v45 }
  0xfa   : > { %v621_v50 = vpop.f32.mrf.mxu2 }
  0xfb   : > { %v710_v51 = vpop.f32.mrf.mxu3  ;;  %v445_v53 = vpop.f32.mrf.mxu0 }
  0xfc   : > { %v785_v52 = vpack.c.bf16 %v710_v51, %v621_v50  ;;  %v534_v54 = vpop.f32.mrf.mxu1 }
  0xfd   : > { %v786_v55 = vpack.c.bf16 %v534_v54, %v445_v53 }
  0xfe   : > { %849 = vst [vmem:[%s1370_s28 + $0xc8] sm:$0xff] %v785_v52 }
  0xff   : > { %850 = vst [vmem:[%s1370_s28 + $0xd0] sm:$0xff] %v786_v55 }
 0x102   : > { %v623_v56 = vpop.f32.mrf.mxu2 }
 0x103   : > { %v712_v57 = vpop.f32.mrf.mxu3  ;;  %v448_v60 = vpop.f32.mrf.mxu0 }
 0x104   : > { %v787_v59 = vpack.c.bf16 %v712_v57, %v623_v56  ;;  %v537_v61 = vpop.f32.mrf.mxu1 }
 0x105   : > { %v788_v62 = vpack.c.bf16 %v537_v61, %v448_v60 }
 0x106   : > { %851 = vst [vmem:[%s1370_s28 + $0xd8] sm:$0xff] %v787_v59  ;;  %1109 = vmatmul.msk.bf16.gmra.mxu0 %vm355_vm0, %v1176_v58 }
 0x107   : > { %852 = vst [vmem:[%s1370_s28 + $0xe0] sm:$0xff] %v788_v62  ;;  %1125 = vmatmul.msk.bf16.gmra.mxu1 %vm355_vm0, %v1176_v58  ;;  %1141 = vmatmul.msk.bf16.gmra.mxu2 %vm355_vm0, %v1176_v58 }
 0x108   : > { %1157 = vmatmul.msk.bf16.gmra.mxu3 %vm355_vm0, %v1176_v58 }
 0x10a   : > { %v626_v63 = vpop.f32.mrf.mxu2 }
 0x10b   : > { %v715_v0 = vpop.f32.mrf.mxu3  ;;  %v450_v2 = vpop.f32.mrf.mxu0 }
 0x10c   : > { %v789_v1 = vpack.c.bf16 %v715_v0, %v626_v63  ;;  %v539_v3 = vpop.f32.mrf.mxu1 }
 0x10d   : > { %v790_v4 = vpack.c.bf16 %v539_v3, %v450_v2 }
 0x10e   : > { %853 = vst [vmem:[%s1370_s28 + $0xe8] sm:$0xff] %v789_v1 }
 0x10f   : > { %854 = vst [vmem:[%s1370_s28 + $0xf0] sm:$0xff] %v790_v4 }
 0x112   : > { %v628_v5 = vpop.f32.mrf.mxu2 }
 0x113   : > { %v717_v6 = vpop.f32.mrf.mxu3  ;;  %v453_v8 = vpop.f32.mrf.mxu0 }
 0x114   : > { %v791_v7 = vpack.c.bf16 %v717_v6, %v628_v5  ;;  %v542_v9 = vpop.f32.mrf.mxu1 }
 0x115   : > { %v792_v10 = vpack.c.bf16 %v542_v9, %v453_v8 }
 0x116   : > { %855 = vst [vmem:[%s1370_s28 + $0xf8] sm:$0xff] %v791_v7 }
 0x117   : > { %856 = vst [vmem:[%s1370_s28 + $0x100] sm:$0xff] %v792_v10 }
 0x11a   : > { %v631_v11 = vpop.f32.mrf.mxu2 }
 0x11b   : > { %v720_v12 = vpop.f32.mrf.mxu3  ;;  %v455_v14 = vpop.f32.mrf.mxu0 }
 0x11c   : > { %v793_v13 = vpack.c.bf16 %v720_v12, %v631_v11  ;;  %v544_v15 = vpop.f32.mrf.mxu1 }
 0x11d   : > { %v794_v16 = vpack.c.bf16 %v544_v15, %v455_v14 }
 0x11e   : > { %857 = vst [vmem:[%s1370_s28 + $0x108] sm:$0xff] %v793_v13 }
 0x11f   : > { %858 = vst [vmem:[%s1370_s28 + $0x110] sm:$0xff] %v794_v16 }
 0x122   : > { %v633_v17 = vpop.f32.mrf.mxu2 }
 0x123   : > { %v722_v18 = vpop.f32.mrf.mxu3  ;;  %v458_v20 = vpop.f32.mrf.mxu0 }
 0x124   : > { %v795_v19 = vpack.c.bf16 %v722_v18, %v633_v17  ;;  %v547_v21 = vpop.f32.mrf.mxu1 }
 0x125   : > { %v796_v22 = vpack.c.bf16 %v547_v21, %v458_v20 }
 0x126   : > { %859 = vst [vmem:[%s1370_s28 + $0x118] sm:$0xff] %v795_v19 }
 0x127   : > { %860 = vst [vmem:[%s1370_s28 + $0x120] sm:$0xff] %v796_v22 }
 0x12a   : > { %v636_v23 = vpop.f32.mrf.mxu2 }
 0x12b   : > { %v725_v24 = vpop.f32.mrf.mxu3  ;;  %v460_v26 = vpop.f32.mrf.mxu0 }
 0x12c   : > { %v797_v25 = vpack.c.bf16 %v725_v24, %v636_v23  ;;  %v549_v27 = vpop.f32.mrf.mxu1 }
 0x12d   : > { %v798_v28 = vpack.c.bf16 %v549_v27, %v460_v26 }
 0x12e   : > { %861 = vst [vmem:[%s1370_s28 + $0x128] sm:$0xff] %v797_v25 }
 0x12f   : > { %862 = vst [vmem:[%s1370_s28 + $0x130] sm:$0xff] %v798_v28 }
 0x132   : > { %v638_v29 = vpop.f32.mrf.mxu2 }
 0x133   : > { %v727_v30 = vpop.f32.mrf.mxu3  ;;  %v463_v32 = vpop.f32.mrf.mxu0 }
 0x134   : > { %v799_v31 = vpack.c.bf16 %v727_v30, %v638_v29  ;;  %v552_v33 = vpop.f32.mrf.mxu1 }
 0x135   : > { %v800_v34 = vpack.c.bf16 %v552_v33, %v463_v32 }
 0x136   : > { %863 = vst [vmem:[%s1370_s28 + $0x138] sm:$0xff] %v799_v31 }
 0x137   : > { %864 = vst [vmem:[%s1370_s28 + $0x140] sm:$0xff] %v800_v34 }
 0x13a   : > { %v641_v35 = vpop.f32.mrf.mxu2 }
 0x13b   : > { %v730_v36 = vpop.f32.mrf.mxu3  ;;  %v465_v38 = vpop.f32.mrf.mxu0 }
 0x13c   : > { %v801_v37 = vpack.c.bf16 %v730_v36, %v641_v35  ;;  %v554_v39 = vpop.f32.mrf.mxu1 }
 0x13d   : > { %v802_v40 = vpack.c.bf16 %v554_v39, %v465_v38 }
 0x13e   : > { %865 = vst [vmem:[%s1370_s28 + $0x148] sm:$0xff] %v801_v37 }
 0x13f   : > { %866 = vst [vmem:[%s1370_s28 + $0x150] sm:$0xff] %v802_v40 }
 0x142   : > { %v643_v41 = vpop.f32.mrf.mxu2 }
 0x143   : > { %v732_v42 = vpop.f32.mrf.mxu3  ;;  %v468_v44 = vpop.f32.mrf.mxu0 }
 0x144   : > { %v803_v43 = vpack.c.bf16 %v732_v42, %v643_v41  ;;  %v557_v45 = vpop.f32.mrf.mxu1 }
 0x145   : > { %v804_v46 = vpack.c.bf16 %v557_v45, %v468_v44 }
 0x146   : > { %867 = vst [vmem:[%s1370_s28 + $0x158] sm:$0xff] %v803_v43 }
 0x147   : > { %868 = vst [vmem:[%s1370_s28 + $0x160] sm:$0xff] %v804_v46 }
 0x14a   : > { %v646_v47 = vpop.f32.mrf.mxu2 }
 0x14b   : > { %v735_v48 = vpop.f32.mrf.mxu3  ;;  %v470_v50 = vpop.f32.mrf.mxu0 }
 0x14c   : > { %v805_v49 = vpack.c.bf16 %v735_v48, %v646_v47  ;;  %v559_v51 = vpop.f32.mrf.mxu1 }
 0x14d   : > { %v806_v52 = vpack.c.bf16 %v559_v51, %v470_v50 }
 0x14e   : > { %869 = vst [vmem:[%s1370_s28 + $0x168] sm:$0xff] %v805_v49 }
 0x14f   : > { %870 = vst [vmem:[%s1370_s28 + $0x170] sm:$0xff] %v806_v52 }
 0x152   : > { %v648_v53 = vpop.f32.mrf.mxu2 }
 0x153   : > { %v737_v54 = vpop.f32.mrf.mxu3  ;;  %v473_v56 = vpop.f32.mrf.mxu0 }
 0x154   : > { %v807_v55 = vpack.c.bf16 %v737_v54, %v648_v53  ;;  %v562_v57 = vpop.f32.mrf.mxu1 }
 0x155   : > { %v808_v58 = vpack.c.bf16 %v562_v57, %v473_v56 }
 0x156   : > { %871 = vst [vmem:[%s1370_s28 + $0x178] sm:$0xff] %v807_v55 }
 0x157   : > { %872 = vst [vmem:[%s1370_s28 + $0x180] sm:$0xff] %v808_v58 }
 0x15a   : > { %v651_v59 = vpop.f32.mrf.mxu2 }
 0x15b   : > { %v740_v60 = vpop.f32.mrf.mxu3  ;;  %v475_v62 = vpop.f32.mrf.mxu0 }
 0x15c   : > { %v809_v61 = vpack.c.bf16 %v740_v60, %v651_v59  ;;  %v564_v63 = vpop.f32.mrf.mxu1 }
 0x15d   : > { %v810_v0 = vpack.c.bf16 %v564_v63, %v475_v62 }
 0x15e   : > { %873 = vst [vmem:[%s1370_s28 + $0x188] sm:$0xff] %v809_v61 }
 0x15f   : > { %874 = vst [vmem:[%s1370_s28 + $0x190] sm:$0xff] %v810_v0 }
 0x162   : > { %v653_v1 = vpop.f32.mrf.mxu2 }
 0x163   : > { %v742_v2 = vpop.f32.mrf.mxu3  ;;  %v478_v4 = vpop.f32.mrf.mxu0 }
 0x164   : > { %v811_v3 = vpack.c.bf16 %v742_v2, %v653_v1  ;;  %v567_v5 = vpop.f32.mrf.mxu1 }
 0x165   : > { %v812_v6 = vpack.c.bf16 %v567_v5, %v478_v4 }
 0x166   : > { %875 = vst [vmem:[%s1370_s28 + $0x198] sm:$0xff] %v811_v3 }
 0x167   : > { %876 = vst [vmem:[%s1370_s28 + $0x1a0] sm:$0xff] %v812_v6 }
 0x16a   : > { %v656_v7 = vpop.f32.mrf.mxu2 }
 0x16b   : > { %v745_v8 = vpop.f32.mrf.mxu3  ;;  %v480_v10 = vpop.f32.mrf.mxu0 }
 0x16c   : > { %v813_v9 = vpack.c.bf16 %v745_v8, %v656_v7  ;;  %v569_v11 = vpop.f32.mrf.mxu1 }
 0x16d   : > { %v814_v12 = vpack.c.bf16 %v569_v11, %v480_v10 }
 0x16e   : > { %877 = vst [vmem:[%s1370_s28 + $0x1a8] sm:$0xff] %v813_v9 }
 0x16f   : > { %878 = vst [vmem:[%s1370_s28 + $0x1b0] sm:$0xff] %v814_v12 }
 0x172   : > { %v658_v13 = vpop.f32.mrf.mxu2 }
 0x173   : > { %v747_v14 = vpop.f32.mrf.mxu3  ;;  %v483_v16 = vpop.f32.mrf.mxu0 }
 0x174   : > { %v815_v15 = vpack.c.bf16 %v747_v14, %v658_v13  ;;  %v572_v17 = vpop.f32.mrf.mxu1 }
 0x175   : > { %v816_v18 = vpack.c.bf16 %v572_v17, %v483_v16 }
 0x176   : > { %879 = vst [vmem:[%s1370_s28 + $0x1b8] sm:$0xff] %v815_v15 }
 0x177   : > { %880 = vst [vmem:[%s1370_s28 + $0x1c0] sm:$0xff] %v816_v18 }
 0x17a   : > { %v661_v19 = vpop.f32.mrf.mxu2 }
 0x17b   : > { %v750_v20 = vpop.f32.mrf.mxu3  ;;  %v485_v22 = vpop.f32.mrf.mxu0 }
 0x17c   : > { %v817_v21 = vpack.c.bf16 %v750_v20, %v661_v19  ;;  %v574_v23 = vpop.f32.mrf.mxu1 }
 0x17d   : > { %v818_v24 = vpack.c.bf16 %v574_v23, %v485_v22 }
 0x17e   : > { %881 = vst [vmem:[%s1370_s28 + $0x1c8] sm:$0xff] %v817_v21 }
 0x17f   : > { %882 = vst [vmem:[%s1370_s28 + $0x1d0] sm:$0xff] %v818_v24 }
 0x182   : > { %v663_v25 = vpop.f32.mrf.mxu2 }
 0x183   : > { %v752_v26 = vpop.f32.mrf.mxu3  ;;  %v488_v28 = vpop.f32.mrf.mxu0 }
 0x184   : > { %v819_v27 = vpack.c.bf16 %v752_v26, %v663_v25  ;;  %v577_v29 = vpop.f32.mrf.mxu1 }
 0x185   : > { %v820_v30 = vpack.c.bf16 %v577_v29, %v488_v28 }
 0x186   : > { %883 = vst [vmem:[%s1370_s28 + $0x1d8] sm:$0xff] %v819_v27 }
 0x187   : > { %884 = vst [vmem:[%s1370_s28 + $0x1e0] sm:$0xff] %v820_v30 }
 0x18a   : > { %v666_v31 = vpop.f32.mrf.mxu2 }
 0x18b   : > { %v755_v32 = vpop.f32.mrf.mxu3  ;;  %v490_v34 = vpop.f32.mrf.mxu0 }
 0x18c   : > { %v821_v33 = vpack.c.bf16 %v755_v32, %v666_v31  ;;  %v579_v35 = vpop.f32.mrf.mxu1 }
 0x18d   : > { %v822_v36 = vpack.c.bf16 %v579_v35, %v490_v34 }
 0x18e   : > { %885 = vst [vmem:[%s1370_s28 + $0x1e8] sm:$0xff] %v821_v33 }
 0x18f   : > { %886 = vst [vmem:[%s1370_s28 + $0x1f0] sm:$0xff] %v822_v36 }
 0x192   : > { %v668_v37 = vpop.f32.mrf.mxu2 }
 0x193   : > { %v757_v38 = vpop.f32.mrf.mxu3 }
 0x194   : > { %v823_v39 = vpack.c.bf16 %v757_v38, %v668_v37 }
 0x196   : > { %887 = vst [vmem:[%s1370_s28 + $0x1f8] sm:$0xff] %v823_v39 }
 0x197 PF: > { %s12_s11 = sadd.s32 1, %s1231_s11   ;;  %s1487_s9 = smov %s1227_s10 }
 0x198   : > { %p9_p5 = scmp.ge.s32.totalorder %s12_s11, 4   ;;  %s1488_s10 = smov %s1490_s12 }
 0x19a   :  { %11 = sbr.rel (!%p9_p5) target bundleno = 2 (0x2), region = 61 }

// kernel: generator_forward.10
= control target key start
LH: loop header
LB: loop body
LE: loop exit
PB: predicated region body
PF: predicated region fallthrough
CT: control target
= control target key end

     0   :  { %s1406_s9 = smov 0   ;;  %s1408_s10 = smov 0   ;;  %s1619_s0 = inlined_call_operand.vmem [shape: bf16[2048,16], index: 0, kind: input, shape index: {}]   ;;  %s1620_s1 = inlined_call_operand.vmem [shape: bf16[16,256], index: 1, kind: input, shape index: {}]   ;;  %s1621_s2 = inlined_call_operand.vmem [shape: bf16[2048,256], index: 2, kind: output, shape index: {}]  }
   0x1   :  { %s1410_s11 = smov 0  }
   0x2 LB: > { %s24_s12 = sadd.s32 1, %s1385_s10  ;;  %p1098_p0 = scmp.ge.s32.totalorder %s1389_s11, 1  ;;  %s1389_s11 = sphi %s1410_s11, %s12_s11   ;;  %s1385_s10 = sphi %s1408_s10, %s1623_s10   ;;  %s1381_s9 = sphi %s1406_s9, %s1622_s9  }
   0x3   : > { %p26_p1 = scmp.ge.s32.totalorder %s24_s12, 4  ;;  %p138_p2 = scmp.lt.s32.totalorder %s1389_s11, 5 }
   0x5   : > { %s1625_s12 = smov (%p26_p1, %s24_s12), 0  ;;  %p139_p3 = pnand %p1098_p0, %p138_p2 }
   0x6   : > { %s1099_s21 = sshll.u32 (!%p139_p3), %s1381_s9, 6 }
   0x7   : > { %142 = sbr.rel (%p139_p3) target bundleno = 402 (0x192), region = 28  ;;  %p171_p4 = scmp.lt.s32.totalorder (!%p139_p3), %s1099_s21, 255 }
   0xc   : > { %v1234_v0 = vld [vmem:[%s1620_s1] sm:$0xf]  ;;  %v1340_v1 = vld [vmem:[%s1620_s1 + $0x4] sm:$0xf0]  ;;  %v1339_v2 = vld [vmem:[%s1620_s1 + $0x4] sm:$0xf] }
   0xd   : > { %v1235_v3 = vor.u32 %v1340_v1, %v1234_v0  ;;  %v1236_v4 = vld [vmem:[%s1620_s1 + $0x8] sm:$0xf0]  ;;  %s1627_s21 = smov (!%p171_p4, %s1099_s21), 255  ;;  %vm431_vm0 = vcmask 130048  }
   0xe   : > { %v1239_v5 = vor.u32 %v1339_v2, %v1236_v4  ;;  %s1100_s22 = sshll.u32 %s1627_s21, 2  ;;  %s1306_s26 = sshll.u32 %s1627_s21, 3 }
   0xf   : > { %535 = vmatpush.bf16.msra.mxu0 %v1235_v3  ;;  %1341 = vmatpush.bf16.msra.mxu2 %v1235_v3  ;;  %s1442_s25 = scalar_lea.vmem %s1619_s0, %s1100_s22  ;;  %s1498_s29 = scalar_lea.vmem %s1621_s2, %s1306_s26 }
  0x10   : > { %704 = vmatpush.bf16.msra.mxu1 %v1239_v5  ;;  %1342 = vmatpush.bf16.msra.mxu3 %v1239_v5  ;;  %v1307_v6 = vld [vmem:[%s1442_s25] sm:$0xff]  ;;  %v1308_v8 = vld [vmem:[%s1442_s25 + $0x8] sm:$0xff]  ;;  %v1309_v10 = vld [vmem:[%s1442_s25 + $0x10] sm:$0xff] }
  0x11   : > { %v1323_v7 = vld [vmem:[%s1442_s25 + $0x80] sm:$0xff]  ;;  %v1324_v9 = vld [vmem:[%s1442_s25 + $0x88] sm:$0xff]  ;;  %v1325_v11 = vld [vmem:[%s1442_s25 + $0x90] sm:$0xff] }
  0x12   : > { %1240 = vmatmul.msk.bf16.vlgmr.msra.gmra.mxu0 %vm431_vm0, %v1307_v6  ;;  %1256 = vmatmul.msk.bf16.vlgmr.msra.gmra.mxu2 %vm431_vm0, %v1323_v7  ;;  %v1310_v12 = vld [vmem:[%s1442_s25 + $0x18] sm:$0xff]  ;;  %v1311_v14 = vld [vmem:[%s1442_s25 + $0x20] sm:$0xff]  ;;  %v1312_v16 = vld [vmem:[%s1442_s25 + $0x28] sm:$0xff] }
  0x13   : > { %1272 = vmatmul.msk.bf16.vlgmr.msra.gmra.mxu1 %vm431_vm0, %v1307_v6  ;;  %1288 = vmatmul.msk.bf16.vlgmr.msra.gmra.mxu3 %vm431_vm0, %v1323_v7  ;;  %v1326_v13 = vld [vmem:[%s1442_s25 + $0x98] sm:$0xff]  ;;  %v1327_v15 = vld [vmem:[%s1442_s25 + $0xa0] sm:$0xff]  ;;  %v1328_v17 = vld [vmem:[%s1442_s25 + $0xa8] sm:$0xff] }
  0x14   : > { %v1313_v18 = vld [vmem:[%s1442_s25 + $0x30] sm:$0xff]  ;;  %v1314_v20 = vld [vmem:[%s1442_s25 + $0x38] sm:$0xff]  ;;  %v1315_v22 = vld [vmem:[%s1442_s25 + $0x40] sm:$0xff] }
  0x15   : > { %v1329_v19 = vld [vmem:[%s1442_s25 + $0xb0] sm:$0xff]  ;;  %v1330_v21 = vld [vmem:[%s1442_s25 + $0xb8] sm:$0xff]  ;;  %v1331_v23 = vld [vmem:[%s1442_s25 + $0xc0] sm:$0xff] }
  0x16   : > { %v1316_v35 = vld [vmem:[%s1442_s25 + $0x48] sm:$0xff]  ;;  %v1317_v49 = vld [vmem:[%s1442_s25 + $0x50] sm:$0xff]  ;;  %v1318_v63 = vld [vmem:[%s1442_s25 + $0x58] sm:$0xff] }
  0x17   : > { %v1332_v36 = vld [vmem:[%s1442_s25 + $0xc8] sm:$0xff]  ;;  %v1333_v50 = vld [vmem:[%s1442_s25 + $0xd0] sm:$0xff]  ;;  %v1334_v0 = vld [vmem:[%s1442_s25 + $0xd8] sm:$0xff] }
  0x22   : > { %1241 = vmatmul.msk.bf16.gmra.mxu0 %vm431_vm0, %v1308_v8  ;;  %1257 = vmatmul.msk.bf16.gmra.mxu2 %vm431_vm0, %v1324_v9 }
  0x23   : > { %1273 = vmatmul.msk.bf16.gmra.mxu1 %vm431_vm0, %v1308_v8  ;;  %1289 = vmatmul.msk.bf16.gmra.mxu3 %vm431_vm0, %v1324_v9 }
  0x32   : > { %1242 = vmatmul.msk.bf16.gmra.mxu0 %vm431_vm0, %v1309_v10  ;;  %1258 = vmatmul.msk.bf16.gmra.mxu2 %vm431_vm0, %v1325_v11 }
  0x33   : > { %1274 = vmatmul.msk.bf16.gmra.mxu1 %vm431_vm0, %v1309_v10  ;;  %1290 = vmatmul.msk.bf16.gmra.mxu3 %vm431_vm0, %v1325_v11 }
  0x42   : > { %1243 = vmatmul.msk.bf16.gmra.mxu0 %vm431_vm0, %v1310_v12  ;;  %1259 = vmatmul.msk.bf16.gmra.mxu2 %vm431_vm0, %v1326_v13 }
  0x43   : > { %1275 = vmatmul.msk.bf16.gmra.mxu1 %vm431_vm0, %v1310_v12  ;;  %1291 = vmatmul.msk.bf16.gmra.mxu3 %vm431_vm0, %v1326_v13  ;;  %v1319_v13 = vld [vmem:[%s1442_s25 + $0x60] sm:$0xff] }
  0x52   : > { %1244 = vmatmul.msk.bf16.gmra.mxu0 %vm431_vm0, %v1311_v14  ;;  %1260 = vmatmul.msk.bf16.gmra.mxu2 %vm431_vm0, %v1327_v15 }
  0x53   : > { %1276 = vmatmul.msk.bf16.gmra.mxu1 %vm431_vm0, %v1311_v14  ;;  %1292 = vmatmul.msk.bf16.gmra.mxu3 %vm431_vm0, %v1327_v15  ;;  %v1335_v14 = vld [vmem:[%s1442_s25 + $0xe0] sm:$0xff] }
  0x62   : > { %1245 = vmatmul.msk.bf16.gmra.mxu0 %vm431_vm0, %v1312_v16  ;;  %1261 = vmatmul.msk.bf16.gmra.mxu2 %vm431_vm0, %v1328_v17 }
  0x63   : > { %1277 = vmatmul.msk.bf16.gmra.mxu1 %vm431_vm0, %v1312_v16  ;;  %1293 = vmatmul.msk.bf16.gmra.mxu3 %vm431_vm0, %v1328_v17 }
  0x72   : > { %1246 = vmatmul.msk.bf16.gmra.mxu0 %vm431_vm0, %v1313_v18  ;;  %1262 = vmatmul.msk.bf16.gmra.mxu2 %vm431_vm0, %v1329_v19 }
  0x73   : > { %1278 = vmatmul.msk.bf16.gmra.mxu1 %vm431_vm0, %v1313_v18  ;;  %1294 = vmatmul.msk.bf16.gmra.mxu3 %vm431_vm0, %v1329_v19 }
  0x82   : > { %1247 = vmatmul.msk.bf16.gmra.mxu0 %vm431_vm0, %v1314_v20  ;;  %1263 = vmatmul.msk.bf16.gmra.mxu2 %vm431_vm0, %v1330_v21 }
  0x83   : > { %1279 = vmatmul.msk.bf16.gmra.mxu1 %vm431_vm0, %v1314_v20  ;;  %1295 = vmatmul.msk.bf16.gmra.mxu3 %vm431_vm0, %v1330_v21 }
  0x8f   : > { %v537_v24 = vpop.f32.mrf.mxu0 }
  0x90   : > { %v706_v25 = vpop.f32.mrf.mxu1 }
  0x91   : > { %v866_v26 = vpack.c.bf16 %v706_v25, %v537_v24 }
  0x92   : > { %1248 = vmatmul.msk.bf16.gmra.mxu0 %vm431_vm0, %v1315_v22  ;;  %1264 = vmatmul.msk.bf16.gmra.mxu2 %vm431_vm0, %v1331_v23 }
  0x93   : > { %930 = vst [vmem:[%s1498_s29] sm:$0xff] %v866_v26  ;;  %1280 = vmatmul.msk.bf16.gmra.mxu1 %vm431_vm0, %v1315_v22  ;;  %1296 = vmatmul.msk.bf16.gmra.mxu3 %vm431_vm0, %v1331_v23 }
  0x95   : > { %v617_v27 = vpop.f32.mrf.mxu2 }
  0x96   : > { %v786_v28 = vpop.f32.mrf.mxu3 }
  0x97   : > { %v898_v29 = vpack.c.bf16 %v786_v28, %v617_v27  ;;  %v539_v30 = vpop.f32.mrf.mxu0  ;;  %v1320_v27 = vld [vmem:[%s1442_s25 + $0x68] sm:$0xff] }
  0x98   : > { %v708_v31 = vpop.f32.mrf.mxu1  ;;  %v1336_v28 = vld [vmem:[%s1442_s25 + $0xe8] sm:$0xff] }
  0x99   : > { %962 = vst [vmem:[%s1498_s29 + $0x100] sm:$0xff] %v898_v29  ;;  %v867_v32 = vpack.c.bf16 %v708_v31, %v539_v30 }
  0x9b   : > { %931 = vst [vmem:[%s1498_s29 + $0x8] sm:$0xff] %v867_v32 }
  0x9d   : > { %v619_v33 = vpop.f32.mrf.mxu2 }
  0x9e   : > { %v788_v34 = vpop.f32.mrf.mxu3 }
  0x9f   : > { %v899_v37 = vpack.c.bf16 %v788_v34, %v619_v33  ;;  %v542_v38 = vpop.f32.mrf.mxu0 }
  0xa0   : > { %v711_v39 = vpop.f32.mrf.mxu1 }
  0xa1   : > { %963 = vst [vmem:[%s1498_s29 + $0x108] sm:$0xff] %v899_v37  ;;  %v868_v40 = vpack.c.bf16 %v711_v39, %v542_v38 }
  0xa2   : > { %1249 = vmatmul.msk.bf16.gmra.mxu0 %vm431_vm0, %v1316_v35  ;;  %1265 = vmatmul.msk.bf16.gmra.mxu2 %vm431_vm0, %v1332_v36 }
  0xa3   : > { %932 = vst [vmem:[%s1498_s29 + $0x10] sm:$0xff] %v868_v40  ;;  %1281 = vmatmul.msk.bf16.gmra.mxu1 %vm431_vm0, %v1316_v35  ;;  %1297 = vmatmul.msk.bf16.gmra.mxu3 %vm431_vm0, %v1332_v36 }
  0xa5   : > { %v622_v41 = vpop.f32.mrf.mxu2 }
  0xa6   : > { %v791_v42 = vpop.f32.mrf.mxu3 }
  0xa7   : > { %v900_v43 = vpack.c.bf16 %v791_v42, %v622_v41  ;;  %v544_v44 = vpop.f32.mrf.mxu0  ;;  %v1321_v41 = vld [vmem:[%s1442_s25 + $0x70] sm:$0xff] }
  0xa8   : > { %v713_v45 = vpop.f32.mrf.mxu1  ;;  %v1337_v42 = vld [vmem:[%s1442_s25 + $0xf0] sm:$0xff] }
  0xa9   : > { %964 = vst [vmem:[%s1498_s29 + $0x110] sm:$0xff] %v900_v43  ;;  %v869_v46 = vpack.c.bf16 %v713_v45, %v544_v44 }
  0xab   : > { %933 = vst [vmem:[%s1498_s29 + $0x18] sm:$0xff] %v869_v46 }
  0xad   : > { %v624_v47 = vpop.f32.mrf.mxu2 }
  0xae   : > { %v793_v48 = vpop.f32.mrf.mxu3 }
  0xaf   : > { %v901_v51 = vpack.c.bf16 %v793_v48, %v624_v47  ;;  %v547_v52 = vpop.f32.mrf.mxu0 }
  0xb0   : > { %v716_v53 = vpop.f32.mrf.mxu1 }
  0xb1   : > { %965 = vst [vmem:[%s1498_s29 + $0x118] sm:$0xff] %v901_v51  ;;  %v870_v54 = vpack.c.bf16 %v716_v53, %v547_v52 }
  0xb2   : > { %1250 = vmatmul.msk.bf16.gmra.mxu0 %vm431_vm0, %v1317_v49  ;;  %1266 = vmatmul.msk.bf16.gmra.mxu2 %vm431_vm0, %v1333_v50 }
  0xb3   : > { %934 = vst [vmem:[%s1498_s29 + $0x20] sm:$0xff] %v870_v54  ;;  %1282 = vmatmul.msk.bf16.gmra.mxu1 %vm431_vm0, %v1317_v49  ;;  %1298 = vmatmul.msk.bf16.gmra.mxu3 %vm431_vm0, %v1333_v50 }
  0xb5   : > { %v627_v55 = vpop.f32.mrf.mxu2 }
  0xb6   : > { %v796_v56 = vpop.f32.mrf.mxu3 }
  0xb7   : > { %v902_v57 = vpack.c.bf16 %v796_v56, %v627_v55  ;;  %v549_v58 = vpop.f32.mrf.mxu0  ;;  %v1322_v55 = vld [vmem:[%s1442_s25 + $0x78] sm:$0xff] }
  0xb8   : > { %v718_v59 = vpop.f32.mrf.mxu1  ;;  %v1338_v56 = vld [vmem:[%s1442_s25 + $0xf8] sm:$0xff] }
  0xb9   : > { %966 = vst [vmem:[%s1498_s29 + $0x120] sm:$0xff] %v902_v57  ;;  %v871_v60 = vpack.c.bf16 %v718_v59, %v549_v58 }
  0xbb   : > { %935 = vst [vmem:[%s1498_s29 + $0x28] sm:$0xff] %v871_v60 }
  0xbd   : > { %v629_v61 = vpop.f32.mrf.mxu2 }
  0xbe   : > { %v798_v62 = vpop.f32.mrf.mxu3 }
  0xbf   : > { %v903_v1 = vpack.c.bf16 %v798_v62, %v629_v61  ;;  %v552_v2 = vpop.f32.mrf.mxu0 }
  0xc0   : > { %v721_v3 = vpop.f32.mrf.mxu1 }
  0xc1   : > { %967 = vst [vmem:[%s1498_s29 + $0x128] sm:$0xff] %v903_v1  ;;  %v872_v4 = vpack.c.bf16 %v721_v3, %v552_v2 }
  0xc2   : > { %1251 = vmatmul.msk.bf16.gmra.mxu0 %vm431_vm0, %v1318_v63  ;;  %1267 = vmatmul.msk.bf16.gmra.mxu2 %vm431_vm0, %v1334_v0 }
  0xc3   : > { %936 = vst [vmem:[%s1498_s29 + $0x30] sm:$0xff] %v872_v4  ;;  %1283 = vmatmul.msk.bf16.gmra.mxu1 %vm431_vm0, %v1318_v63  ;;  %1299 = vmatmul.msk.bf16.gmra.mxu3 %vm431_vm0, %v1334_v0 }
  0xc5   : > { %v632_v5 = vpop.f32.mrf.mxu2 }
  0xc6   : > { %v801_v6 = vpop.f32.mrf.mxu3 }
  0xc7   : > { %v904_v7 = vpack.c.bf16 %v801_v6, %v632_v5  ;;  %v554_v8 = vpop.f32.mrf.mxu0 }
  0xc8   : > { %v723_v9 = vpop.f32.mrf.mxu1 }
  0xc9   : > { %968 = vst [vmem:[%s1498_s29 + $0x130] sm:$0xff] %v904_v7  ;;  %v873_v10 = vpack.c.bf16 %v723_v9, %v554_v8 }
  0xcb   : > { %937 = vst [vmem:[%s1498_s29 + $0x38] sm:$0xff] %v873_v10 }
  0xcd   : > { %v634_v11 = vpop.f32.mrf.mxu2 }
  0xce   : > { %v803_v12 = vpop.f32.mrf.mxu3 }
  0xcf   : > { %v905_v15 = vpack.c.bf16 %v803_v12, %v634_v11  ;;  %v557_v16 = vpop.f32.mrf.mxu0 }
  0xd0   : > { %v726_v17 = vpop.f32.mrf.mxu1 }
  0xd1   : > { %969 = vst [vmem:[%s1498_s29 + $0x138] sm:$0xff] %v905_v15  ;;  %v874_v18 = vpack.c.bf16 %v726_v17, %v557_v16 }
  0xd2   : > { %1252 = vmatmul.msk.bf16.gmra.mxu0 %vm431_vm0, %v1319_v13  ;;  %1268 = vmatmul.msk.bf16.gmra.mxu2 %vm431_vm0, %v1335_v14 }
  0xd3   : > { %938 = vst [vmem:[%s1498_s29 + $0x40] sm:$0xff] %v874_v18  ;;  %1284 = vmatmul.msk.bf16.gmra.mxu1 %vm431_vm0, %v1319_v13  ;;  %1300 = vmatmul.msk.bf16.gmra.mxu3 %vm431_vm0, %v1335_v14 }
  0xd5   : > { %v637_v19 = vpop.f32.mrf.mxu2 }
  0xd6   : > { %v806_v20 = vpop.f32.mrf.mxu3 }
  0xd7   : > { %v906_v21 = vpack.c.bf16 %v806_v20, %v637_v19  ;;  %v559_v22 = vpop.f32.mrf.mxu0 }
  0xd8   : > { %v728_v23 = vpop.f32.mrf.mxu1 }
  0xd9   : > { %970 = vst [vmem:[%s1498_s29 + $0x140] sm:$0xff] %v906_v21  ;;  %v875_v24 = vpack.c.bf16 %v728_v23, %v559_v22 }
  0xdb   : > { %939 = vst [vmem:[%s1498_s29 + $0x48] sm:$0xff] %v875_v24 }
  0xdd   : > { %v639_v25 = vpop.f32.mrf.mxu2 }
  0xde   : > { %v808_v26 = vpop.f32.mrf.mxu3 }
  0xdf   : > { %v907_v29 = vpack.c.bf16 %v808_v26, %v639_v25  ;;  %v562_v30 = vpop.f32.mrf.mxu0 }
  0xe0   : > { %v731_v31 = vpop.f32.mrf.mxu1 }
  0xe1   : > { %971 = vst [vmem:[%s1498_s29 + $0x148] sm:$0xff] %v907_v29  ;;  %v876_v32 = vpack.c.bf16 %v731_v31, %v562_v30 }
  0xe2   : > { %1253 = vmatmul.msk.bf16.gmra.mxu0 %vm431_vm0, %v1320_v27  ;;  %1269 = vmatmul.msk.bf16.gmra.mxu2 %vm431_vm0, %v1336_v28 }
  0xe3   : > { %940 = vst [vmem:[%s1498_s29 + $0x50] sm:$0xff] %v876_v32  ;;  %1285 = vmatmul.msk.bf16.gmra.mxu1 %vm431_vm0, %v1320_v27  ;;  %1301 = vmatmul.msk.bf16.gmra.mxu3 %vm431_vm0, %v1336_v28 }
  0xe5   : > { %v642_v33 = vpop.f32.mrf.mxu2 }
  0xe6   : > { %v811_v34 = vpop.f32.mrf.mxu3 }
  0xe7   : > { %v908_v35 = vpack.c.bf16 %v811_v34, %v642_v33  ;;  %v564_v36 = vpop.f32.mrf.mxu0 }
  0xe8   : > { %v733_v37 = vpop.f32.mrf.mxu1 }
  0xe9   : > { %972 = vst [vmem:[%s1498_s29 + $0x150] sm:$0xff] %v908_v35  ;;  %v877_v38 = vpack.c.bf16 %v733_v37, %v564_v36 }
  0xeb   : > { %941 = vst [vmem:[%s1498_s29 + $0x58] sm:$0xff] %v877_v38 }
  0xed   : > { %v644_v39 = vpop.f32.mrf.mxu2 }
  0xee   : > { %v813_v40 = vpop.f32.mrf.mxu3 }
  0xef   : > { %v909_v43 = vpack.c.bf16 %v813_v40, %v644_v39  ;;  %v567_v44 = vpop.f32.mrf.mxu0 }
  0xf0   : > { %v736_v45 = vpop.f32.mrf.mxu1 }
  0xf1   : > { %973 = vst [vmem:[%s1498_s29 + $0x158] sm:$0xff] %v909_v43  ;;  %v878_v46 = vpack.c.bf16 %v736_v45, %v567_v44 }
  0xf2   : > { %1254 = vmatmul.msk.bf16.gmra.mxu0 %vm431_vm0, %v1321_v41  ;;  %1270 = vmatmul.msk.bf16.gmra.mxu2 %vm431_vm0, %v1337_v42 }
  0xf3   : > { %942 = vst [vmem:[%s1498_s29 + $0x60] sm:$0xff] %v878_v46  ;;  %1286 = vmatmul.msk.bf16.gmra.mxu1 %vm431_vm0, %v1321_v41  ;;  %1302 = vmatmul.msk.bf16.gmra.mxu3 %vm431_vm0, %v1337_v42 }
  0xf5   : > { %v647_v47 = vpop.f32.mrf.mxu2 }
  0xf6   : > { %v816_v48 = vpop.f32.mrf.mxu3 }
  0xf7   : > { %v910_v49 = vpack.c.bf16 %v816_v48, %v647_v47  ;;  %v569_v50 = vpop.f32.mrf.mxu0 }
  0xf8   : > { %v738_v51 = vpop.f32.mrf.mxu1 }
  0xf9   : > { %974 = vst [vmem:[%s1498_s29 + $0x160] sm:$0xff] %v910_v49  ;;  %v879_v52 = vpack.c.bf16 %v738_v51, %v569_v50 }
  0xfb   : > { %943 = vst [vmem:[%s1498_s29 + $0x68] sm:$0xff] %v879_v52 }
  0xfd   : > { %v649_v53 = vpop.f32.mrf.mxu2 }
  0xfe   : > { %v818_v54 = vpop.f32.mrf.mxu3 }
  0xff   : > { %v911_v57 = vpack.c.bf16 %v818_v54, %v649_v53  ;;  %v572_v58 = vpop.f32.mrf.mxu0 }
 0x100   : > { %v741_v59 = vpop.f32.mrf.mxu1 }
 0x101   : > { %975 = vst [vmem:[%s1498_s29 + $0x168] sm:$0xff] %v911_v57  ;;  %v880_v60 = vpack.c.bf16 %v741_v59, %v572_v58 }
 0x102   : > { %1255 = vmatmul.msk.bf16.gmra.mxu0 %vm431_vm0, %v1322_v55  ;;  %1271 = vmatmul.msk.bf16.gmra.mxu2 %vm431_vm0, %v1338_v56 }
 0x103   : > { %944 = vst [vmem:[%s1498_s29 + $0x70] sm:$0xff] %v880_v60  ;;  %1287 = vmatmul.msk.bf16.gmra.mxu1 %vm431_vm0, %v1322_v55  ;;  %1303 = vmatmul.msk.bf16.gmra.mxu3 %vm431_vm0, %v1338_v56 }
 0x105   : > { %v652_v61 = vpop.f32.mrf.mxu2 }
 0x106   : > { %v821_v62 = vpop.f32.mrf.mxu3 }
 0x107   : > { %v912_v63 = vpack.c.bf16 %v821_v62, %v652_v61  ;;  %v574_v0 = vpop.f32.mrf.mxu0 }
 0x108   : > { %v743_v1 = vpop.f32.mrf.mxu1 }
 0x109   : > { %976 = vst [vmem:[%s1498_s29 + $0x170] sm:$0xff] %v912_v63  ;;  %v881_v2 = vpack.c.bf16 %v743_v1, %v574_v0 }
 0x10b   : > { %945 = vst [vmem:[%s1498_s29 + $0x78] sm:$0xff] %v881_v2 }
 0x10d   : > { %v654_v3 = vpop.f32.mrf.mxu2 }
 0x10e   : > { %v823_v4 = vpop.f32.mrf.mxu3 }
 0x10f   : > { %v913_v5 = vpack.c.bf16 %v823_v4, %v654_v3  ;;  %v577_v6 = vpop.f32.mrf.mxu0 }
 0x110   : > { %v746_v7 = vpop.f32.mrf.mxu1 }
 0x111   : > { %977 = vst [vmem:[%s1498_s29 + $0x178] sm:$0xff] %v913_v5  ;;  %v882_v8 = vpack.c.bf16 %v746_v7, %v577_v6 }
 0x113   : > { %946 = vst [vmem:[%s1498_s29 + $0x80] sm:$0xff] %v882_v8 }
 0x115   : > { %v657_v9 = vpop.f32.mrf.mxu2 }
 0x116   : > { %v826_v10 = vpop.f32.mrf.mxu3 }
 0x117   : > { %v914_v11 = vpack.c.bf16 %v826_v10, %v657_v9  ;;  %v579_v12 = vpop.f32.mrf.mxu0 }
 0x118   : > { %v748_v13 = vpop.f32.mrf.mxu1 }
 0x119   : > { %978 = vst [vmem:[%s1498_s29 + $0x180] sm:$0xff] %v914_v11  ;;  %v883_v14 = vpack.c.bf16 %v748_v13, %v579_v12 }
 0x11b   : > { %947 = vst [vmem:[%s1498_s29 + $0x88] sm:$0xff] %v883_v14 }
 0x11d   : > { %v659_v15 = vpop.f32.mrf.mxu2 }
 0x11e   : > { %v828_v16 = vpop.f32.mrf.mxu3 }
 0x11f   : > { %v915_v17 = vpack.c.bf16 %v828_v16, %v659_v15  ;;  %v582_v18 = vpop.f32.mrf.mxu0 }
 0x120   : > { %v751_v19 = vpop.f32.mrf.mxu1 }
 0x121   : > { %979 = vst [vmem:[%s1498_s29 + $0x188] sm:$0xff] %v915_v17  ;;  %v884_v20 = vpack.c.bf16 %v751_v19, %v582_v18 }
 0x123   : > { %948 = vst [vmem:[%s1498_s29 + $0x90] sm:$0xff] %v884_v20 }
 0x125   : > { %v662_v21 = vpop.f32.mrf.mxu2 }
 0x126   : > { %v831_v22 = vpop.f32.mrf.mxu3 }
 0x127   : > { %v916_v23 = vpack.c.bf16 %v831_v22, %v662_v21  ;;  %v584_v24 = vpop.f32.mrf.mxu0 }
 0x128   : > { %v753_v25 = vpop.f32.mrf.mxu1 }
 0x129   : > { %980 = vst [vmem:[%s1498_s29 + $0x190] sm:$0xff] %v916_v23  ;;  %v885_v26 = vpack.c.bf16 %v753_v25, %v584_v24 }
 0x12b   : > { %949 = vst [vmem:[%s1498_s29 + $0x98] sm:$0xff] %v885_v26 }
 0x12d   : > { %v664_v27 = vpop.f32.mrf.mxu2 }
 0x12e   : > { %v833_v28 = vpop.f32.mrf.mxu3 }
 0x12f   : > { %v917_v29 = vpack.c.bf16 %v833_v28, %v664_v27  ;;  %v587_v30 = vpop.f32.mrf.mxu0 }
 0x130   : > { %v756_v31 = vpop.f32.mrf.mxu1 }
 0x131   : > { %981 = vst [vmem:[%s1498_s29 + $0x198] sm:$0xff] %v917_v29  ;;  %v886_v32 = vpack.c.bf16 %v756_v31, %v587_v30 }
 0x133   : > { %950 = vst [vmem:[%s1498_s29 + $0xa0] sm:$0xff] %v886_v32 }
 0x135   : > { %v667_v33 = vpop.f32.mrf.mxu2 }
 0x136   : > { %v836_v34 = vpop.f32.mrf.mxu3 }
 0x137   : > { %v918_v35 = vpack.c.bf16 %v836_v34, %v667_v33  ;;  %v589_v36 = vpop.f32.mrf.mxu0 }
 0x138   : > { %v758_v37 = vpop.f32.mrf.mxu1 }
 0x139   : > { %982 = vst [vmem:[%s1498_s29 + $0x1a0] sm:$0xff] %v918_v35  ;;  %v887_v38 = vpack.c.bf16 %v758_v37, %v589_v36 }
 0x13b   : > { %951 = vst [vmem:[%s1498_s29 + $0xa8] sm:$0xff] %v887_v38 }
 0x13d   : > { %v669_v39 = vpop.f32.mrf.mxu2 }
 0x13e   : > { %v838_v40 = vpop.f32.mrf.mxu3 }
 0x13f   : > { %v919_v41 = vpack.c.bf16 %v838_v40, %v669_v39  ;;  %v592_v42 = vpop.f32.mrf.mxu0 }
 0x140   : > { %v761_v43 = vpop.f32.mrf.mxu1 }
 0x141   : > { %983 = vst [vmem:[%s1498_s29 + $0x1a8] sm:$0xff] %v919_v41  ;;  %v888_v44 = vpack.c.bf16 %v761_v43, %v592_v42 }
 0x143   : > { %952 = vst [vmem:[%s1498_s29 + $0xb0] sm:$0xff] %v888_v44 }
 0x145   : > { %v672_v45 = vpop.f32.mrf.mxu2 }
 0x146   : > { %v841_v46 = vpop.f32.mrf.mxu3 }
 0x147   : > { %v920_v47 = vpack.c.bf16 %v841_v46, %v672_v45  ;;  %v594_v48 = vpop.f32.mrf.mxu0 }
 0x148   : > { %v763_v49 = vpop.f32.mrf.mxu1 }
 0x149   : > { %984 = vst [vmem:[%s1498_s29 + $0x1b0] sm:$0xff] %v920_v47  ;;  %v889_v50 = vpack.c.bf16 %v763_v49, %v594_v48 }
 0x14b   : > { %953 = vst [vmem:[%s1498_s29 + $0xb8] sm:$0xff] %v889_v50 }
 0x14d   : > { %v674_v51 = vpop.f32.mrf.mxu2 }
 0x14e   : > { %v843_v52 = vpop.f32.mrf.mxu3 }
 0x14f   : > { %v921_v53 = vpack.c.bf16 %v843_v52, %v674_v51  ;;  %v597_v54 = vpop.f32.mrf.mxu0 }
 0x150   : > { %v766_v55 = vpop.f32.mrf.mxu1 }
 0x151   : > { %985 = vst [vmem:[%s1498_s29 + $0x1b8] sm:$0xff] %v921_v53  ;;  %v890_v56 = vpack.c.bf16 %v766_v55, %v597_v54 }
 0x153   : > { %954 = vst [vmem:[%s1498_s29 + $0xc0] sm:$0xff] %v890_v56 }
 0x155   : > { %v677_v57 = vpop.f32.mrf.mxu2 }
 0x156   : > { %v846_v58 = vpop.f32.mrf.mxu3 }
 0x157   : > { %v922_v59 = vpack.c.bf16 %v846_v58, %v677_v57  ;;  %v599_v60 = vpop.f32.mrf.mxu0 }
 0x158   : > { %v768_v61 = vpop.f32.mrf.mxu1 }
 0x159   : > { %986 = vst [vmem:[%s1498_s29 + $0x1c0] sm:$0xff] %v922_v59  ;;  %v891_v62 = vpack.c.bf16 %v768_v61, %v599_v60 }
 0x15b   : > { %955 = vst [vmem:[%s1498_s29 + $0xc8] sm:$0xff] %v891_v62 }
 0x15d   : > { %v679_v63 = vpop.f32.mrf.mxu2 }
 0x15e   : > { %v848_v0 = vpop.f32.mrf.mxu3 }
 0x15f   : > { %v923_v1 = vpack.c.bf16 %v848_v0, %v679_v63  ;;  %v602_v2 = vpop.f32.mrf.mxu0 }
 0x160   : > { %v771_v3 = vpop.f32.mrf.mxu1 }
 0x161   : > { %987 = vst [vmem:[%s1498_s29 + $0x1c8] sm:$0xff] %v923_v1  ;;  %v892_v4 = vpack.c.bf16 %v771_v3, %v602_v2 }
 0x163   : > { %956 = vst [vmem:[%s1498_s29 + $0xd0] sm:$0xff] %v892_v4 }
 0x165   : > { %v682_v5 = vpop.f32.mrf.mxu2 }
 0x166   : > { %v851_v6 = vpop.f32.mrf.mxu3 }
 0x167   : > { %v924_v7 = vpack.c.bf16 %v851_v6, %v682_v5  ;;  %v604_v8 = vpop.f32.mrf.mxu0 }
 0x168   : > { %v773_v9 = vpop.f32.mrf.mxu1 }
 0x169   : > { %988 = vst [vmem:[%s1498_s29 + $0x1d0] sm:$0xff] %v924_v7  ;;  %v893_v10 = vpack.c.bf16 %v773_v9, %v604_v8 }
 0x16b   : > { %957 = vst [vmem:[%s1498_s29 + $0xd8] sm:$0xff] %v893_v10 }
 0x16d   : > { %v684_v11 = vpop.f32.mrf.mxu2 }
 0x16e   : > { %v853_v12 = vpop.f32.mrf.mxu3 }
 0x16f   : > { %v925_v13 = vpack.c.bf16 %v853_v12, %v684_v11  ;;  %v607_v14 = vpop.f32.mrf.mxu0 }
 0x170   : > { %v776_v15 = vpop.f32.mrf.mxu1 }
 0x171   : > { %989 = vst [vmem:[%s1498_s29 + $0x1d8] sm:$0xff] %v925_v13  ;;  %v894_v16 = vpack.c.bf16 %v776_v15, %v607_v14 }
 0x173   : > { %958 = vst [vmem:[%s1498_s29 + $0xe0] sm:$0xff] %v894_v16 }
 0x175   : > { %v687_v17 = vpop.f32.mrf.mxu2 }
 0x176   : > { %v856_v18 = vpop.f32.mrf.mxu3 }
 0x177   : > { %v926_v19 = vpack.c.bf16 %v856_v18, %v687_v17  ;;  %v609_v20 = vpop.f32.mrf.mxu0 }
 0x178   : > { %v778_v21 = vpop.f32.mrf.mxu1 }
 0x179   : > { %990 = vst [vmem:[%s1498_s29 + $0x1e0] sm:$0xff] %v926_v19  ;;  %v895_v22 = vpack.c.bf16 %v778_v21, %v609_v20 }
 0x17b   : > { %959 = vst [vmem:[%s1498_s29 + $0xe8] sm:$0xff] %v895_v22 }
 0x17d   : > { %v689_v23 = vpop.f32.mrf.mxu2 }
 0x17e   : > { %v858_v24 = vpop.f32.mrf.mxu3 }
 0x17f   : > { %v927_v25 = vpack.c.bf16 %v858_v24, %v689_v23  ;;  %v612_v26 = vpop.f32.mrf.mxu0 }
 0x180   : > { %v781_v27 = vpop.f32.mrf.mxu1 }
 0x181   : > { %991 = vst [vmem:[%s1498_s29 + $0x1e8] sm:$0xff] %v927_v25  ;;  %v896_v28 = vpack.c.bf16 %v781_v27, %v612_v26 }
 0x183   : > { %960 = vst [vmem:[%s1498_s29 + $0xf0] sm:$0xff] %v896_v28 }
 0x185   : > { %v692_v29 = vpop.f32.mrf.mxu2 }
 0x186   : > { %v861_v30 = vpop.f32.mrf.mxu3 }
 0x187   : > { %v928_v31 = vpack.c.bf16 %v861_v30, %v692_v29  ;;  %v614_v32 = vpop.f32.mrf.mxu0 }
 0x188   : > { %v783_v33 = vpop.f32.mrf.mxu1 }
 0x189   : > { %992 = vst [vmem:[%s1498_s29 + $0x1f0] sm:$0xff] %v928_v31  ;;  %v897_v34 = vpack.c.bf16 %v783_v33, %v614_v32 }
 0x18b   : > { %961 = vst [vmem:[%s1498_s29 + $0xf8] sm:$0xff] %v897_v34 }
 0x18d   : > { %v694_v35 = vpop.f32.mrf.mxu2 }
 0x18e   : > { %v863_v36 = vpop.f32.mrf.mxu3 }
 0x18f   : > { %v929_v37 = vpack.c.bf16 %v863_v36, %v694_v35 }
 0x191   : > { %993 = vst [vmem:[%s1498_s29 + $0x1f8] sm:$0xff] %v929_v37 }
 0x192 PF: > { %s12_s11 = sadd.s32 1, %s1389_s11   ;;  %s1622_s9 = smov %s1385_s10 }
 0x193   : > { %p9_p5 = scmp.ge.s32.totalorder %s12_s11, 6   ;;  %s1623_s10 = smov %s1625_s12 }
 0x195   :  { %11 = sbr.rel (!%p9_p5) target bundleno = 2 (0x2), region = 61 }

// kernel: generator_forward.11
= control target key start
LH: loop header
LB: loop body
LE: loop exit
PB: predicated region body
PF: predicated region fallthrough
CT: control target
= control target key end

     0   :  { %s1359_s9 = smov 0   ;;  %s1361_s10 = smov 0   ;;  %s1502_s0 = inlined_call_operand.vmem [shape: bf16[8192,8], index: 0, kind: input, shape index: {}]   ;;  %s1503_s1 = inlined_call_operand.vmem [shape: bf16[8,128], index: 1, kind: input, shape index: {}]   ;;  %s1504_s2 = inlined_call_operand.vmem [shape: bf16[8192,128], index: 2, kind: output, shape index: {}]  }
   0x1   :  { %s1363_s11 = smov 0  }
   0x2 LB: > { %s24_s12 = sadd.s32 1, %s1338_s10  ;;  %p903_p0 = scmp.ge.s32.totalorder %s1342_s11, 1  ;;  %s1342_s11 = sphi %s1363_s11, %s12_s11   ;;  %s1338_s10 = sphi %s1361_s10, %s1506_s10   ;;  %s1334_s9 = sphi %s1359_s9, %s1505_s9  }
   0x3   : > { %p26_p1 = scmp.ge.s32.totalorder %s24_s12, 16  ;;  %p136_p2 = scmp.lt.s32.totalorder %s1342_s11, 17 }
   0x5   : > { %s1508_s12 = smov (%p26_p1, %s24_s12), 0  ;;  %p137_p3 = pnand %p903_p0, %p136_p2 }
   0x6   : > { %s904_s15 = sshll.u32 (!%p137_p3), %s1334_s9, 6 }
   0x7   : > { %140 = sbr.rel (%p137_p3) target bundleno = 274 (0x112), region = 28  ;;  %p166_p4 = scmp.lt.s32.totalorder (!%p137_p3), %s904_s15, 1023 }
   0xc   : > { %v249_v0 = vld [vmem:[%s1503_s1] sm:$0xf]  ;;  %vm507_vm0 = vcmask 1043456   ;;  %s1510_s15 = smov (!%p166_p4, %s904_s15), 1023  ;;  %vm410_vm1 = vcmask 64512  }
   0xd   : > { %v509_v1 = vsel %vm507_vm0, %v249_v0, 0  ;;  %s905_s16 = sshll.u32 %s1510_s15, 2 }
   0xe   : > { %518 = vmatpush.bf16.msra.mxu0 %v509_v1  ;;  %1293 = vmatpush.bf16.msra.mxu1 %v509_v1  ;;  %s1388_s19 = scalar_lea.vmem %s1502_s0, %s905_s16  ;;  %s1459_s22 = scalar_lea.vmem %s1504_s2, %s905_s16 }
   0xf   : > { %1294 = vmatpush.bf16.msra.mxu2 %v509_v1  ;;  %1295 = vmatpush.bf16.msra.mxu3 %v509_v1  ;;  %v1070_v2 = vld [vmem:[%s1388_s19] sm:$0xff]  ;;  %v1071_v6 = vld [vmem:[%s1388_s19 + $0x8] sm:$0xff]  ;;  %v1072_v10 = vld [vmem:[%s1388_s19 + $0x10] sm:$0xff] }
  0x10   : > { %v1078_v3 = vld [vmem:[%s1388_s19 + $0x40] sm:$0xff]  ;;  %v1079_v7 = vld [vmem:[%s1388_s19 + $0x48] sm:$0xff]  ;;  %v1080_v11 = vld [vmem:[%s1388_s19 + $0x50] sm:$0xff] }
  0x11   : > { %v1086_v4 = vld [vmem:[%s1388_s19 + $0x80] sm:$0xff]  ;;  %1036 = vmatmul.msk.bf16.vlgmr.msra.gmra.mxu0 %vm410_vm1, %v1070_v2  ;;  %1044 = vmatmul.msk.bf16.vlgmr.msra.gmra.mxu1 %vm410_vm1, %v1078_v3  ;;  %v1087_v8 = vld [vmem:[%s1388_s19 + $0x88] sm:$0xff]  ;;  %v1088_v12 = vld [vmem:[%s1388_s19 + $0x90] sm:$0xff] }
  0x12   : > { %v1094_v5 = vld [vmem:[%s1388_s19 + $0xc0] sm:$0xff]  ;;  %1052 = vmatmul.msk.bf16.vlgmr.msra.gmra.mxu2 %vm410_vm1, %v1086_v4  ;;  %v1095_v9 = vld [vmem:[%s1388_s19 + $0xc8] sm:$0xff]  ;;  %v1096_v13 = vld [vmem:[%s1388_s19 + $0xd0] sm:$0xff] }
  0x13   : > { %1060 = vmatmul.msk.bf16.vlgmr.msra.gmra.mxu3 %vm410_vm1, %v1094_v5  ;;  %v1073_v14 = vld [vmem:[%s1388_s19 + $0x18] sm:$0xff]  ;;  %v1074_v18 = vld [vmem:[%s1388_s19 + $0x20] sm:$0xff]  ;;  %v1075_v22 = vld [vmem:[%s1388_s19 + $0x28] sm:$0xff] }
  0x14   : > { %v1081_v15 = vld [vmem:[%s1388_s19 + $0x58] sm:$0xff]  ;;  %v1082_v19 = vld [vmem:[%s1388_s19 + $0x60] sm:$0xff]  ;;  %v1083_v23 = vld [vmem:[%s1388_s19 + $0x68] sm:$0xff] }
  0x15   : > { %v1089_v16 = vld [vmem:[%s1388_s19 + $0x98] sm:$0xff]  ;;  %v1090_v20 = vld [vmem:[%s1388_s19 + $0xa0] sm:$0xff]  ;;  %v1091_v24 = vld [vmem:[%s1388_s19 + $0xa8] sm:$0xff] }
  0x16   : > { %v1097_v17 = vld [vmem:[%s1388_s19 + $0xd8] sm:$0xff]  ;;  %v1098_v21 = vld [vmem:[%s1388_s19 + $0xe0] sm:$0xff]  ;;  %v1099_v25 = vld [vmem:[%s1388_s19 + $0xe8] sm:$0xff] }
  0x17   : > { %v1076_v26 = vld [vmem:[%s1388_s19 + $0x30] sm:$0xff]  ;;  %v1077_v30 = vld [vmem:[%s1388_s19 + $0x38] sm:$0xff] }
  0x18   : > { %v1084_v27 = vld [vmem:[%s1388_s19 + $0x70] sm:$0xff]  ;;  %v1085_v31 = vld [vmem:[%s1388_s19 + $0x78] sm:$0xff] }
  0x19   : > { %v1092_v28 = vld [vmem:[%s1388_s19 + $0xb0] sm:$0xff]  ;;  %v1093_v32 = vld [vmem:[%s1388_s19 + $0xb8] sm:$0xff] }
  0x1a   : > { %v1100_v29 = vld [vmem:[%s1388_s19 + $0xf0] sm:$0xff]  ;;  %v1101_v33 = vld [vmem:[%s1388_s19 + $0xf8] sm:$0xff] }
  0x21   : > { %1037 = vmatmul.msk.bf16.gmra.mxu0 %vm410_vm1, %v1071_v6  ;;  %1045 = vmatmul.msk.bf16.gmra.mxu1 %vm410_vm1, %v1079_v7 }
  0x22   : > { %1053 = vmatmul.msk.bf16.gmra.mxu2 %vm410_vm1, %v1087_v8 }
  0x23   : > { %1061 = vmatmul.msk.bf16.gmra.mxu3 %vm410_vm1, %v1095_v9 }
  0x31   : > { %1038 = vmatmul.msk.bf16.gmra.mxu0 %vm410_vm1, %v1072_v10  ;;  %1046 = vmatmul.msk.bf16.gmra.mxu1 %vm410_vm1, %v1080_v11 }
  0x32   : > { %1054 = vmatmul.msk.bf16.gmra.mxu2 %vm410_vm1, %v1088_v12 }
  0x33   : > { %1062 = vmatmul.msk.bf16.gmra.mxu3 %vm410_vm1, %v1096_v13 }
  0x41   : > { %1039 = vmatmul.msk.bf16.gmra.mxu0 %vm410_vm1, %v1073_v14  ;;  %1047 = vmatmul.msk.bf16.gmra.mxu1 %vm410_vm1, %v1081_v15 }
  0x42   : > { %1055 = vmatmul.msk.bf16.gmra.mxu2 %vm410_vm1, %v1089_v16 }
  0x43   : > { %1063 = vmatmul.msk.bf16.gmra.mxu3 %vm410_vm1, %v1097_v17 }
  0x51   : > { %1040 = vmatmul.msk.bf16.gmra.mxu0 %vm410_vm1, %v1074_v18  ;;  %1048 = vmatmul.msk.bf16.gmra.mxu1 %vm410_vm1, %v1082_v19 }
  0x52   : > { %1056 = vmatmul.msk.bf16.gmra.mxu2 %vm410_vm1, %v1090_v20 }
  0x53   : > { %1064 = vmatmul.msk.bf16.gmra.mxu3 %vm410_vm1, %v1098_v21 }
  0x61   : > { %1041 = vmatmul.msk.bf16.gmra.mxu0 %vm410_vm1, %v1075_v22  ;;  %1049 = vmatmul.msk.bf16.gmra.mxu1 %vm410_vm1, %v1083_v23 }
  0x62   : > { %1057 = vmatmul.msk.bf16.gmra.mxu2 %vm410_vm1, %v1091_v24 }
  0x63   : > { %1065 = vmatmul.msk.bf16.gmra.mxu3 %vm410_vm1, %v1099_v25 }
  0x71   : > { %1042 = vmatmul.msk.bf16.gmra.mxu0 %vm410_vm1, %v1076_v26  ;;  %1050 = vmatmul.msk.bf16.gmra.mxu1 %vm410_vm1, %v1084_v27 }
  0x72   : > { %1058 = vmatmul.msk.bf16.gmra.mxu2 %vm410_vm1, %v1092_v28 }
  0x73   : > { %1066 = vmatmul.msk.bf16.gmra.mxu3 %vm410_vm1, %v1100_v29 }
  0x81   : > { %1043 = vmatmul.msk.bf16.gmra.mxu0 %vm410_vm1, %v1077_v30  ;;  %1051 = vmatmul.msk.bf16.gmra.mxu1 %vm410_vm1, %v1085_v31 }
  0x82   : > { %1059 = vmatmul.msk.bf16.gmra.mxu2 %vm410_vm1, %v1093_v32 }
  0x83   : > { %1067 = vmatmul.msk.bf16.gmra.mxu3 %vm410_vm1, %v1101_v33 }
  0x8e   : > { %v520_v34 = vpop.f32.mrf.mxu0  ;;  %v560_v35 = vpop.f32.mrf.mxu1 }
  0x95   : > { %v600_v36 = vpop.f32.mrf.mxu2 }
  0x96   : > { %v640_v37 = vpop.f32.mrf.mxu3  ;;  %v522_v38 = vpop.f32.mrf.mxu0 }
  0x97   : > { %v562_v39 = vpop.f32.mrf.mxu1  ;;  %v1105_v40 = vpack.c.bf16 %v522_v38, %v520_v34 }
  0x98   : > { %v1145_v41 = vpack.c.bf16 %v562_v39, %v560_v35 }
  0x99   : > { %1106 = vst [vmem:[%s1459_s22] sm:$0xff] %v1105_v40  }
  0x9a   : > { %1269 = vst [vmem:[%s1459_s22 + $0x40] sm:$0xff] %v1145_v41  }
  0x9d   : > { %v602_v42 = vpop.f32.mrf.mxu2 }
  0x9e   : > { %v642_v43 = vpop.f32.mrf.mxu3  ;;  %v1185_v44 = vpack.c.bf16 %v602_v42, %v600_v36  ;;  %v525_v46 = vpop.f32.mrf.mxu0 }
  0x9f   : > { %v1225_v45 = vpack.c.bf16 %v642_v43, %v640_v37  ;;  %v565_v47 = vpop.f32.mrf.mxu1 }
  0xa0   : > { %1277 = vst [vmem:[%s1459_s22 + $0x80] sm:$0xff] %v1185_v44  }
  0xa1   : > { %1285 = vst [vmem:[%s1459_s22 + $0xc0] sm:$0xff] %v1225_v45  }
  0xa5   : > { %v605_v48 = vpop.f32.mrf.mxu2 }
  0xa6   : > { %v645_v49 = vpop.f32.mrf.mxu3  ;;  %v527_v50 = vpop.f32.mrf.mxu0 }
  0xa7   : > { %v567_v51 = vpop.f32.mrf.mxu1  ;;  %v1110_v52 = vpack.c.bf16 %v527_v50, %v525_v46 }
  0xa8   : > { %v1150_v53 = vpack.c.bf16 %v567_v51, %v565_v47 }
  0xa9   : > { %1262 = vst [vmem:[%s1459_s22 + $0x8] sm:$0xff] %v1110_v52  }
  0xaa   : > { %1270 = vst [vmem:[%s1459_s22 + $0x48] sm:$0xff] %v1150_v53  }
  0xad   : > { %v607_v54 = vpop.f32.mrf.mxu2 }
  0xae   : > { %v647_v55 = vpop.f32.mrf.mxu3  ;;  %v1190_v56 = vpack.c.bf16 %v607_v54, %v605_v48  ;;  %v530_v58 = vpop.f32.mrf.mxu0 }
  0xaf   : > { %v1230_v57 = vpack.c.bf16 %v647_v55, %v645_v49  ;;  %v570_v59 = vpop.f32.mrf.mxu1 }
  0xb0   : > { %1278 = vst [vmem:[%s1459_s22 + $0x88] sm:$0xff] %v1190_v56  }
  0xb1   : > { %1286 = vst [vmem:[%s1459_s22 + $0xc8] sm:$0xff] %v1230_v57  }
  0xb5   : > { %v610_v60 = vpop.f32.mrf.mxu2 }
  0xb6   : > { %v650_v61 = vpop.f32.mrf.mxu3  ;;  %v532_v62 = vpop.f32.mrf.mxu0 }
  0xb7   : > { %v572_v63 = vpop.f32.mrf.mxu1  ;;  %v1115_v0 = vpack.c.bf16 %v532_v62, %v530_v58 }
  0xb8   : > { %v1155_v1 = vpack.c.bf16 %v572_v63, %v570_v59 }
  0xb9   : > { %1263 = vst [vmem:[%s1459_s22 + $0x10] sm:$0xff] %v1115_v0  }
  0xba   : > { %1271 = vst [vmem:[%s1459_s22 + $0x50] sm:$0xff] %v1155_v1  }
  0xbd   : > { %v612_v2 = vpop.f32.mrf.mxu2 }
  0xbe   : > { %v652_v3 = vpop.f32.mrf.mxu3  ;;  %v1195_v4 = vpack.c.bf16 %v612_v2, %v610_v60  ;;  %v535_v6 = vpop.f32.mrf.mxu0 }
  0xbf   : > { %v1235_v5 = vpack.c.bf16 %v652_v3, %v650_v61  ;;  %v575_v7 = vpop.f32.mrf.mxu1 }
  0xc0   : > { %1279 = vst [vmem:[%s1459_s22 + $0x90] sm:$0xff] %v1195_v4  }
  0xc1   : > { %1287 = vst [vmem:[%s1459_s22 + $0xd0] sm:$0xff] %v1235_v5  }
  0xc5   : > { %v615_v8 = vpop.f32.mrf.mxu2 }
  0xc6   : > { %v655_v9 = vpop.f32.mrf.mxu3  ;;  %v537_v10 = vpop.f32.mrf.mxu0 }
  0xc7   : > { %v577_v11 = vpop.f32.mrf.mxu1  ;;  %v1120_v12 = vpack.c.bf16 %v537_v10, %v535_v6 }
  0xc8   : > { %v1160_v13 = vpack.c.bf16 %v577_v11, %v575_v7 }
  0xc9   : > { %1264 = vst [vmem:[%s1459_s22 + $0x18] sm:$0xff] %v1120_v12  }
  0xca   : > { %1272 = vst [vmem:[%s1459_s22 + $0x58] sm:$0xff] %v1160_v13  }
  0xcd   : > { %v617_v14 = vpop.f32.mrf.mxu2 }
  0xce   : > { %v657_v15 = vpop.f32.mrf.mxu3  ;;  %v1200_v16 = vpack.c.bf16 %v617_v14, %v615_v8  ;;  %v540_v18 = vpop.f32.mrf.mxu0 }
  0xcf   : > { %v1240_v17 = vpack.c.bf16 %v657_v15, %v655_v9  ;;  %v580_v19 = vpop.f32.mrf.mxu1 }
  0xd0   : > { %1280 = vst [vmem:[%s1459_s22 + $0x98] sm:$0xff] %v1200_v16  }
  0xd1   : > { %1288 = vst [vmem:[%s1459_s22 + $0xd8] sm:$0xff] %v1240_v17  }
  0xd5   : > { %v620_v20 = vpop.f32.mrf.mxu2 }
  0xd6   : > { %v660_v21 = vpop.f32.mrf.mxu3  ;;  %v542_v22 = vpop.f32.mrf.mxu0 }
  0xd7   : > { %v582_v23 = vpop.f32.mrf.mxu1  ;;  %v1125_v24 = vpack.c.bf16 %v542_v22, %v540_v18 }
  0xd8   : > { %v1165_v25 = vpack.c.bf16 %v582_v23, %v580_v19 }
  0xd9   : > { %1265 = vst [vmem:[%s1459_s22 + $0x20] sm:$0xff] %v1125_v24  }
  0xda   : > { %1273 = vst [vmem:[%s1459_s22 + $0x60] sm:$0xff] %v1165_v25  }
  0xdd   : > { %v622_v26 = vpop.f32.mrf.mxu2 }
  0xde   : > { %v662_v27 = vpop.f32.mrf.mxu3  ;;  %v1205_v28 = vpack.c.bf16 %v622_v26, %v620_v20  ;;  %v545_v30 = vpop.f32.mrf.mxu0 }
  0xdf   : > { %v1245_v29 = vpack.c.bf16 %v662_v27, %v660_v21  ;;  %v585_v31 = vpop.f32.mrf.mxu1 }
  0xe0   : > { %1281 = vst [vmem:[%s1459_s22 + $0xa0] sm:$0xff] %v1205_v28  }
  0xe1   : > { %1289 = vst [vmem:[%s1459_s22 + $0xe0] sm:$0xff] %v1245_v29  }
  0xe5   : > { %v625_v32 = vpop.f32.mrf.mxu2 }
  0xe6   : > { %v665_v33 = vpop.f32.mrf.mxu3  ;;  %v547_v34 = vpop.f32.mrf.mxu0 }
  0xe7   : > { %v587_v35 = vpop.f32.mrf.mxu1  ;;  %v1130_v36 = vpack.c.bf16 %v547_v34, %v545_v30 }
  0xe8   : > { %v1170_v37 = vpack.c.bf16 %v587_v35, %v585_v31 }
  0xe9   : > { %1266 = vst [vmem:[%s1459_s22 + $0x28] sm:$0xff] %v1130_v36  }
  0xea   : > { %1274 = vst [vmem:[%s1459_s22 + $0x68] sm:$0xff] %v1170_v37  }
  0xed   : > { %v627_v38 = vpop.f32.mrf.mxu2 }
  0xee   : > { %v667_v39 = vpop.f32.mrf.mxu3  ;;  %v1210_v40 = vpack.c.bf16 %v627_v38, %v625_v32  ;;  %v550_v42 = vpop.f32.mrf.mxu0 }
  0xef   : > { %v1250_v41 = vpack.c.bf16 %v667_v39, %v665_v33  ;;  %v590_v43 = vpop.f32.mrf.mxu1 }
  0xf0   : > { %1282 = vst [vmem:[%s1459_s22 + $0xa8] sm:$0xff] %v1210_v40  }
  0xf1   : > { %1290 = vst [vmem:[%s1459_s22 + $0xe8] sm:$0xff] %v1250_v41  }
  0xf5   : > { %v630_v44 = vpop.f32.mrf.mxu2 }
  0xf6   : > { %v670_v45 = vpop.f32.mrf.mxu3  ;;  %v552_v46 = vpop.f32.mrf.mxu0 }
  0xf7   : > { %v592_v47 = vpop.f32.mrf.mxu1  ;;  %v1135_v48 = vpack.c.bf16 %v552_v46, %v550_v42 }
  0xf8   : > { %v1175_v49 = vpack.c.bf16 %v592_v47, %v590_v43 }
  0xf9   : > { %1267 = vst [vmem:[%s1459_s22 + $0x30] sm:$0xff] %v1135_v48  }
  0xfa   : > { %1275 = vst [vmem:[%s1459_s22 + $0x70] sm:$0xff] %v1175_v49  }
  0xfd   : > { %v632_v50 = vpop.f32.mrf.mxu2 }
  0xfe   : > { %v672_v51 = vpop.f32.mrf.mxu3  ;;  %v1215_v52 = vpack.c.bf16 %v632_v50, %v630_v44  ;;  %v555_v54 = vpop.f32.mrf.mxu0 }
  0xff   : > { %v1255_v53 = vpack.c.bf16 %v672_v51, %v670_v45  ;;  %v595_v55 = vpop.f32.mrf.mxu1 }
 0x100   : > { %1283 = vst [vmem:[%s1459_s22 + $0xb0] sm:$0xff] %v1215_v52  }
 0x101   : > { %1291 = vst [vmem:[%s1459_s22 + $0xf0] sm:$0xff] %v1255_v53  }
 0x105   : > { %v635_v56 = vpop.f32.mrf.mxu2 }
 0x106   : > { %v675_v57 = vpop.f32.mrf.mxu3  ;;  %v557_v58 = vpop.f32.mrf.mxu0 }
 0x107   : > { %v597_v59 = vpop.f32.mrf.mxu1  ;;  %v1140_v60 = vpack.c.bf16 %v557_v58, %v555_v54 }
 0x108   : > { %v1180_v61 = vpack.c.bf16 %v597_v59, %v595_v55 }
 0x109   : > { %1268 = vst [vmem:[%s1459_s22 + $0x38] sm:$0xff] %v1140_v60  }
 0x10a   : > { %1276 = vst [vmem:[%s1459_s22 + $0x78] sm:$0xff] %v1180_v61  }
 0x10d   : > { %v637_v62 = vpop.f32.mrf.mxu2 }
 0x10e   : > { %v677_v63 = vpop.f32.mrf.mxu3  ;;  %v1220_v0 = vpack.c.bf16 %v637_v62, %v635_v56 }
 0x10f   : > { %v1260_v1 = vpack.c.bf16 %v677_v63, %v675_v57 }
 0x110   : > { %1284 = vst [vmem:[%s1459_s22 + $0xb8] sm:$0xff] %v1220_v0  }
 0x111   : > { %1292 = vst [vmem:[%s1459_s22 + $0xf8] sm:$0xff] %v1260_v1  }
 0x112 PF: > { %s12_s11 = sadd.s32 1, %s1342_s11   ;;  %s1505_s9 = smov %s1338_s10 }
 0x113   : > { %p9_p5 = scmp.ge.s32.totalorder %s12_s11, 18   ;;  %s1506_s10 = smov %s1508_s12 }
 0x115   :  { %11 = sbr.rel (!%p9_p5) target bundleno = 2 (0x2), region = 61 }

</bundles_post_ra>
